<compile_context>
chip_gen: v7x
topology: tpu7x:2x2x1
jax: 0.10.0
libtpu: 0.0.40
codegen_flags: <defaults>
</compile_context>

<pallas_src>
import functools

import jax
import jax.numpy as jnp
from jax import lax
from jax.experimental import pallas as pl
from jax.experimental.pallas import tpu as pltpu

NEG_SLOPE = 1.0  # float(True) == 1.0  (nn.LeakyReLU(True) -> negative_slope = 1.0)


# --------------------------- kernel A: depthwise 7x7, stride 2 ---------------------------

def _dw_stride_kernel(xph_ref, w1_ref, b1_ref, y_ref, *, cin, k1, patch, ho, wo, neg_slope):
    """Strided depthwise conv via polyphase planes (only strided outputs are computed).

    xph_ref: (1, patch*patch*cin, Hh, Wh) phase-split reflect-padded input (VMEM)
             plane index = (p*patch + q)*cin + c, plane[r, s] = xp[c, patch*r+p, patch*s+q]
    w1_ref : (cin*k1*k1,) depthwise weights (SMEM scalars)
    b1_ref : (cin,)       bias              (SMEM scalars)
    y_ref  : (1, cin, ho, wo) output (channel-leading so W maps to lanes)
    """
    planes = []
    for c in range(cin):
        acc = jnp.zeros((ho, wo), jnp.float32)
        for p in range(patch):
            na = (k1 - p + patch - 1) // patch          # taps of this vertical phase
            for q in range(patch):
                nb = (k1 - q + patch - 1) // patch      # taps of this horizontal phase
                ph = xph_ref[0, (p * patch + q) * cin + c].astype(jnp.float32)  # (Hh, Wh)
                for a in range(na):
                    for bb in range(nb):
                        kh = a * patch + p
                        kw = bb * patch + q
                        wv = w1_ref[c * k1 * k1 + kh * k1 + kw]   # SMEM scalar
                        acc = acc + wv * ph[a:a + ho, bb:bb + wo]  # static VMEM slice
        acc = acc + b1_ref[c]
        if neg_slope != 1.0:  # LeakyReLU; slope==1.0 is the identity -> emit nothing
            acc = jnp.where(acc >= 0, acc, neg_slope * acc)
        planes.append(acc)
    y_ref[...] = jnp.stack(planes, axis=0)[None].astype(y_ref.dtype)


# --------------- kernel B: fused 1x1 conv + depthwise 3x3 (reflect) + LayerNorm ---------------

def _pw_dw_ln_kernel(y_ref, pw_ref, pwb_ref, w2_ref, b2_ref, g_ref, beta_ref, out_ref,
                     *, cin, cout, k2, ho, wo, eps, neg_slope):
    """y_ref: (1, L, cin); params in VMEM; out_ref: (1, L, cout), L = ho*wo."""
    L = ho * wo
    y = y_ref[0].astype(jnp.float32)                              # (L, cin)

    # ---- 1x1 conv as cin broadcast FMAs on the VPU (MXU with K=4 would be ~empty)
    z = jnp.zeros((L, cout), jnp.float32)
    for ci in range(cin):
        z = z + y[:, ci:ci + 1] * pw_ref[ci][None, :].astype(jnp.float32)
    z = z + pwb_ref[...].astype(jnp.float32)                      # (1, cout) broadcast

    # ---- depthwise k2 x k2, stride 1, reflect pad 1 (built in-kernel on the VMEM tile)
    z3 = z.reshape(ho, wo, cout)                                  # sublane split only
    zp = jnp.concatenate([z3[1:2], z3, z3[ho - 2:ho - 1]], axis=0)          # reflect rows
    zp = jnp.concatenate([zp[:, 1:2], zp, zp[:, wo - 2:wo - 1]], axis=1)    # reflect cols
    u = jnp.zeros((ho, wo, cout), jnp.float32)
    for kh in range(k2):
        for kw in range(k2):
            w_row = w2_ref[kh * k2 + kw].astype(jnp.float32)      # (cout,) per-channel taps
            u = u + w_row * zp[kh:kh + ho, kw:kw + wo, :]
    u = u + b2_ref[...].astype(jnp.float32)
    if neg_slope != 1.0:  # identity for slope == 1.0
        u = jnp.where(u >= 0, u, neg_slope * u)

    # ---- LayerNorm over channels (epilogue on data already in VMEM)
    mean = jnp.mean(u, axis=-1, keepdims=True)
    var = jnp.mean(jnp.square(u - mean), axis=-1, keepdims=True)
    un = (u - mean) * lax.rsqrt(var + eps)
    out = un * g_ref[...].astype(jnp.float32) + beta_ref[...].astype(jnp.float32)
    out_ref[...] = out.reshape(1, L, cout).astype(out_ref.dtype)


# --------------------------- wrapper / params ---------------------------

def init_params(key, in_channels, out_channels, k1=7, k2=3):
    ks = jax.random.split(key, 8)
    return {
        "dw1_w": 0.1 * jax.random.normal(ks[0], (in_channels, k1, k1), jnp.float32),
        "dw1_b": 0.1 * jax.random.normal(ks[1], (in_channels,), jnp.float32),
        "pw_w":  0.1 * jax.random.normal(ks[2], (in_channels, out_channels), jnp.float32),
        "pw_b":  0.1 * jax.random.normal(ks[3], (1, out_channels), jnp.float32),
        "dw2_w": 0.1 * jax.random.normal(ks[4], (out_channels, k2, k2), jnp.float32),
        "dw2_b": 0.1 * jax.random.normal(ks[5], (1, out_channels), jnp.float32),
        "ln_g":  1.0 + 0.05 * jax.random.normal(ks[6], (1, out_channels), jnp.float32),
        "ln_b":  0.05 * jax.random.normal(ks[7], (1, out_channels), jnp.float32),
    }


def patch_embed_forward(x_nchw, params, *, k1=7, k2=3, patch=2, eps=1e-5,
                        neg_slope=NEG_SLOPE):
    B, Cin, H, W = x_nchw.shape
    Cout = params["pw_w"].shape[1]
    pad1 = (k1 - patch + 1) // 2
    assert H % patch == 0 and W % patch == 0, "patch_size must divide H and W"
    Hp, Wp = H + 2 * pad1, W + 2 * pad1
    assert Hp % patch == 0 and Wp % patch == 0
    Ho = (Hp - k1) // patch + 1
    Wo = (Wp - k1) // patch + 1
    Hh, Wh = Hp // patch, Wp // patch
    ntap = (k1 + patch - 1) // patch  # taps of the densest phase
    assert Ho + ntap - 1 <= Hh and Wo + ntap - 1 <= Wh
    L = Ho * Wo

    # Reflect pad + polyphase split of the raw input (one small XLA pass over the input).
    xp = jnp.pad(x_nchw, ((0, 0), (0, 0), (pad1, pad1), (pad1, pad1)), mode="reflect")
    xph = xp.reshape(B, Cin, Hh, patch, Wh, patch)
    xph = jnp.transpose(xph, (0, 3, 5, 1, 2, 4)).reshape(B, patch * patch * Cin, Hh, Wh)

    smem = pl.BlockSpec(memory_space=pltpu.MemorySpace.SMEM)
    pparams = pltpu.CompilerParams(dimension_semantics=("parallel",))

    # ---- kernel A: strided depthwise 7x7 (+ bias, + LeakyReLU) ----
    y = pl.pallas_call(
        functools.partial(_dw_stride_kernel, cin=Cin, k1=k1, patch=patch,
                          ho=Ho, wo=Wo, neg_slope=neg_slope),
        out_shape=jax.ShapeDtypeStruct((B, Cin, Ho, Wo), jnp.float32),
        grid=(B,),
        in_specs=[pl.BlockSpec((1, patch * patch * Cin, Hh, Wh),
                               lambda b: (b, 0, 0, 0)),
                  smem, smem],
        out_specs=pl.BlockSpec((1, Cin, Ho, Wo), lambda b: (b, 0, 0, 0)),
        compiler_params=pparams,
    )(xph, params["dw1_w"].reshape(-1), params["dw1_b"])

    # Small layout glue: (B, Cin, Ho, Wo) -> (B, L, Cin); y is the smallest tensor in the
    # pipeline (Cin=4 channels at half resolution), so XLA handles the transpose and the
    # kernel-B DMA lands it already channel-last (no in-kernel cross-lane relayout needed).
    y_blc = jnp.transpose(y, (0, 2, 3, 1)).reshape(B, L, Cin)

    # dw2 weights as (k2*k2, Cout): one (Cout,) lane-vector of taps per (kh, kw).
    w2_rows = jnp.transpose(params["dw2_w"].reshape(Cout, k2 * k2), (1, 0))

    # ---- kernel B: fused 1x1 conv + depthwise 3x3 (reflect) + LeakyReLU + LayerNorm ----
    const2d = lambda shape: pl.BlockSpec(shape, lambda b: (0, 0))
    out = pl.pallas_call(
        functools.partial(_pw_dw_ln_kernel, cin=Cin, cout=Cout, k2=k2,
                          ho=Ho, wo=Wo, eps=eps, neg_slope=neg_slope),
        out_shape=jax.ShapeDtypeStruct((B, L, Cout), jnp.float32),
        grid=(B,),
        in_specs=[pl.BlockSpec((1, L, Cin), lambda b: (b, 0, 0)),
                  const2d((Cin, Cout)),          # pw_w
                  const2d((1, Cout)),            # pw_b
                  const2d((k2 * k2, Cout)),      # dw2 taps
                  const2d((1, Cout)),            # dw2_b
                  const2d((1, Cout)),            # ln gamma
                  const2d((1, Cout))],           # ln beta
        out_specs=pl.BlockSpec((1, L, Cout), lambda b: (b, 0, 0)),
        compiler_params=pparams,
    )(y_blc, params["pw_w"], params["pw_b"], w2_rows, params["dw2_b"],
      params["ln_g"], params["ln_b"])
    return out


# --------------------------- pure-JAX reference ---------------------------

def reference_forward(x, params, *, k1=7, k2=3, patch=2, eps=1e-5, neg_slope=NEG_SLOPE):
    B, Cin, H, W = x.shape
    Cout = params["pw_w"].shape[1]
    pad1 = (k1 - patch + 1) // 2
    xp = jnp.pad(x, ((0, 0), (0, 0), (pad1, pad1), (pad1, pad1)), mode="reflect")
    y = lax.conv_general_dilated(
        xp, params["dw1_w"].reshape(Cin, 1, k1, k1), (patch, patch), "VALID",
        dimension_numbers=("NCHW", "OIHW", "NCHW"), feature_group_count=Cin,
        precision=lax.Precision.HIGHEST) + params["dw1_b"].reshape(1, Cin, 1, 1)
    y = jnp.where(y >= 0, y, neg_slope * y)
    z = lax.conv_general_dilated(
        y, jnp.transpose(params["pw_w"], (1, 0)).reshape(Cout, Cin, 1, 1), (1, 1), "VALID",
        dimension_numbers=("NCHW", "OIHW", "NCHW"),
        precision=lax.Precision.HIGHEST) + params["pw_b"].reshape(1, Cout, 1, 1)
    zp = jnp.pad(z, ((0, 0), (0, 0), (1, 1), (1, 1)), mode="reflect")
    u = lax.conv_general_dilated(
        zp, params["dw2_w"].reshape(Cout, 1, k2, k2), (1, 1), "VALID",
        dimension_numbers=("NCHW", "OIHW", "NCHW"), feature_group_count=Cout,
        precision=lax.Precision.HIGHEST) + params["dw2_b"].reshape(1, Cout, 1, 1)
    u = jnp.where(u >= 0, u, neg_slope * u)
    v = jnp.transpose(u, (0, 2, 3, 1)).reshape(B, -1, Cout)   # bchw_2_blc
    mean = jnp.mean(v, axis=-1, keepdims=True)
    var = jnp.mean(jnp.square(v - mean), axis=-1, keepdims=True)
    return ((v - mean) * lax.rsqrt(var + eps) * params["ln_g"].reshape(1, 1, Cout)
            + params["ln_b"].reshape(1, 1, Cout))


# --------------------------- main ---------------------------

if __name__ == "__main__":
    key = jax.random.PRNGKey(0)
    kx, kp = jax.random.split(key)
    B, Cin, H, W = 2, 4, 16, 16
    Cout = 32
    x = jax.random.normal(kx, (B, Cin, H, W), jnp.float32)   # NCHW, like the PyTorch module
    params = init_params(kp, Cin, Cout)

    out = jax.block_until_ready(jax.jit(patch_embed_forward)(x, params))
    assert out.shape == (B, (H // 2) * (W // 2), Cout), out.shape

    ref = reference_forward(x, params)
    err = float(jnp.max(jnp.abs(out - ref)))
    assert jnp.allclose(out, ref, rtol=1e-3, atol=1e-3), f"max abs err {err}"

    print("KERNEL_OK")
</pallas_src>

<mosaic_0001>
module attributes {stable_mosaic.version = 11 : i64} {
  func.func @_dw_stride_kernel(%arg0: i32, %arg1: memref<1x16x11x11xf32, #tpu.memory_space<vmem>>, %arg2: memref<196xf32, #tpu.memory_space<smem>>, %arg3: memref<4xf32, #tpu.memory_space<smem>>, %arg4: memref<1x4x8x8xf32, #tpu.memory_space<vmem>>) attributes {dimension_semantics = [#tpu.dimension_semantics<parallel>], iteration_bounds = array<i64: 2>, scalar_prefetch = 0 : i64, scratch_operands = 0 : i64, tpu.core_type = #tpu.core_type<tc>, window_params = [{transform_indices = @transform_0, window_bounds = array<i64: 1, 16, 11, 11>}, {transform_indices = @transform_1, window_bounds = array<i64: 196>}, {transform_indices = @transform_2, window_bounds = array<i64: 4>}, {transform_indices = @transform_3, window_bounds = array<i64: 1, 4, 8, 8>}]} {
    %cst = arith.constant 0.000000e+00 : f32
    %0 = vector.broadcast %cst : f32 to vector<8x8xf32>
    %c0 = arith.constant 0 : index
    %c0_0 = arith.constant 0 : index
    %c0_1 = arith.constant 0 : index
    %c0_2 = arith.constant 0 : index
    %1 = vector.load %arg1[%c0, %c0_0, %c0_1, %c0_2] : memref<1x16x11x11xf32, #tpu.memory_space<vmem>>, vector<1x1x11x11xf32>
    %2 = vector.shape_cast %1 : vector<1x1x11x11xf32> to vector<11x11xf32>
    %c0_3 = arith.constant 0 : index
    %3 = memref.load %arg2[%c0_3] : memref<196xf32, #tpu.memory_space<smem>>
    %4 = vector.extract_strided_slice %2 {offsets = [0, 0], sizes = [8, 8], strides = [1, 1]} : vector<11x11xf32> to vector<8x8xf32>
    %5 = vector.broadcast %3 : f32 to vector<8x8xf32>
    %6 = arith.mulf %5, %4 : vector<8x8xf32>
    %7 = arith.addf %0, %6 : vector<8x8xf32>
    %c2 = arith.constant 2 : index
    %8 = memref.load %arg2[%c2] : memref<196xf32, #tpu.memory_space<smem>>
    %9 = vector.extract_strided_slice %2 {offsets = [0, 1], sizes = [8, 8], strides = [1, 1]} : vector<11x11xf32> to vector<8x8xf32>
    %10 = vector.broadcast %8 : f32 to vector<8x8xf32>
    %11 = arith.mulf %10, %9 : vector<8x8xf32>
    %12 = arith.addf %7, %11 : vector<8x8xf32>
    %c4 = arith.constant 4 : index
    %13 = memref.load %arg2[%c4] : memref<196xf32, #tpu.memory_space<smem>>
    %14 = vector.extract_strided_slice %2 {offsets = [0, 2], sizes = [8, 8], strides = [1, 1]} : vector<11x11xf32> to vector<8x8xf32>
    %15 = vector.broadcast %13 : f32 to vector<8x8xf32>
    %16 = arith.mulf %15, %14 : vector<8x8xf32>
    %17 = arith.addf %12, %16 : vector<8x8xf32>
    %c6 = arith.constant 6 : index
    %18 = memref.load %arg2[%c6] : memref<196xf32, #tpu.memory_space<smem>>
    %19 = vector.extract_strided_slice %2 {offsets = [0, 3], sizes = [8, 8], strides = [1, 1]} : vector<11x11xf32> to vector<8x8xf32>
    %20 = vector.broadcast %18 : f32 to vector<8x8xf32>
    %21 = arith.mulf %20, %19 : vector<8x8xf32>
    %22 = arith.addf %17, %21 : vector<8x8xf32>
    %c14 = arith.constant 14 : index
    %23 = memref.load %arg2[%c14] : memref<196xf32, #tpu.memory_space<smem>>
    %24 = vector.extract_strided_slice %2 {offsets = [1, 0], sizes = [8, 8], strides = [1, 1]} : vector<11x11xf32> to vector<8x8xf32>
    %25 = vector.broadcast %23 : f32 to vector<8x8xf32>
    %26 = arith.mulf %25, %24 : vector<8x8xf32>
    %27 = arith.addf %22, %26 : vector<8x8xf32>
    %c16 = arith.constant 16 : index
    %28 = memref.load %arg2[%c16] : memref<196xf32, #tpu.memory_space<smem>>
    %29 = vector.extract_strided_slice %2 {offsets = [1, 1], sizes = [8, 8], strides = [1, 1]} : vector<11x11xf32> to vector<8x8xf32>
    %30 = vector.broadcast %28 : f32 to vector<8x8xf32>
    %31 = arith.mulf %30, %29 : vector<8x8xf32>
    %32 = arith.addf %27, %31 : vector<8x8xf32>
    %c18 = arith.constant 18 : index
    %33 = memref.load %arg2[%c18] : memref<196xf32, #tpu.memory_space<smem>>
    %34 = vector.extract_strided_slice %2 {offsets = [1, 2], sizes = [8, 8], strides = [1, 1]} : vector<11x11xf32> to vector<8x8xf32>
    %35 = vector.broadcast %33 : f32 to vector<8x8xf32>
    %36 = arith.mulf %35, %34 : vector<8x8xf32>
    %37 = arith.addf %32, %36 : vector<8x8xf32>
    %c20 = arith.constant 20 : index
    %38 = memref.load %arg2[%c20] : memref<196xf32, #tpu.memory_space<smem>>
    %39 = vector.extract_strided_slice %2 {offsets = [1, 3], sizes = [8, 8], strides = [1, 1]} : vector<11x11xf32> to vector<8x8xf32>
    %40 = vector.broadcast %38 : f32 to vector<8x8xf32>
    %41 = arith.mulf %40, %39 : vector<8x8xf32>
    %42 = arith.addf %37, %41 : vector<8x8xf32>
    %c28 = arith.constant 28 : index
    %43 = memref.load %arg2[%c28] : memref<196xf32, #tpu.memory_space<smem>>
    %44 = vector.extract_strided_slice %2 {offsets = [2, 0], sizes = [8, 8], strides = [1, 1]} : vector<11x11xf32> to vector<8x8xf32>
    %45 = vector.broadcast %43 : f32 to vector<8x8xf32>
    %46 = arith.mulf %45, %44 : vector<8x8xf32>
    %47 = arith.addf %42, %46 : vector<8x8xf32>
    %c30 = arith.constant 30 : index
    %48 = memref.load %arg2[%c30] : memref<196xf32, #tpu.memory_space<smem>>
    %49 = vector.extract_strided_slice %2 {offsets = [2, 1], sizes = [8, 8], strides = [1, 1]} : vector<11x11xf32> to vector<8x8xf32>
    %50 = vector.broadcast %48 : f32 to vector<8x8xf32>
    %51 = arith.mulf %50, %49 : vector<8x8xf32>
    %52 = arith.addf %47, %51 : vector<8x8xf32>
    %c32 = arith.constant 32 : index
    %53 = memref.load %arg2[%c32] : memref<196xf32, #tpu.memory_space<smem>>
    %54 = vector.extract_strided_slice %2 {offsets = [2, 2], sizes = [8, 8], strides = [1, 1]} : vector<11x11xf32> to vector<8x8xf32>
    %55 = vector.broadcast %53 : f32 to vector<8x8xf32>
    %56 = arith.mulf %55, %54 : vector<8x8xf32>
    %57 = arith.addf %52, %56 : vector<8x8xf32>
    %c34 = arith.constant 34 : index
    %58 = memref.load %arg2[%c34] : memref<196xf32, #tpu.memory_space<smem>>
    %59 = vector.extract_strided_slice %2 {offsets = [2, 3], sizes = [8, 8], strides = [1, 1]} : vector<11x11xf32> to vector<8x8xf32>
    %60 = vector.broadcast %58 : f32 to vector<8x8xf32>
    %61 = arith.mulf %60, %59 : vector<8x8xf32>
    %62 = arith.addf %57, %61 : vector<8x8xf32>
    %c42 = arith.constant 42 : index
    %63 = memref.load %arg2[%c42] : memref<196xf32, #tpu.memory_space<smem>>
    %64 = vector.extract_strided_slice %2 {offsets = [3, 0], sizes = [8, 8], strides = [1, 1]} : vector<11x11xf32> to vector<8x8xf32>
    %65 = vector.broadcast %63 : f32 to vector<8x8xf32>
    %66 = arith.mulf %65, %64 : vector<8x8xf32>
    %67 = arith.addf %62, %66 : vector<8x8xf32>
    %c44 = arith.constant 44 : index
    %68 = memref.load %arg2[%c44] : memref<196xf32, #tpu.memory_space<smem>>
    %69 = vector.extract_strided_slice %2 {offsets = [3, 1], sizes = [8, 8], strides = [1, 1]} : vector<11x11xf32> to vector<8x8xf32>
    %70 = vector.broadcast %68 : f32 to vector<8x8xf32>
    %71 = arith.mulf %70, %69 : vector<8x8xf32>
    %72 = arith.addf %67, %71 : vector<8x8xf32>
    %c46 = arith.constant 46 : index
    %73 = memref.load %arg2[%c46] : memref<196xf32, #tpu.memory_space<smem>>
    %74 = vector.extract_strided_slice %2 {offsets = [3, 2], sizes = [8, 8], strides = [1, 1]} : vector<11x11xf32> to vector<8x8xf32>
    %75 = vector.broadcast %73 : f32 to vector<8x8xf32>
    %76 = arith.mulf %75, %74 : vector<8x8xf32>
    %77 = arith.addf %72, %76 : vector<8x8xf32>
    %c48 = arith.constant 48 : index
    %78 = memref.load %arg2[%c48] : memref<196xf32, #tpu.memory_space<smem>>
    %79 = vector.extract_strided_slice %2 {offsets = [3, 3], sizes = [8, 8], strides = [1, 1]} : vector<11x11xf32> to vector<8x8xf32>
    %80 = vector.broadcast %78 : f32 to vector<8x8xf32>
    %81 = arith.mulf %80, %79 : vector<8x8xf32>
    %82 = arith.addf %77, %81 : vector<8x8xf32>
    %c0_4 = arith.constant 0 : index
    %c4_5 = arith.constant 4 : index
    %c0_6 = arith.constant 0 : index
    %c0_7 = arith.constant 0 : index
    %83 = vector.load %arg1[%c0_4, %c4_5, %c0_6, %c0_7] : memref<1x16x11x11xf32, #tpu.memory_space<vmem>>, vector<1x1x11x11xf32>
    %84 = vector.shape_cast %83 : vector<1x1x11x11xf32> to vector<11x11xf32>
    %c1 = arith.constant 1 : index
    %85 = memref.load %arg2[%c1] : memref<196xf32, #tpu.memory_space<smem>>
    %86 = vector.extract_strided_slice %84 {offsets = [0, 0], sizes = [8, 8], strides = [1, 1]} : vector<11x11xf32> to vector<8x8xf32>
    %87 = vector.broadcast %85 : f32 to vector<8x8xf32>
    %88 = arith.mulf %87, %86 : vector<8x8xf32>
    %89 = arith.addf %82, %88 : vector<8x8xf32>
    %c3 = arith.constant 3 : index
    %90 = memref.load %arg2[%c3] : memref<196xf32, #tpu.memory_space<smem>>
    %91 = vector.extract_strided_slice %84 {offsets = [0, 1], sizes = [8, 8], strides = [1, 1]} : vector<11x11xf32> to vector<8x8xf32>
    %92 = vector.broadcast %90 : f32 to vector<8x8xf32>
    %93 = arith.mulf %92, %91 : vector<8x8xf32>
    %94 = arith.addf %89, %93 : vector<8x8xf32>
    %c5 = arith.constant 5 : index
    %95 = memref.load %arg2[%c5] : memref<196xf32, #tpu.memory_space<smem>>
    %96 = vector.extract_strided_slice %84 {offsets = [0, 2], sizes = [8, 8], strides = [1, 1]} : vector<11x11xf32> to vector<8x8xf32>
    %97 = vector.broadcast %95 : f32 to vector<8x8xf32>
    %98 = arith.mulf %97, %96 : vector<8x8xf32>
    %99 = arith.addf %94, %98 : vector<8x8xf32>
    %c15 = arith.constant 15 : index
    %100 = memref.load %arg2[%c15] : memref<196xf32, #tpu.memory_space<smem>>
    %101 = vector.extract_strided_slice %84 {offsets = [1, 0], sizes = [8, 8], strides = [1, 1]} : vector<11x11xf32> to vector<8x8xf32>
    %102 = vector.broadcast %100 : f32 to vector<8x8xf32>
    %103 = arith.mulf %102, %101 : vector<8x8xf32>
    %104 = arith.addf %99, %103 : vector<8x8xf32>
    %c17 = arith.constant 17 : index
    %105 = memref.load %arg2[%c17] : memref<196xf32, #tpu.memory_space<smem>>
    %106 = vector.extract_strided_slice %84 {offsets = [1, 1], sizes = [8, 8], strides = [1, 1]} : vector<11x11xf32> to vector<8x8xf32>
    %107 = vector.broadcast %105 : f32 to vector<8x8xf32>
    %108 = arith.mulf %107, %106 : vector<8x8xf32>
    %109 = arith.addf %104, %108 : vector<8x8xf32>
    %c19 = arith.constant 19 : index
    %110 = memref.load %arg2[%c19] : memref<196xf32, #tpu.memory_space<smem>>
    %111 = vector.extract_strided_slice %84 {offsets = [1, 2], sizes = [8, 8], strides = [1, 1]} : vector<11x11xf32> to vector<8x8xf32>
    %112 = vector.broadcast %110 : f32 to vector<8x8xf32>
    %113 = arith.mulf %112, %111 : vector<8x8xf32>
    %114 = arith.addf %109, %113 : vector<8x8xf32>
    %c29 = arith.constant 29 : index
    %115 = memref.load %arg2[%c29] : memref<196xf32, #tpu.memory_space<smem>>
    %116 = vector.extract_strided_slice %84 {offsets = [2, 0], sizes = [8, 8], strides = [1, 1]} : vector<11x11xf32> to vector<8x8xf32>
    %117 = vector.broadcast %115 : f32 to vector<8x8xf32>
    %118 = arith.mulf %117, %116 : vector<8x8xf32>
    %119 = arith.addf %114, %118 : vector<8x8xf32>
    %c31 = arith.constant 31 : index
    %120 = memref.load %arg2[%c31] : memref<196xf32, #tpu.memory_space<smem>>
    %121 = vector.extract_strided_slice %84 {offsets = [2, 1], sizes = [8, 8], strides = [1, 1]} : vector<11x11xf32> to vector<8x8xf32>
    %122 = vector.broadcast %120 : f32 to vector<8x8xf32>
    %123 = arith.mulf %122, %121 : vector<8x8xf32>
    %124 = arith.addf %119, %123 : vector<8x8xf32>
    %c33 = arith.constant 33 : index
    %125 = memref.load %arg2[%c33] : memref<196xf32, #tpu.memory_space<smem>>
    %126 = vector.extract_strided_slice %84 {offsets = [2, 2], sizes = [8, 8], strides = [1, 1]} : vector<11x11xf32> to vector<8x8xf32>
    %127 = vector.broadcast %125 : f32 to vector<8x8xf32>
    %128 = arith.mulf %127, %126 : vector<8x8xf32>
    %129 = arith.addf %124, %128 : vector<8x8xf32>
    %c43 = arith.constant 43 : index
    %130 = memref.load %arg2[%c43] : memref<196xf32, #tpu.memory_space<smem>>
    %131 = vector.extract_strided_slice %84 {offsets = [3, 0], sizes = [8, 8], strides = [1, 1]} : vector<11x11xf32> to vector<8x8xf32>
    %132 = vector.broadcast %130 : f32 to vector<8x8xf32>
    %133 = arith.mulf %132, %131 : vector<8x8xf32>
    %134 = arith.addf %129, %133 : vector<8x8xf32>
    %c45 = arith.constant 45 : index
    %135 = memref.load %arg2[%c45] : memref<196xf32, #tpu.memory_space<smem>>
    %136 = vector.extract_strided_slice %84 {offsets = [3, 1], sizes = [8, 8], strides = [1, 1]} : vector<11x11xf32> to vector<8x8xf32>
    %137 = vector.broadcast %135 : f32 to vector<8x8xf32>
    %138 = arith.mulf %137, %136 : vector<8x8xf32>
    %139 = arith.addf %134, %138 : vector<8x8xf32>
    %c47 = arith.constant 47 : index
    %140 = memref.load %arg2[%c47] : memref<196xf32, #tpu.memory_space<smem>>
    %141 = vector.extract_strided_slice %84 {offsets = [3, 2], sizes = [8, 8], strides = [1, 1]} : vector<11x11xf32> to vector<8x8xf32>
    %142 = vector.broadcast %140 : f32 to vector<8x8xf32>
    %143 = arith.mulf %142, %141 : vector<8x8xf32>
    %144 = arith.addf %139, %143 : vector<8x8xf32>
    %c0_8 = arith.constant 0 : index
    %c8 = arith.constant 8 : index
    %c0_9 = arith.constant 0 : index
    %c0_10 = arith.constant 0 : index
    %145 = vector.load %arg1[%c0_8, %c8, %c0_9, %c0_10] : memref<1x16x11x11xf32, #tpu.memory_space<vmem>>, vector<1x1x11x11xf32>
    %146 = vector.shape_cast %145 : vector<1x1x11x11xf32> to vector<11x11xf32>
    %c7 = arith.constant 7 : index
    %147 = memref.load %arg2[%c7] : memref<196xf32, #tpu.memory_space<smem>>
    %148 = vector.extract_strided_slice %146 {offsets = [0, 0], sizes = [8, 8], strides = [1, 1]} : vector<11x11xf32> to vector<8x8xf32>
    %149 = vector.broadcast %147 : f32 to vector<8x8xf32>
    %150 = arith.mulf %149, %148 : vector<8x8xf32>
    %151 = arith.addf %144, %150 : vector<8x8xf32>
    %c9 = arith.constant 9 : index
    %152 = memref.load %arg2[%c9] : memref<196xf32, #tpu.memory_space<smem>>
    %153 = vector.extract_strided_slice %146 {offsets = [0, 1], sizes = [8, 8], strides = [1, 1]} : vector<11x11xf32> to vector<8x8xf32>
    %154 = vector.broadcast %152 : f32 to vector<8x8xf32>
    %155 = arith.mulf %154, %153 : vector<8x8xf32>
    %156 = arith.addf %151, %155 : vector<8x8xf32>
    %c11 = arith.constant 11 : index
    %157 = memref.load %arg2[%c11] : memref<196xf32, #tpu.memory_space<smem>>
    %158 = vector.extract_strided_slice %146 {offsets = [0, 2], sizes = [8, 8], strides = [1, 1]} : vector<11x11xf32> to vector<8x8xf32>
    %159 = vector.broadcast %157 : f32 to vector<8x8xf32>
    %160 = arith.mulf %159, %158 : vector<8x8xf32>
    %161 = arith.addf %156, %160 : vector<8x8xf32>
    %c13 = arith.constant 13 : index
    %162 = memref.load %arg2[%c13] : memref<196xf32, #tpu.memory_space<smem>>
    %163 = vector.extract_strided_slice %146 {offsets = [0, 3], sizes = [8, 8], strides = [1, 1]} : vector<11x11xf32> to vector<8x8xf32>
    %164 = vector.broadcast %162 : f32 to vector<8x8xf32>
    %165 = arith.mulf %164, %163 : vector<8x8xf32>
    %166 = arith.addf %161, %165 : vector<8x8xf32>
    %c21 = arith.constant 21 : index
    %167 = memref.load %arg2[%c21] : memref<196xf32, #tpu.memory_space<smem>>
    %168 = vector.extract_strided_slice %146 {offsets = [1, 0], sizes = [8, 8], strides = [1, 1]} : vector<11x11xf32> to vector<8x8xf32>
    %169 = vector.broadcast %167 : f32 to vector<8x8xf32>
    %170 = arith.mulf %169, %168 : vector<8x8xf32>
    %171 = arith.addf %166, %170 : vector<8x8xf32>
    %c23 = arith.constant 23 : index
    %172 = memref.load %arg2[%c23] : memref<196xf32, #tpu.memory_space<smem>>
    %173 = vector.extract_strided_slice %146 {offsets = [1, 1], sizes = [8, 8], strides = [1, 1]} : vector<11x11xf32> to vector<8x8xf32>
    %174 = vector.broadcast %172 : f32 to vector<8x8xf32>
    %175 = arith.mulf %174, %173 : vector<8x8xf32>
    %176 = arith.addf %171, %175 : vector<8x8xf32>
    %c25 = arith.constant 25 : index
    %177 = memref.load %arg2[%c25] : memref<196xf32, #tpu.memory_space<smem>>
    %178 = vector.extract_strided_slice %146 {offsets = [1, 2], sizes = [8, 8], strides = [1, 1]} : vector<11x11xf32> to vector<8x8xf32>
    %179 = vector.broadcast %177 : f32 to vector<8x8xf32>
    %180 = arith.mulf %179, %178 : vector<8x8xf32>
    %181 = arith.addf %176, %180 : vector<8x8xf32>
    %c27 = arith.constant 27 : index
    %182 = memref.load %arg2[%c27] : memref<196xf32, #tpu.memory_space<smem>>
    %183 = vector.extract_strided_slice %146 {offsets = [1, 3], sizes = [8, 8], strides = [1, 1]} : vector<11x11xf32> to vector<8x8xf32>
    %184 = vector.broadcast %182 : f32 to vector<8x8xf32>
    %185 = arith.mulf %184, %183 : vector<8x8xf32>
    %186 = arith.addf %181, %185 : vector<8x8xf32>
    %c35 = arith.constant 35 : index
    %187 = memref.load %arg2[%c35] : memref<196xf32, #tpu.memory_space<smem>>
    %188 = vector.extract_strided_slice %146 {offsets = [2, 0], sizes = [8, 8], strides = [1, 1]} : vector<11x11xf32> to vector<8x8xf32>
    %189 = vector.broadcast %187 : f32 to vector<8x8xf32>
    %190 = arith.mulf %189, %188 : vector<8x8xf32>
    %191 = arith.addf %186, %190 : vector<8x8xf32>
    %c37 = arith.constant 37 : index
    %192 = memref.load %arg2[%c37] : memref<196xf32, #tpu.memory_space<smem>>
    %193 = vector.extract_strided_slice %146 {offsets = [2, 1], sizes = [8, 8], strides = [1, 1]} : vector<11x11xf32> to vector<8x8xf32>
    %194 = vector.broadcast %192 : f32 to vector<8x8xf32>
    %195 = arith.mulf %194, %193 : vector<8x8xf32>
    %196 = arith.addf %191, %195 : vector<8x8xf32>
    %c39 = arith.constant 39 : index
    %197 = memref.load %arg2[%c39] : memref<196xf32, #tpu.memory_space<smem>>
    %198 = vector.extract_strided_slice %146 {offsets = [2, 2], sizes = [8, 8], strides = [1, 1]} : vector<11x11xf32> to vector<8x8xf32>
    %199 = vector.broadcast %197 : f32 to vector<8x8xf32>
    %200 = arith.mulf %199, %198 : vector<8x8xf32>
    %201 = arith.addf %196, %200 : vector<8x8xf32>
    %c41 = arith.constant 41 : index
    %202 = memref.load %arg2[%c41] : memref<196xf32, #tpu.memory_space<smem>>
    %203 = vector.extract_strided_slice %146 {offsets = [2, 3], sizes = [8, 8], strides = [1, 1]} : vector<11x11xf32> to vector<8x8xf32>
    %204 = vector.broadcast %202 : f32 to vector<8x8xf32>
    %205 = arith.mulf %204, %203 : vector<8x8xf32>
    %206 = arith.addf %201, %205 : vector<8x8xf32>
    %c0_11 = arith.constant 0 : index
    %c12 = arith.constant 12 : index
    %c0_12 = arith.constant 0 : index
    %c0_13 = arith.constant 0 : index
    %207 = vector.load %arg1[%c0_11, %c12, %c0_12, %c0_13] : memref<1x16x11x11xf32, #tpu.memory_space<vmem>>, vector<1x1x11x11xf32>
    %208 = vector.shape_cast %207 : vector<1x1x11x11xf32> to vector<11x11xf32>
    %c8_14 = arith.constant 8 : index
    %209 = memref.load %arg2[%c8_14] : memref<196xf32, #tpu.memory_space<smem>>
    %210 = vector.extract_strided_slice %208 {offsets = [0, 0], sizes = [8, 8], strides = [1, 1]} : vector<11x11xf32> to vector<8x8xf32>
    %211 = vector.broadcast %209 : f32 to vector<8x8xf32>
    %212 = arith.mulf %211, %210 : vector<8x8xf32>
    %213 = arith.addf %206, %212 : vector<8x8xf32>
    %c10 = arith.constant 10 : index
    %214 = memref.load %arg2[%c10] : memref<196xf32, #tpu.memory_space<smem>>
    %215 = vector.extract_strided_slice %208 {offsets = [0, 1], sizes = [8, 8], strides = [1, 1]} : vector<11x11xf32> to vector<8x8xf32>
    %216 = vector.broadcast %214 : f32 to vector<8x8xf32>
    %217 = arith.mulf %216, %215 : vector<8x8xf32>
    %218 = arith.addf %213, %217 : vector<8x8xf32>
    %c12_15 = arith.constant 12 : index
    %219 = memref.load %arg2[%c12_15] : memref<196xf32, #tpu.memory_space<smem>>
    %220 = vector.extract_strided_slice %208 {offsets = [0, 2], sizes = [8, 8], strides = [1, 1]} : vector<11x11xf32> to vector<8x8xf32>
    %221 = vector.broadcast %219 : f32 to vector<8x8xf32>
    %222 = arith.mulf %221, %220 : vector<8x8xf32>
    %223 = arith.addf %218, %222 : vector<8x8xf32>
    %c22 = arith.constant 22 : index
    %224 = memref.load %arg2[%c22] : memref<196xf32, #tpu.memory_space<smem>>
    %225 = vector.extract_strided_slice %208 {offsets = [1, 0], sizes = [8, 8], strides = [1, 1]} : vector<11x11xf32> to vector<8x8xf32>
    %226 = vector.broadcast %224 : f32 to vector<8x8xf32>
    %227 = arith.mulf %226, %225 : vector<8x8xf32>
    %228 = arith.addf %223, %227 : vector<8x8xf32>
    %c24 = arith.constant 24 : index
    %229 = memref.load %arg2[%c24] : memref<196xf32, #tpu.memory_space<smem>>
    %230 = vector.extract_strided_slice %208 {offsets = [1, 1], sizes = [8, 8], strides = [1, 1]} : vector<11x11xf32> to vector<8x8xf32>
    %231 = vector.broadcast %229 : f32 to vector<8x8xf32>
    %232 = arith.mulf %231, %230 : vector<8x8xf32>
    %233 = arith.addf %228, %232 : vector<8x8xf32>
    %c26 = arith.constant 26 : index
    %234 = memref.load %arg2[%c26] : memref<196xf32, #tpu.memory_space<smem>>
    %235 = vector.extract_strided_slice %208 {offsets = [1, 2], sizes = [8, 8], strides = [1, 1]} : vector<11x11xf32> to vector<8x8xf32>
    %236 = vector.broadcast %234 : f32 to vector<8x8xf32>
    %237 = arith.mulf %236, %235 : vector<8x8xf32>
    %238 = arith.addf %233, %237 : vector<8x8xf32>
    %c36 = arith.constant 36 : index
    %239 = memref.load %arg2[%c36] : memref<196xf32, #tpu.memory_space<smem>>
    %240 = vector.extract_strided_slice %208 {offsets = [2, 0], sizes = [8, 8], strides = [1, 1]} : vector<11x11xf32> to vector<8x8xf32>
    %241 = vector.broadcast %239 : f32 to vector<8x8xf32>
    %242 = arith.mulf %241, %240 : vector<8x8xf32>
    %243 = arith.addf %238, %242 : vector<8x8xf32>
    %c38 = arith.constant 38 : index
    %244 = memref.load %arg2[%c38] : memref<196xf32, #tpu.memory_space<smem>>
    %245 = vector.extract_strided_slice %208 {offsets = [2, 1], sizes = [8, 8], strides = [1, 1]} : vector<11x11xf32> to vector<8x8xf32>
    %246 = vector.broadcast %244 : f32 to vector<8x8xf32>
    %247 = arith.mulf %246, %245 : vector<8x8xf32>
    %248 = arith.addf %243, %247 : vector<8x8xf32>
    %c40 = arith.constant 40 : index
    %249 = memref.load %arg2[%c40] : memref<196xf32, #tpu.memory_space<smem>>
    %250 = vector.extract_strided_slice %208 {offsets = [2, 2], sizes = [8, 8], strides = [1, 1]} : vector<11x11xf32> to vector<8x8xf32>
    %251 = vector.broadcast %249 : f32 to vector<8x8xf32>
    %252 = arith.mulf %251, %250 : vector<8x8xf32>
    %253 = arith.addf %248, %252 : vector<8x8xf32>
    %c0_16 = arith.constant 0 : index
    %254 = memref.load %arg3[%c0_16] : memref<4xf32, #tpu.memory_space<smem>>
    %255 = vector.broadcast %254 : f32 to vector<8x8xf32>
    %256 = arith.addf %253, %255 : vector<8x8xf32>
    %cst_17 = arith.constant 0.000000e+00 : f32
    %257 = vector.broadcast %cst_17 : f32 to vector<8x8xf32>
    %c0_18 = arith.constant 0 : index
    %c1_19 = arith.constant 1 : index
    %c0_20 = arith.constant 0 : index
    %c0_21 = arith.constant 0 : index
    %258 = vector.load %arg1[%c0_18, %c1_19, %c0_20, %c0_21] : memref<1x16x11x11xf32, #tpu.memory_space<vmem>>, vector<1x1x11x11xf32>
    %259 = vector.shape_cast %258 : vector<1x1x11x11xf32> to vector<11x11xf32>
    %c49 = arith.constant 49 : index
    %260 = memref.load %arg2[%c49] : memref<196xf32, #tpu.memory_space<smem>>
    %261 = vector.extract_strided_slice %259 {offsets = [0, 0], sizes = [8, 8], strides = [1, 1]} : vector<11x11xf32> to vector<8x8xf32>
    %262 = vector.broadcast %260 : f32 to vector<8x8xf32>
    %263 = arith.mulf %262, %261 : vector<8x8xf32>
    %264 = arith.addf %257, %263 : vector<8x8xf32>
    %c51 = arith.constant 51 : index
    %265 = memref.load %arg2[%c51] : memref<196xf32, #tpu.memory_space<smem>>
    %266 = vector.extract_strided_slice %259 {offsets = [0, 1], sizes = [8, 8], strides = [1, 1]} : vector<11x11xf32> to vector<8x8xf32>
    %267 = vector.broadcast %265 : f32 to vector<8x8xf32>
    %268 = arith.mulf %267, %266 : vector<8x8xf32>
    %269 = arith.addf %264, %268 : vector<8x8xf32>
    %c53 = arith.constant 53 : index
    %270 = memref.load %arg2[%c53] : memref<196xf32, #tpu.memory_space<smem>>
    %271 = vector.extract_strided_slice %259 {offsets = [0, 2], sizes = [8, 8], strides = [1, 1]} : vector<11x11xf32> to vector<8x8xf32>
    %272 = vector.broadcast %270 : f32 to vector<8x8xf32>
    %273 = arith.mulf %272, %271 : vector<8x8xf32>
    %274 = arith.addf %269, %273 : vector<8x8xf32>
    %c55 = arith.constant 55 : index
    %275 = memref.load %arg2[%c55] : memref<196xf32, #tpu.memory_space<smem>>
    %276 = vector.extract_strided_slice %259 {offsets = [0, 3], sizes = [8, 8], strides = [1, 1]} : vector<11x11xf32> to vector<8x8xf32>
    %277 = vector.broadcast %275 : f32 to vector<8x8xf32>
    %278 = arith.mulf %277, %276 : vector<8x8xf32>
    %279 = arith.addf %274, %278 : vector<8x8xf32>
    %c63 = arith.constant 63 : index
    %280 = memref.load %arg2[%c63] : memref<196xf32, #tpu.memory_space<smem>>
    %281 = vector.extract_strided_slice %259 {offsets = [1, 0], sizes = [8, 8], strides = [1, 1]} : vector<11x11xf32> to vector<8x8xf32>
    %282 = vector.broadcast %280 : f32 to vector<8x8xf32>
    %283 = arith.mulf %282, %281 : vector<8x8xf32>
    %284 = arith.addf %279, %283 : vector<8x8xf32>
    %c65 = arith.constant 65 : index
    %285 = memref.load %arg2[%c65] : memref<196xf32, #tpu.memory_space<smem>>
    %286 = vector.extract_strided_slice %259 {offsets = [1, 1], sizes = [8, 8], strides = [1, 1]} : vector<11x11xf32> to vector<8x8xf32>
    %287 = vector.broadcast %285 : f32 to vector<8x8xf32>
    %288 = arith.mulf %287, %286 : vector<8x8xf32>
    %289 = arith.addf %284, %288 : vector<8x8xf32>
    %c67 = arith.constant 67 : index
    %290 = memref.load %arg2[%c67] : memref<196xf32, #tpu.memory_space<smem>>
    %291 = vector.extract_strided_slice %259 {offsets = [1, 2], sizes = [8, 8], strides = [1, 1]} : vector<11x11xf32> to vector<8x8xf32>
    %292 = vector.broadcast %290 : f32 to vector<8x8xf32>
    %293 = arith.mulf %292, %291 : vector<8x8xf32>
    %294 = arith.addf %289, %293 : vector<8x8xf32>
    %c69 = arith.constant 69 : index
    %295 = memref.load %arg2[%c69] : memref<196xf32, #tpu.memory_space<smem>>
    %296 = vector.extract_strided_slice %259 {offsets = [1, 3], sizes = [8, 8], strides = [1, 1]} : vector<11x11xf32> to vector<8x8xf32>
    %297 = vector.broadcast %295 : f32 to vector<8x8xf32>
    %298 = arith.mulf %297, %296 : vector<8x8xf32>
    %299 = arith.addf %294, %298 : vector<8x8xf32>
    %c77 = arith.constant 77 : index
    %300 = memref.load %arg2[%c77] : memref<196xf32, #tpu.memory_space<smem>>
    %301 = vector.extract_strided_slice %259 {offsets = [2, 0], sizes = [8, 8], strides = [1, 1]} : vector<11x11xf32> to vector<8x8xf32>
    %302 = vector.broadcast %300 : f32 to vector<8x8xf32>
    %303 = arith.mulf %302, %301 : vector<8x8xf32>
    %304 = arith.addf %299, %303 : vector<8x8xf32>
    %c79 = arith.constant 79 : index
    %305 = memref.load %arg2[%c79] : memref<196xf32, #tpu.memory_space<smem>>
    %306 = vector.extract_strided_slice %259 {offsets = [2, 1], sizes = [8, 8], strides = [1, 1]} : vector<11x11xf32> to vector<8x8xf32>
    %307 = vector.broadcast %305 : f32 to vector<8x8xf32>
    %308 = arith.mulf %307, %306 : vector<8x8xf32>
    %309 = arith.addf %304, %308 : vector<8x8xf32>
    %c81 = arith.constant 81 : index
    %310 = memref.load %arg2[%c81] : memref<196xf32, #tpu.memory_space<smem>>
    %311 = vector.extract_strided_slice %259 {offsets = [2, 2], sizes = [8, 8], strides = [1, 1]} : vector<11x11xf32> to vector<8x8xf32>
    %312 = vector.broadcast %310 : f32 to vector<8x8xf32>
    %313 = arith.mulf %312, %311 : vector<8x8xf32>
    %314 = arith.addf %309, %313 : vector<8x8xf32>
    %c83 = arith.constant 83 : index
    %315 = memref.load %arg2[%c83] : memref<196xf32, #tpu.memory_space<smem>>
    %316 = vector.extract_strided_slice %259 {offsets = [2, 3], sizes = [8, 8], strides = [1, 1]} : vector<11x11xf32> to vector<8x8xf32>
    %317 = vector.broadcast %315 : f32 to vector<8x8xf32>
    %318 = arith.mulf %317, %316 : vector<8x8xf32>
    %319 = arith.addf %314, %318 : vector<8x8xf32>
    %c91 = arith.constant 91 : index
    %320 = memref.load %arg2[%c91] : memref<196xf32, #tpu.memory_space<smem>>
    %321 = vector.extract_strided_slice %259 {offsets = [3, 0], sizes = [8, 8], strides = [1, 1]} : vector<11x11xf32> to vector<8x8xf32>
    %322 = vector.broadcast %320 : f32 to vector<8x8xf32>
    %323 = arith.mulf %322, %321 : vector<8x8xf32>
    %324 = arith.addf %319, %323 : vector<8x8xf32>
    %c93 = arith.constant 93 : index
    %325 = memref.load %arg2[%c93] : memref<196xf32, #tpu.memory_space<smem>>
    %326 = vector.extract_strided_slice %259 {offsets = [3, 1], sizes = [8, 8], strides = [1, 1]} : vector<11x11xf32> to vector<8x8xf32>
    %327 = vector.broadcast %325 : f32 to vector<8x8xf32>
    %328 = arith.mulf %327, %326 : vector<8x8xf32>
    %329 = arith.addf %324, %328 : vector<8x8xf32>
    %c95 = arith.constant 95 : index
    %330 = memref.load %arg2[%c95] : memref<196xf32, #tpu.memory_space<smem>>
    %331 = vector.extract_strided_slice %259 {offsets = [3, 2], sizes = [8, 8], strides = [1, 1]} : vector<11x11xf32> to vector<8x8xf32>
    %332 = vector.broadcast %330 : f32 to vector<8x8xf32>
    %333 = arith.mulf %332, %331 : vector<8x8xf32>
    %334 = arith.addf %329, %333 : vector<8x8xf32>
    %c97 = arith.constant 97 : index
    %335 = memref.load %arg2[%c97] : memref<196xf32, #tpu.memory_space<smem>>
    %336 = vector.extract_strided_slice %259 {offsets = [3, 3], sizes = [8, 8], strides = [1, 1]} : vector<11x11xf32> to vector<8x8xf32>
    %337 = vector.broadcast %335 : f32 to vector<8x8xf32>
    %338 = arith.mulf %337, %336 : vector<8x8xf32>
    %339 = arith.addf %334, %338 : vector<8x8xf32>
    %c0_22 = arith.constant 0 : index
    %c5_23 = arith.constant 5 : index
    %c0_24 = arith.constant 0 : index
    %c0_25 = arith.constant 0 : index
    %340 = vector.load %arg1[%c0_22, %c5_23, %c0_24, %c0_25] : memref<1x16x11x11xf32, #tpu.memory_space<vmem>>, vector<1x1x11x11xf32>
    %341 = vector.shape_cast %340 : vector<1x1x11x11xf32> to vector<11x11xf32>
    %c50 = arith.constant 50 : index
    %342 = memref.load %arg2[%c50] : memref<196xf32, #tpu.memory_space<smem>>
    %343 = vector.extract_strided_slice %341 {offsets = [0, 0], sizes = [8, 8], strides = [1, 1]} : vector<11x11xf32> to vector<8x8xf32>
    %344 = vector.broadcast %342 : f32 to vector<8x8xf32>
    %345 = arith.mulf %344, %343 : vector<8x8xf32>
    %346 = arith.addf %339, %345 : vector<8x8xf32>
    %c52 = arith.constant 52 : index
    %347 = memref.load %arg2[%c52] : memref<196xf32, #tpu.memory_space<smem>>
    %348 = vector.extract_strided_slice %341 {offsets = [0, 1], sizes = [8, 8], strides = [1, 1]} : vector<11x11xf32> to vector<8x8xf32>
    %349 = vector.broadcast %347 : f32 to vector<8x8xf32>
    %350 = arith.mulf %349, %348 : vector<8x8xf32>
    %351 = arith.addf %346, %350 : vector<8x8xf32>
    %c54 = arith.constant 54 : index
    %352 = memref.load %arg2[%c54] : memref<196xf32, #tpu.memory_space<smem>>
    %353 = vector.extract_strided_slice %341 {offsets = [0, 2], sizes = [8, 8], strides = [1, 1]} : vector<11x11xf32> to vector<8x8xf32>
    %354 = vector.broadcast %352 : f32 to vector<8x8xf32>
    %355 = arith.mulf %354, %353 : vector<8x8xf32>
    %356 = arith.addf %351, %355 : vector<8x8xf32>
    %c64 = arith.constant 64 : index
    %357 = memref.load %arg2[%c64] : memref<196xf32, #tpu.memory_space<smem>>
    %358 = vector.extract_strided_slice %341 {offsets = [1, 0], sizes = [8, 8], strides = [1, 1]} : vector<11x11xf32> to vector<8x8xf32>
    %359 = vector.broadcast %357 : f32 to vector<8x8xf32>
    %360 = arith.mulf %359, %358 : vector<8x8xf32>
    %361 = arith.addf %356, %360 : vector<8x8xf32>
    %c66 = arith.constant 66 : index
    %362 = memref.load %arg2[%c66] : memref<196xf32, #tpu.memory_space<smem>>
    %363 = vector.extract_strided_slice %341 {offsets = [1, 1], sizes = [8, 8], strides = [1, 1]} : vector<11x11xf32> to vector<8x8xf32>
    %364 = vector.broadcast %362 : f32 to vector<8x8xf32>
    %365 = arith.mulf %364, %363 : vector<8x8xf32>
    %366 = arith.addf %361, %365 : vector<8x8xf32>
    %c68 = arith.constant 68 : index
    %367 = memref.load %arg2[%c68] : memref<196xf32, #tpu.memory_space<smem>>
    %368 = vector.extract_strided_slice %341 {offsets = [1, 2], sizes = [8, 8], strides = [1, 1]} : vector<11x11xf32> to vector<8x8xf32>
    %369 = vector.broadcast %367 : f32 to vector<8x8xf32>
    %370 = arith.mulf %369, %368 : vector<8x8xf32>
    %371 = arith.addf %366, %370 : vector<8x8xf32>
    %c78 = arith.constant 78 : index
    %372 = memref.load %arg2[%c78] : memref<196xf32, #tpu.memory_space<smem>>
    %373 = vector.extract_strided_slice %341 {offsets = [2, 0], sizes = [8, 8], strides = [1, 1]} : vector<11x11xf32> to vector<8x8xf32>
    %374 = vector.broadcast %372 : f32 to vector<8x8xf32>
    %375 = arith.mulf %374, %373 : vector<8x8xf32>
    %376 = arith.addf %371, %375 : vector<8x8xf32>
    %c80 = arith.constant 80 : index
    %377 = memref.load %arg2[%c80] : memref<196xf32, #tpu.memory_space<smem>>
    %378 = vector.extract_strided_slice %341 {offsets = [2, 1], sizes = [8, 8], strides = [1, 1]} : vector<11x11xf32> to vector<8x8xf32>
    %379 = vector.broadcast %377 : f32 to vector<8x8xf32>
    %380 = arith.mulf %379, %378 : vector<8x8xf32>
    %381 = arith.addf %376, %380 : vector<8x8xf32>
    %c82 = arith.constant 82 : index
    %382 = memref.load %arg2[%c82] : memref<196xf32, #tpu.memory_space<smem>>
    %383 = vector.extract_strided_slice %341 {offsets = [2, 2], sizes = [8, 8], strides = [1, 1]} : vector<11x11xf32> to vector<8x8xf32>
    %384 = vector.broadcast %382 : f32 to vector<8x8xf32>
    %385 = arith.mulf %384, %383 : vector<8x8xf32>
    %386 = arith.addf %381, %385 : vector<8x8xf32>
    %c92 = arith.constant 92 : index
    %387 = memref.load %arg2[%c92] : memref<196xf32, #tpu.memory_space<smem>>
    %388 = vector.extract_strided_slice %341 {offsets = [3, 0], sizes = [8, 8], strides = [1, 1]} : vector<11x11xf32> to vector<8x8xf32>
    %389 = vector.broadcast %387 : f32 to vector<8x8xf32>
    %390 = arith.mulf %389, %388 : vector<8x8xf32>
    %391 = arith.addf %386, %390 : vector<8x8xf32>
    %c94 = arith.constant 94 : index
    %392 = memref.load %arg2[%c94] : memref<196xf32, #tpu.memory_space<smem>>
    %393 = vector.extract_strided_slice %341 {offsets = [3, 1], sizes = [8, 8], strides = [1, 1]} : vector<11x11xf32> to vector<8x8xf32>
    %394 = vector.broadcast %392 : f32 to vector<8x8xf32>
    %395 = arith.mulf %394, %393 : vector<8x8xf32>
    %396 = arith.addf %391, %395 : vector<8x8xf32>
    %c96 = arith.constant 96 : index
    %397 = memref.load %arg2[%c96] : memref<196xf32, #tpu.memory_space<smem>>
    %398 = vector.extract_strided_slice %341 {offsets = [3, 2], sizes = [8, 8], strides = [1, 1]} : vector<11x11xf32> to vector<8x8xf32>
    %399 = vector.broadcast %397 : f32 to vector<8x8xf32>
    %400 = arith.mulf %399, %398 : vector<8x8xf32>
    %401 = arith.addf %396, %400 : vector<8x8xf32>
    %c0_26 = arith.constant 0 : index
    %c9_27 = arith.constant 9 : index
    %c0_28 = arith.constant 0 : index
    %c0_29 = arith.constant 0 : index
    %402 = vector.load %arg1[%c0_26, %c9_27, %c0_28, %c0_29] : memref<1x16x11x11xf32, #tpu.memory_space<vmem>>, vector<1x1x11x11xf32>
    %403 = vector.shape_cast %402 : vector<1x1x11x11xf32> to vector<11x11xf32>
    %c56 = arith.constant 56 : index
    %404 = memref.load %arg2[%c56] : memref<196xf32, #tpu.memory_space<smem>>
    %405 = vector.extract_strided_slice %403 {offsets = [0, 0], sizes = [8, 8], strides = [1, 1]} : vector<11x11xf32> to vector<8x8xf32>
    %406 = vector.broadcast %404 : f32 to vector<8x8xf32>
    %407 = arith.mulf %406, %405 : vector<8x8xf32>
    %408 = arith.addf %401, %407 : vector<8x8xf32>
    %c58 = arith.constant 58 : index
    %409 = memref.load %arg2[%c58] : memref<196xf32, #tpu.memory_space<smem>>
    %410 = vector.extract_strided_slice %403 {offsets = [0, 1], sizes = [8, 8], strides = [1, 1]} : vector<11x11xf32> to vector<8x8xf32>
    %411 = vector.broadcast %409 : f32 to vector<8x8xf32>
    %412 = arith.mulf %411, %410 : vector<8x8xf32>
    %413 = arith.addf %408, %412 : vector<8x8xf32>
    %c60 = arith.constant 60 : index
    %414 = memref.load %arg2[%c60] : memref<196xf32, #tpu.memory_space<smem>>
    %415 = vector.extract_strided_slice %403 {offsets = [0, 2], sizes = [8, 8], strides = [1, 1]} : vector<11x11xf32> to vector<8x8xf32>
    %416 = vector.broadcast %414 : f32 to vector<8x8xf32>
    %417 = arith.mulf %416, %415 : vector<8x8xf32>
    %418 = arith.addf %413, %417 : vector<8x8xf32>
    %c62 = arith.constant 62 : index
    %419 = memref.load %arg2[%c62] : memref<196xf32, #tpu.memory_space<smem>>
    %420 = vector.extract_strided_slice %403 {offsets = [0, 3], sizes = [8, 8], strides = [1, 1]} : vector<11x11xf32> to vector<8x8xf32>
    %421 = vector.broadcast %419 : f32 to vector<8x8xf32>
    %422 = arith.mulf %421, %420 : vector<8x8xf32>
    %423 = arith.addf %418, %422 : vector<8x8xf32>
    %c70 = arith.constant 70 : index
    %424 = memref.load %arg2[%c70] : memref<196xf32, #tpu.memory_space<smem>>
    %425 = vector.extract_strided_slice %403 {offsets = [1, 0], sizes = [8, 8], strides = [1, 1]} : vector<11x11xf32> to vector<8x8xf32>
    %426 = vector.broadcast %424 : f32 to vector<8x8xf32>
    %427 = arith.mulf %426, %425 : vector<8x8xf32>
    %428 = arith.addf %423, %427 : vector<8x8xf32>
    %c72 = arith.constant 72 : index
    %429 = memref.load %arg2[%c72] : memref<196xf32, #tpu.memory_space<smem>>
    %430 = vector.extract_strided_slice %403 {offsets = [1, 1], sizes = [8, 8], strides = [1, 1]} : vector<11x11xf32> to vector<8x8xf32>
    %431 = vector.broadcast %429 : f32 to vector<8x8xf32>
    %432 = arith.mulf %431, %430 : vector<8x8xf32>
    %433 = arith.addf %428, %432 : vector<8x8xf32>
    %c74 = arith.constant 74 : index
    %434 = memref.load %arg2[%c74] : memref<196xf32, #tpu.memory_space<smem>>
    %435 = vector.extract_strided_slice %403 {offsets = [1, 2], sizes = [8, 8], strides = [1, 1]} : vector<11x11xf32> to vector<8x8xf32>
    %436 = vector.broadcast %434 : f32 to vector<8x8xf32>
    %437 = arith.mulf %436, %435 : vector<8x8xf32>
    %438 = arith.addf %433, %437 : vector<8x8xf32>
    %c76 = arith.constant 76 : index
    %439 = memref.load %arg2[%c76] : memref<196xf32, #tpu.memory_space<smem>>
    %440 = vector.extract_strided_slice %403 {offsets = [1, 3], sizes = [8, 8], strides = [1, 1]} : vector<11x11xf32> to vector<8x8xf32>
    %441 = vector.broadcast %439 : f32 to vector<8x8xf32>
    %442 = arith.mulf %441, %440 : vector<8x8xf32>
    %443 = arith.addf %438, %442 : vector<8x8xf32>
    %c84 = arith.constant 84 : index
    %444 = memref.load %arg2[%c84] : memref<196xf32, #tpu.memory_space<smem>>
    %445 = vector.extract_strided_slice %403 {offsets = [2, 0], sizes = [8, 8], strides = [1, 1]} : vector<11x11xf32> to vector<8x8xf32>
    %446 = vector.broadcast %444 : f32 to vector<8x8xf32>
    %447 = arith.mulf %446, %445 : vector<8x8xf32>
    %448 = arith.addf %443, %447 : vector<8x8xf32>
    %c86 = arith.constant 86 : index
    %449 = memref.load %arg2[%c86] : memref<196xf32, #tpu.memory_space<smem>>
    %450 = vector.extract_strided_slice %403 {offsets = [2, 1], sizes = [8, 8], strides = [1, 1]} : vector<11x11xf32> to vector<8x8xf32>
    %451 = vector.broadcast %449 : f32 to vector<8x8xf32>
    %452 = arith.mulf %451, %450 : vector<8x8xf32>
    %453 = arith.addf %448, %452 : vector<8x8xf32>
    %c88 = arith.constant 88 : index
    %454 = memref.load %arg2[%c88] : memref<196xf32, #tpu.memory_space<smem>>
    %455 = vector.extract_strided_slice %403 {offsets = [2, 2], sizes = [8, 8], strides = [1, 1]} : vector<11x11xf32> to vector<8x8xf32>
    %456 = vector.broadcast %454 : f32 to vector<8x8xf32>
    %457 = arith.mulf %456, %455 : vector<8x8xf32>
    %458 = arith.addf %453, %457 : vector<8x8xf32>
    %c90 = arith.constant 90 : index
    %459 = memref.load %arg2[%c90] : memref<196xf32, #tpu.memory_space<smem>>
    %460 = vector.extract_strided_slice %403 {offsets = [2, 3], sizes = [8, 8], strides = [1, 1]} : vector<11x11xf32> to vector<8x8xf32>
    %461 = vector.broadcast %459 : f32 to vector<8x8xf32>
    %462 = arith.mulf %461, %460 : vector<8x8xf32>
    %463 = arith.addf %458, %462 : vector<8x8xf32>
    %c0_30 = arith.constant 0 : index
    %c13_31 = arith.constant 13 : index
    %c0_32 = arith.constant 0 : index
    %c0_33 = arith.constant 0 : index
    %464 = vector.load %arg1[%c0_30, %c13_31, %c0_32, %c0_33] : memref<1x16x11x11xf32, #tpu.memory_space<vmem>>, vector<1x1x11x11xf32>
    %465 = vector.shape_cast %464 : vector<1x1x11x11xf32> to vector<11x11xf32>
    %c57 = arith.constant 57 : index
    %466 = memref.load %arg2[%c57] : memref<196xf32, #tpu.memory_space<smem>>
    %467 = vector.extract_strided_slice %465 {offsets = [0, 0], sizes = [8, 8], strides = [1, 1]} : vector<11x11xf32> to vector<8x8xf32>
    %468 = vector.broadcast %466 : f32 to vector<8x8xf32>
    %469 = arith.mulf %468, %467 : vector<8x8xf32>
    %470 = arith.addf %463, %469 : vector<8x8xf32>
    %c59 = arith.constant 59 : index
    %471 = memref.load %arg2[%c59] : memref<196xf32, #tpu.memory_space<smem>>
    %472 = vector.extract_strided_slice %465 {offsets = [0, 1], sizes = [8, 8], strides = [1, 1]} : vector<11x11xf32> to vector<8x8xf32>
    %473 = vector.broadcast %471 : f32 to vector<8x8xf32>
    %474 = arith.mulf %473, %472 : vector<8x8xf32>
    %475 = arith.addf %470, %474 : vector<8x8xf32>
    %c61 = arith.constant 61 : index
    %476 = memref.load %arg2[%c61] : memref<196xf32, #tpu.memory_space<smem>>
    %477 = vector.extract_strided_slice %465 {offsets = [0, 2], sizes = [8, 8], strides = [1, 1]} : vector<11x11xf32> to vector<8x8xf32>
    %478 = vector.broadcast %476 : f32 to vector<8x8xf32>
    %479 = arith.mulf %478, %477 : vector<8x8xf32>
    %480 = arith.addf %475, %479 : vector<8x8xf32>
    %c71 = arith.constant 71 : index
    %481 = memref.load %arg2[%c71] : memref<196xf32, #tpu.memory_space<smem>>
    %482 = vector.extract_strided_slice %465 {offsets = [1, 0], sizes = [8, 8], strides = [1, 1]} : vector<11x11xf32> to vector<8x8xf32>
    %483 = vector.broadcast %481 : f32 to vector<8x8xf32>
    %484 = arith.mulf %483, %482 : vector<8x8xf32>
    %485 = arith.addf %480, %484 : vector<8x8xf32>
    %c73 = arith.constant 73 : index
    %486 = memref.load %arg2[%c73] : memref<196xf32, #tpu.memory_space<smem>>
    %487 = vector.extract_strided_slice %465 {offsets = [1, 1], sizes = [8, 8], strides = [1, 1]} : vector<11x11xf32> to vector<8x8xf32>
    %488 = vector.broadcast %486 : f32 to vector<8x8xf32>
    %489 = arith.mulf %488, %487 : vector<8x8xf32>
    %490 = arith.addf %485, %489 : vector<8x8xf32>
    %c75 = arith.constant 75 : index
    %491 = memref.load %arg2[%c75] : memref<196xf32, #tpu.memory_space<smem>>
    %492 = vector.extract_strided_slice %465 {offsets = [1, 2], sizes = [8, 8], strides = [1, 1]} : vector<11x11xf32> to vector<8x8xf32>
    %493 = vector.broadcast %491 : f32 to vector<8x8xf32>
    %494 = arith.mulf %493, %492 : vector<8x8xf32>
    %495 = arith.addf %490, %494 : vector<8x8xf32>
    %c85 = arith.constant 85 : index
    %496 = memref.load %arg2[%c85] : memref<196xf32, #tpu.memory_space<smem>>
    %497 = vector.extract_strided_slice %465 {offsets = [2, 0], sizes = [8, 8], strides = [1, 1]} : vector<11x11xf32> to vector<8x8xf32>
    %498 = vector.broadcast %496 : f32 to vector<8x8xf32>
    %499 = arith.mulf %498, %497 : vector<8x8xf32>
    %500 = arith.addf %495, %499 : vector<8x8xf32>
    %c87 = arith.constant 87 : index
    %501 = memref.load %arg2[%c87] : memref<196xf32, #tpu.memory_space<smem>>
    %502 = vector.extract_strided_slice %465 {offsets = [2, 1], sizes = [8, 8], strides = [1, 1]} : vector<11x11xf32> to vector<8x8xf32>
    %503 = vector.broadcast %501 : f32 to vector<8x8xf32>
    %504 = arith.mulf %503, %502 : vector<8x8xf32>
    %505 = arith.addf %500, %504 : vector<8x8xf32>
    %c89 = arith.constant 89 : index
    %506 = memref.load %arg2[%c89] : memref<196xf32, #tpu.memory_space<smem>>
    %507 = vector.extract_strided_slice %465 {offsets = [2, 2], sizes = [8, 8], strides = [1, 1]} : vector<11x11xf32> to vector<8x8xf32>
    %508 = vector.broadcast %506 : f32 to vector<8x8xf32>
    %509 = arith.mulf %508, %507 : vector<8x8xf32>
    %510 = arith.addf %505, %509 : vector<8x8xf32>
    %c1_34 = arith.constant 1 : index
    %511 = memref.load %arg3[%c1_34] : memref<4xf32, #tpu.memory_space<smem>>
    %512 = vector.broadcast %511 : f32 to vector<8x8xf32>
    %513 = arith.addf %510, %512 : vector<8x8xf32>
    %cst_35 = arith.constant 0.000000e+00 : f32
    %514 = vector.broadcast %cst_35 : f32 to vector<8x8xf32>
    %c0_36 = arith.constant 0 : index
    %c2_37 = arith.constant 2 : index
    %c0_38 = arith.constant 0 : index
    %c0_39 = arith.constant 0 : index
    %515 = vector.load %arg1[%c0_36, %c2_37, %c0_38, %c0_39] : memref<1x16x11x11xf32, #tpu.memory_space<vmem>>, vector<1x1x11x11xf32>
    %516 = vector.shape_cast %515 : vector<1x1x11x11xf32> to vector<11x11xf32>
    %c98 = arith.constant 98 : index
    %517 = memref.load %arg2[%c98] : memref<196xf32, #tpu.memory_space<smem>>
    %518 = vector.extract_strided_slice %516 {offsets = [0, 0], sizes = [8, 8], strides = [1, 1]} : vector<11x11xf32> to vector<8x8xf32>
    %519 = vector.broadcast %517 : f32 to vector<8x8xf32>
    %520 = arith.mulf %519, %518 : vector<8x8xf32>
    %521 = arith.addf %514, %520 : vector<8x8xf32>
    %c100 = arith.constant 100 : index
    %522 = memref.load %arg2[%c100] : memref<196xf32, #tpu.memory_space<smem>>
    %523 = vector.extract_strided_slice %516 {offsets = [0, 1], sizes = [8, 8], strides = [1, 1]} : vector<11x11xf32> to vector<8x8xf32>
    %524 = vector.broadcast %522 : f32 to vector<8x8xf32>
    %525 = arith.mulf %524, %523 : vector<8x8xf32>
    %526 = arith.addf %521, %525 : vector<8x8xf32>
    %c102 = arith.constant 102 : index
    %527 = memref.load %arg2[%c102] : memref<196xf32, #tpu.memory_space<smem>>
    %528 = vector.extract_strided_slice %516 {offsets = [0, 2], sizes = [8, 8], strides = [1, 1]} : vector<11x11xf32> to vector<8x8xf32>
    %529 = vector.broadcast %527 : f32 to vector<8x8xf32>
    %530 = arith.mulf %529, %528 : vector<8x8xf32>
    %531 = arith.addf %526, %530 : vector<8x8xf32>
    %c104 = arith.constant 104 : index
    %532 = memref.load %arg2[%c104] : memref<196xf32, #tpu.memory_space<smem>>
    %533 = vector.extract_strided_slice %516 {offsets = [0, 3], sizes = [8, 8], strides = [1, 1]} : vector<11x11xf32> to vector<8x8xf32>
    %534 = vector.broadcast %532 : f32 to vector<8x8xf32>
    %535 = arith.mulf %534, %533 : vector<8x8xf32>
    %536 = arith.addf %531, %535 : vector<8x8xf32>
    %c112 = arith.constant 112 : index
    %537 = memref.load %arg2[%c112] : memref<196xf32, #tpu.memory_space<smem>>
    %538 = vector.extract_strided_slice %516 {offsets = [1, 0], sizes = [8, 8], strides = [1, 1]} : vector<11x11xf32> to vector<8x8xf32>
    %539 = vector.broadcast %537 : f32 to vector<8x8xf32>
    %540 = arith.mulf %539, %538 : vector<8x8xf32>
    %541 = arith.addf %536, %540 : vector<8x8xf32>
    %c114 = arith.constant 114 : index
    %542 = memref.load %arg2[%c114] : memref<196xf32, #tpu.memory_space<smem>>
    %543 = vector.extract_strided_slice %516 {offsets = [1, 1], sizes = [8, 8], strides = [1, 1]} : vector<11x11xf32> to vector<8x8xf32>
    %544 = vector.broadcast %542 : f32 to vector<8x8xf32>
    %545 = arith.mulf %544, %543 : vector<8x8xf32>
    %546 = arith.addf %541, %545 : vector<8x8xf32>
    %c116 = arith.constant 116 : index
    %547 = memref.load %arg2[%c116] : memref<196xf32, #tpu.memory_space<smem>>
    %548 = vector.extract_strided_slice %516 {offsets = [1, 2], sizes = [8, 8], strides = [1, 1]} : vector<11x11xf32> to vector<8x8xf32>
    %549 = vector.broadcast %547 : f32 to vector<8x8xf32>
    %550 = arith.mulf %549, %548 : vector<8x8xf32>
    %551 = arith.addf %546, %550 : vector<8x8xf32>
    %c118 = arith.constant 118 : index
    %552 = memref.load %arg2[%c118] : memref<196xf32, #tpu.memory_space<smem>>
    %553 = vector.extract_strided_slice %516 {offsets = [1, 3], sizes = [8, 8], strides = [1, 1]} : vector<11x11xf32> to vector<8x8xf32>
    %554 = vector.broadcast %552 : f32 to vector<8x8xf32>
    %555 = arith.mulf %554, %553 : vector<8x8xf32>
    %556 = arith.addf %551, %555 : vector<8x8xf32>
    %c126 = arith.constant 126 : index
    %557 = memref.load %arg2[%c126] : memref<196xf32, #tpu.memory_space<smem>>
    %558 = vector.extract_strided_slice %516 {offsets = [2, 0], sizes = [8, 8], strides = [1, 1]} : vector<11x11xf32> to vector<8x8xf32>
    %559 = vector.broadcast %557 : f32 to vector<8x8xf32>
    %560 = arith.mulf %559, %558 : vector<8x8xf32>
    %561 = arith.addf %556, %560 : vector<8x8xf32>
    %c128 = arith.constant 128 : index
    %562 = memref.load %arg2[%c128] : memref<196xf32, #tpu.memory_space<smem>>
    %563 = vector.extract_strided_slice %516 {offsets = [2, 1], sizes = [8, 8], strides = [1, 1]} : vector<11x11xf32> to vector<8x8xf32>
    %564 = vector.broadcast %562 : f32 to vector<8x8xf32>
    %565 = arith.mulf %564, %563 : vector<8x8xf32>
    %566 = arith.addf %561, %565 : vector<8x8xf32>
    %c130 = arith.constant 130 : index
    %567 = memref.load %arg2[%c130] : memref<196xf32, #tpu.memory_space<smem>>
    %568 = vector.extract_strided_slice %516 {offsets = [2, 2], sizes = [8, 8], strides = [1, 1]} : vector<11x11xf32> to vector<8x8xf32>
    %569 = vector.broadcast %567 : f32 to vector<8x8xf32>
    %570 = arith.mulf %569, %568 : vector<8x8xf32>
    %571 = arith.addf %566, %570 : vector<8x8xf32>
    %c132 = arith.constant 132 : index
    %572 = memref.load %arg2[%c132] : memref<196xf32, #tpu.memory_space<smem>>
    %573 = vector.extract_strided_slice %516 {offsets = [2, 3], sizes = [8, 8], strides = [1, 1]} : vector<11x11xf32> to vector<8x8xf32>
    %574 = vector.broadcast %572 : f32 to vector<8x8xf32>
    %575 = arith.mulf %574, %573 : vector<8x8xf32>
    %576 = arith.addf %571, %575 : vector<8x8xf32>
    %c140 = arith.constant 140 : index
    %577 = memref.load %arg2[%c140] : memref<196xf32, #tpu.memory_space<smem>>
    %578 = vector.extract_strided_slice %516 {offsets = [3, 0], sizes = [8, 8], strides = [1, 1]} : vector<11x11xf32> to vector<8x8xf32>
    %579 = vector.broadcast %577 : f32 to vector<8x8xf32>
    %580 = arith.mulf %579, %578 : vector<8x8xf32>
    %581 = arith.addf %576, %580 : vector<8x8xf32>
    %c142 = arith.constant 142 : index
    %582 = memref.load %arg2[%c142] : memref<196xf32, #tpu.memory_space<smem>>
    %583 = vector.extract_strided_slice %516 {offsets = [3, 1], sizes = [8, 8], strides = [1, 1]} : vector<11x11xf32> to vector<8x8xf32>
    %584 = vector.broadcast %582 : f32 to vector<8x8xf32>
    %585 = arith.mulf %584, %583 : vector<8x8xf32>
    %586 = arith.addf %581, %585 : vector<8x8xf32>
    %c144 = arith.constant 144 : index
    %587 = memref.load %arg2[%c144] : memref<196xf32, #tpu.memory_space<smem>>
    %588 = vector.extract_strided_slice %516 {offsets = [3, 2], sizes = [8, 8], strides = [1, 1]} : vector<11x11xf32> to vector<8x8xf32>
    %589 = vector.broadcast %587 : f32 to vector<8x8xf32>
    %590 = arith.mulf %589, %588 : vector<8x8xf32>
    %591 = arith.addf %586, %590 : vector<8x8xf32>
    %c146 = arith.constant 146 : index
    %592 = memref.load %arg2[%c146] : memref<196xf32, #tpu.memory_space<smem>>
    %593 = vector.extract_strided_slice %516 {offsets = [3, 3], sizes = [8, 8], strides = [1, 1]} : vector<11x11xf32> to vector<8x8xf32>
    %594 = vector.broadcast %592 : f32 to vector<8x8xf32>
    %595 = arith.mulf %594, %593 : vector<8x8xf32>
    %596 = arith.addf %591, %595 : vector<8x8xf32>
    %c0_40 = arith.constant 0 : index
    %c6_41 = arith.constant 6 : index
    %c0_42 = arith.constant 0 : index
    %c0_43 = arith.constant 0 : index
    %597 = vector.load %arg1[%c0_40, %c6_41, %c0_42, %c0_43] : memref<1x16x11x11xf32, #tpu.memory_space<vmem>>, vector<1x1x11x11xf32>
    %598 = vector.shape_cast %597 : vector<1x1x11x11xf32> to vector<11x11xf32>
    %c99 = arith.constant 99 : index
    %599 = memref.load %arg2[%c99] : memref<196xf32, #tpu.memory_space<smem>>
    %600 = vector.extract_strided_slice %598 {offsets = [0, 0], sizes = [8, 8], strides = [1, 1]} : vector<11x11xf32> to vector<8x8xf32>
    %601 = vector.broadcast %599 : f32 to vector<8x8xf32>
    %602 = arith.mulf %601, %600 : vector<8x8xf32>
    %603 = arith.addf %596, %602 : vector<8x8xf32>
    %c101 = arith.constant 101 : index
    %604 = memref.load %arg2[%c101] : memref<196xf32, #tpu.memory_space<smem>>
    %605 = vector.extract_strided_slice %598 {offsets = [0, 1], sizes = [8, 8], strides = [1, 1]} : vector<11x11xf32> to vector<8x8xf32>
    %606 = vector.broadcast %604 : f32 to vector<8x8xf32>
    %607 = arith.mulf %606, %605 : vector<8x8xf32>
    %608 = arith.addf %603, %607 : vector<8x8xf32>
    %c103 = arith.constant 103 : index
    %609 = memref.load %arg2[%c103] : memref<196xf32, #tpu.memory_space<smem>>
    %610 = vector.extract_strided_slice %598 {offsets = [0, 2], sizes = [8, 8], strides = [1, 1]} : vector<11x11xf32> to vector<8x8xf32>
    %611 = vector.broadcast %609 : f32 to vector<8x8xf32>
    %612 = arith.mulf %611, %610 : vector<8x8xf32>
    %613 = arith.addf %608, %612 : vector<8x8xf32>
    %c113 = arith.constant 113 : index
    %614 = memref.load %arg2[%c113] : memref<196xf32, #tpu.memory_space<smem>>
    %615 = vector.extract_strided_slice %598 {offsets = [1, 0], sizes = [8, 8], strides = [1, 1]} : vector<11x11xf32> to vector<8x8xf32>
    %616 = vector.broadcast %614 : f32 to vector<8x8xf32>
    %617 = arith.mulf %616, %615 : vector<8x8xf32>
    %618 = arith.addf %613, %617 : vector<8x8xf32>
    %c115 = arith.constant 115 : index
    %619 = memref.load %arg2[%c115] : memref<196xf32, #tpu.memory_space<smem>>
    %620 = vector.extract_strided_slice %598 {offsets = [1, 1], sizes = [8, 8], strides = [1, 1]} : vector<11x11xf32> to vector<8x8xf32>
    %621 = vector.broadcast %619 : f32 to vector<8x8xf32>
    %622 = arith.mulf %621, %620 : vector<8x8xf32>
    %623 = arith.addf %618, %622 : vector<8x8xf32>
    %c117 = arith.constant 117 : index
    %624 = memref.load %arg2[%c117] : memref<196xf32, #tpu.memory_space<smem>>
    %625 = vector.extract_strided_slice %598 {offsets = [1, 2], sizes = [8, 8], strides = [1, 1]} : vector<11x11xf32> to vector<8x8xf32>
    %626 = vector.broadcast %624 : f32 to vector<8x8xf32>
    %627 = arith.mulf %626, %625 : vector<8x8xf32>
    %628 = arith.addf %623, %627 : vector<8x8xf32>
    %c127 = arith.constant 127 : index
    %629 = memref.load %arg2[%c127] : memref<196xf32, #tpu.memory_space<smem>>
    %630 = vector.extract_strided_slice %598 {offsets = [2, 0], sizes = [8, 8], strides = [1, 1]} : vector<11x11xf32> to vector<8x8xf32>
    %631 = vector.broadcast %629 : f32 to vector<8x8xf32>
    %632 = arith.mulf %631, %630 : vector<8x8xf32>
    %633 = arith.addf %628, %632 : vector<8x8xf32>
    %c129 = arith.constant 129 : index
    %634 = memref.load %arg2[%c129] : memref<196xf32, #tpu.memory_space<smem>>
    %635 = vector.extract_strided_slice %598 {offsets = [2, 1], sizes = [8, 8], strides = [1, 1]} : vector<11x11xf32> to vector<8x8xf32>
    %636 = vector.broadcast %634 : f32 to vector<8x8xf32>
    %637 = arith.mulf %636, %635 : vector<8x8xf32>
    %638 = arith.addf %633, %637 : vector<8x8xf32>
    %c131 = arith.constant 131 : index
    %639 = memref.load %arg2[%c131] : memref<196xf32, #tpu.memory_space<smem>>
    %640 = vector.extract_strided_slice %598 {offsets = [2, 2], sizes = [8, 8], strides = [1, 1]} : vector<11x11xf32> to vector<8x8xf32>
    %641 = vector.broadcast %639 : f32 to vector<8x8xf32>
    %642 = arith.mulf %641, %640 : vector<8x8xf32>
    %643 = arith.addf %638, %642 : vector<8x8xf32>
    %c141 = arith.constant 141 : index
    %644 = memref.load %arg2[%c141] : memref<196xf32, #tpu.memory_space<smem>>
    %645 = vector.extract_strided_slice %598 {offsets = [3, 0], sizes = [8, 8], strides = [1, 1]} : vector<11x11xf32> to vector<8x8xf32>
    %646 = vector.broadcast %644 : f32 to vector<8x8xf32>
    %647 = arith.mulf %646, %645 : vector<8x8xf32>
    %648 = arith.addf %643, %647 : vector<8x8xf32>
    %c143 = arith.constant 143 : index
    %649 = memref.load %arg2[%c143] : memref<196xf32, #tpu.memory_space<smem>>
    %650 = vector.extract_strided_slice %598 {offsets = [3, 1], sizes = [8, 8], strides = [1, 1]} : vector<11x11xf32> to vector<8x8xf32>
    %651 = vector.broadcast %649 : f32 to vector<8x8xf32>
    %652 = arith.mulf %651, %650 : vector<8x8xf32>
    %653 = arith.addf %648, %652 : vector<8x8xf32>
    %c145 = arith.constant 145 : index
    %654 = memref.load %arg2[%c145] : memref<196xf32, #tpu.memory_space<smem>>
    %655 = vector.extract_strided_slice %598 {offsets = [3, 2], sizes = [8, 8], strides = [1, 1]} : vector<11x11xf32> to vector<8x8xf32>
    %656 = vector.broadcast %654 : f32 to vector<8x8xf32>
    %657 = arith.mulf %656, %655 : vector<8x8xf32>
    %658 = arith.addf %653, %657 : vector<8x8xf32>
    %c0_44 = arith.constant 0 : index
    %c10_45 = arith.constant 10 : index
    %c0_46 = arith.constant 0 : index
    %c0_47 = arith.constant 0 : index
    %659 = vector.load %arg1[%c0_44, %c10_45, %c0_46, %c0_47] : memref<1x16x11x11xf32, #tpu.memory_space<vmem>>, vector<1x1x11x11xf32>
    %660 = vector.shape_cast %659 : vector<1x1x11x11xf32> to vector<11x11xf32>
    %c105 = arith.constant 105 : index
    %661 = memref.load %arg2[%c105] : memref<196xf32, #tpu.memory_space<smem>>
    %662 = vector.extract_strided_slice %660 {offsets = [0, 0], sizes = [8, 8], strides = [1, 1]} : vector<11x11xf32> to vector<8x8xf32>
    %663 = vector.broadcast %661 : f32 to vector<8x8xf32>
    %664 = arith.mulf %663, %662 : vector<8x8xf32>
    %665 = arith.addf %658, %664 : vector<8x8xf32>
    %c107 = arith.constant 107 : index
    %666 = memref.load %arg2[%c107] : memref<196xf32, #tpu.memory_space<smem>>
    %667 = vector.extract_strided_slice %660 {offsets = [0, 1], sizes = [8, 8], strides = [1, 1]} : vector<11x11xf32> to vector<8x8xf32>
    %668 = vector.broadcast %666 : f32 to vector<8x8xf32>
    %669 = arith.mulf %668, %667 : vector<8x8xf32>
    %670 = arith.addf %665, %669 : vector<8x8xf32>
    %c109 = arith.constant 109 : index
    %671 = memref.load %arg2[%c109] : memref<196xf32, #tpu.memory_space<smem>>
    %672 = vector.extract_strided_slice %660 {offsets = [0, 2], sizes = [8, 8], strides = [1, 1]} : vector<11x11xf32> to vector<8x8xf32>
    %673 = vector.broadcast %671 : f32 to vector<8x8xf32>
    %674 = arith.mulf %673, %672 : vector<8x8xf32>
    %675 = arith.addf %670, %674 : vector<8x8xf32>
    %c111 = arith.constant 111 : index
    %676 = memref.load %arg2[%c111] : memref<196xf32, #tpu.memory_space<smem>>
    %677 = vector.extract_strided_slice %660 {offsets = [0, 3], sizes = [8, 8], strides = [1, 1]} : vector<11x11xf32> to vector<8x8xf32>
    %678 = vector.broadcast %676 : f32 to vector<8x8xf32>
    %679 = arith.mulf %678, %677 : vector<8x8xf32>
    %680 = arith.addf %675, %679 : vector<8x8xf32>
    %c119 = arith.constant 119 : index
    %681 = memref.load %arg2[%c119] : memref<196xf32, #tpu.memory_space<smem>>
    %682 = vector.extract_strided_slice %660 {offsets = [1, 0], sizes = [8, 8], strides = [1, 1]} : vector<11x11xf32> to vector<8x8xf32>
    %683 = vector.broadcast %681 : f32 to vector<8x8xf32>
    %684 = arith.mulf %683, %682 : vector<8x8xf32>
    %685 = arith.addf %680, %684 : vector<8x8xf32>
    %c121 = arith.constant 121 : index
    %686 = memref.load %arg2[%c121] : memref<196xf32, #tpu.memory_space<smem>>
    %687 = vector.extract_strided_slice %660 {offsets = [1, 1], sizes = [8, 8], strides = [1, 1]} : vector<11x11xf32> to vector<8x8xf32>
    %688 = vector.broadcast %686 : f32 to vector<8x8xf32>
    %689 = arith.mulf %688, %687 : vector<8x8xf32>
    %690 = arith.addf %685, %689 : vector<8x8xf32>
    %c123 = arith.constant 123 : index
    %691 = memref.load %arg2[%c123] : memref<196xf32, #tpu.memory_space<smem>>
    %692 = vector.extract_strided_slice %660 {offsets = [1, 2], sizes = [8, 8], strides = [1, 1]} : vector<11x11xf32> to vector<8x8xf32>
    %693 = vector.broadcast %691 : f32 to vector<8x8xf32>
    %694 = arith.mulf %693, %692 : vector<8x8xf32>
    %695 = arith.addf %690, %694 : vector<8x8xf32>
    %c125 = arith.constant 125 : index
    %696 = memref.load %arg2[%c125] : memref<196xf32, #tpu.memory_space<smem>>
    %697 = vector.extract_strided_slice %660 {offsets = [1, 3], sizes = [8, 8], strides = [1, 1]} : vector<11x11xf32> to vector<8x8xf32>
    %698 = vector.broadcast %696 : f32 to vector<8x8xf32>
    %699 = arith.mulf %698, %697 : vector<8x8xf32>
    %700 = arith.addf %695, %699 : vector<8x8xf32>
    %c133 = arith.constant 133 : index
    %701 = memref.load %arg2[%c133] : memref<196xf32, #tpu.memory_space<smem>>
    %702 = vector.extract_strided_slice %660 {offsets = [2, 0], sizes = [8, 8], strides = [1, 1]} : vector<11x11xf32> to vector<8x8xf32>
    %703 = vector.broadcast %701 : f32 to vector<8x8xf32>
    %704 = arith.mulf %703, %702 : vector<8x8xf32>
    %705 = arith.addf %700, %704 : vector<8x8xf32>
    %c135 = arith.constant 135 : index
    %706 = memref.load %arg2[%c135] : memref<196xf32, #tpu.memory_space<smem>>
    %707 = vector.extract_strided_slice %660 {offsets = [2, 1], sizes = [8, 8], strides = [1, 1]} : vector<11x11xf32> to vector<8x8xf32>
    %708 = vector.broadcast %706 : f32 to vector<8x8xf32>
    %709 = arith.mulf %708, %707 : vector<8x8xf32>
    %710 = arith.addf %705, %709 : vector<8x8xf32>
    %c137 = arith.constant 137 : index
    %711 = memref.load %arg2[%c137] : memref<196xf32, #tpu.memory_space<smem>>
    %712 = vector.extract_strided_slice %660 {offsets = [2, 2], sizes = [8, 8], strides = [1, 1]} : vector<11x11xf32> to vector<8x8xf32>
    %713 = vector.broadcast %711 : f32 to vector<8x8xf32>
    %714 = arith.mulf %713, %712 : vector<8x8xf32>
    %715 = arith.addf %710, %714 : vector<8x8xf32>
    %c139 = arith.constant 139 : index
    %716 = memref.load %arg2[%c139] : memref<196xf32, #tpu.memory_space<smem>>
    %717 = vector.extract_strided_slice %660 {offsets = [2, 3], sizes = [8, 8], strides = [1, 1]} : vector<11x11xf32> to vector<8x8xf32>
    %718 = vector.broadcast %716 : f32 to vector<8x8xf32>
    %719 = arith.mulf %718, %717 : vector<8x8xf32>
    %720 = arith.addf %715, %719 : vector<8x8xf32>
    %c0_48 = arith.constant 0 : index
    %c14_49 = arith.constant 14 : index
    %c0_50 = arith.constant 0 : index
    %c0_51 = arith.constant 0 : index
    %721 = vector.load %arg1[%c0_48, %c14_49, %c0_50, %c0_51] : memref<1x16x11x11xf32, #tpu.memory_space<vmem>>, vector<1x1x11x11xf32>
    %722 = vector.shape_cast %721 : vector<1x1x11x11xf32> to vector<11x11xf32>
    %c106 = arith.constant 106 : index
    %723 = memref.load %arg2[%c106] : memref<196xf32, #tpu.memory_space<smem>>
    %724 = vector.extract_strided_slice %722 {offsets = [0, 0], sizes = [8, 8], strides = [1, 1]} : vector<11x11xf32> to vector<8x8xf32>
    %725 = vector.broadcast %723 : f32 to vector<8x8xf32>
    %726 = arith.mulf %725, %724 : vector<8x8xf32>
    %727 = arith.addf %720, %726 : vector<8x8xf32>
    %c108 = arith.constant 108 : index
    %728 = memref.load %arg2[%c108] : memref<196xf32, #tpu.memory_space<smem>>
    %729 = vector.extract_strided_slice %722 {offsets = [0, 1], sizes = [8, 8], strides = [1, 1]} : vector<11x11xf32> to vector<8x8xf32>
    %730 = vector.broadcast %728 : f32 to vector<8x8xf32>
    %731 = arith.mulf %730, %729 : vector<8x8xf32>
    %732 = arith.addf %727, %731 : vector<8x8xf32>
    %c110 = arith.constant 110 : index
    %733 = memref.load %arg2[%c110] : memref<196xf32, #tpu.memory_space<smem>>
    %734 = vector.extract_strided_slice %722 {offsets = [0, 2], sizes = [8, 8], strides = [1, 1]} : vector<11x11xf32> to vector<8x8xf32>
    %735 = vector.broadcast %733 : f32 to vector<8x8xf32>
    %736 = arith.mulf %735, %734 : vector<8x8xf32>
    %737 = arith.addf %732, %736 : vector<8x8xf32>
    %c120 = arith.constant 120 : index
    %738 = memref.load %arg2[%c120] : memref<196xf32, #tpu.memory_space<smem>>
    %739 = vector.extract_strided_slice %722 {offsets = [1, 0], sizes = [8, 8], strides = [1, 1]} : vector<11x11xf32> to vector<8x8xf32>
    %740 = vector.broadcast %738 : f32 to vector<8x8xf32>
    %741 = arith.mulf %740, %739 : vector<8x8xf32>
    %742 = arith.addf %737, %741 : vector<8x8xf32>
    %c122 = arith.constant 122 : index
    %743 = memref.load %arg2[%c122] : memref<196xf32, #tpu.memory_space<smem>>
    %744 = vector.extract_strided_slice %722 {offsets = [1, 1], sizes = [8, 8], strides = [1, 1]} : vector<11x11xf32> to vector<8x8xf32>
    %745 = vector.broadcast %743 : f32 to vector<8x8xf32>
    %746 = arith.mulf %745, %744 : vector<8x8xf32>
    %747 = arith.addf %742, %746 : vector<8x8xf32>
    %c124 = arith.constant 124 : index
    %748 = memref.load %arg2[%c124] : memref<196xf32, #tpu.memory_space<smem>>
    %749 = vector.extract_strided_slice %722 {offsets = [1, 2], sizes = [8, 8], strides = [1, 1]} : vector<11x11xf32> to vector<8x8xf32>
    %750 = vector.broadcast %748 : f32 to vector<8x8xf32>
    %751 = arith.mulf %750, %749 : vector<8x8xf32>
    %752 = arith.addf %747, %751 : vector<8x8xf32>
    %c134 = arith.constant 134 : index
    %753 = memref.load %arg2[%c134] : memref<196xf32, #tpu.memory_space<smem>>
    %754 = vector.extract_strided_slice %722 {offsets = [2, 0], sizes = [8, 8], strides = [1, 1]} : vector<11x11xf32> to vector<8x8xf32>
    %755 = vector.broadcast %753 : f32 to vector<8x8xf32>
    %756 = arith.mulf %755, %754 : vector<8x8xf32>
    %757 = arith.addf %752, %756 : vector<8x8xf32>
    %c136 = arith.constant 136 : index
    %758 = memref.load %arg2[%c136] : memref<196xf32, #tpu.memory_space<smem>>
    %759 = vector.extract_strided_slice %722 {offsets = [2, 1], sizes = [8, 8], strides = [1, 1]} : vector<11x11xf32> to vector<8x8xf32>
    %760 = vector.broadcast %758 : f32 to vector<8x8xf32>
    %761 = arith.mulf %760, %759 : vector<8x8xf32>
    %762 = arith.addf %757, %761 : vector<8x8xf32>
    %c138 = arith.constant 138 : index
    %763 = memref.load %arg2[%c138] : memref<196xf32, #tpu.memory_space<smem>>
    %764 = vector.extract_strided_slice %722 {offsets = [2, 2], sizes = [8, 8], strides = [1, 1]} : vector<11x11xf32> to vector<8x8xf32>
    %765 = vector.broadcast %763 : f32 to vector<8x8xf32>
    %766 = arith.mulf %765, %764 : vector<8x8xf32>
    %767 = arith.addf %762, %766 : vector<8x8xf32>
    %c2_52 = arith.constant 2 : index
    %768 = memref.load %arg3[%c2_52] : memref<4xf32, #tpu.memory_space<smem>>
    %769 = vector.broadcast %768 : f32 to vector<8x8xf32>
    %770 = arith.addf %767, %769 : vector<8x8xf32>
    %cst_53 = arith.constant 0.000000e+00 : f32
    %771 = vector.broadcast %cst_53 : f32 to vector<8x8xf32>
    %c0_54 = arith.constant 0 : index
    %c3_55 = arith.constant 3 : index
    %c0_56 = arith.constant 0 : index
    %c0_57 = arith.constant 0 : index
    %772 = vector.load %arg1[%c0_54, %c3_55, %c0_56, %c0_57] : memref<1x16x11x11xf32, #tpu.memory_space<vmem>>, vector<1x1x11x11xf32>
    %773 = vector.shape_cast %772 : vector<1x1x11x11xf32> to vector<11x11xf32>
    %c147 = arith.constant 147 : index
    %774 = memref.load %arg2[%c147] : memref<196xf32, #tpu.memory_space<smem>>
    %775 = vector.extract_strided_slice %773 {offsets = [0, 0], sizes = [8, 8], strides = [1, 1]} : vector<11x11xf32> to vector<8x8xf32>
    %776 = vector.broadcast %774 : f32 to vector<8x8xf32>
    %777 = arith.mulf %776, %775 : vector<8x8xf32>
    %778 = arith.addf %771, %777 : vector<8x8xf32>
    %c149 = arith.constant 149 : index
    %779 = memref.load %arg2[%c149] : memref<196xf32, #tpu.memory_space<smem>>
    %780 = vector.extract_strided_slice %773 {offsets = [0, 1], sizes = [8, 8], strides = [1, 1]} : vector<11x11xf32> to vector<8x8xf32>
    %781 = vector.broadcast %779 : f32 to vector<8x8xf32>
    %782 = arith.mulf %781, %780 : vector<8x8xf32>
    %783 = arith.addf %778, %782 : vector<8x8xf32>
    %c151 = arith.constant 151 : index
    %784 = memref.load %arg2[%c151] : memref<196xf32, #tpu.memory_space<smem>>
    %785 = vector.extract_strided_slice %773 {offsets = [0, 2], sizes = [8, 8], strides = [1, 1]} : vector<11x11xf32> to vector<8x8xf32>
    %786 = vector.broadcast %784 : f32 to vector<8x8xf32>
    %787 = arith.mulf %786, %785 : vector<8x8xf32>
    %788 = arith.addf %783, %787 : vector<8x8xf32>
    %c153 = arith.constant 153 : index
    %789 = memref.load %arg2[%c153] : memref<196xf32, #tpu.memory_space<smem>>
    %790 = vector.extract_strided_slice %773 {offsets = [0, 3], sizes = [8, 8], strides = [1, 1]} : vector<11x11xf32> to vector<8x8xf32>
    %791 = vector.broadcast %789 : f32 to vector<8x8xf32>
    %792 = arith.mulf %791, %790 : vector<8x8xf32>
    %793 = arith.addf %788, %792 : vector<8x8xf32>
    %c161 = arith.constant 161 : index
    %794 = memref.load %arg2[%c161] : memref<196xf32, #tpu.memory_space<smem>>
    %795 = vector.extract_strided_slice %773 {offsets = [1, 0], sizes = [8, 8], strides = [1, 1]} : vector<11x11xf32> to vector<8x8xf32>
    %796 = vector.broadcast %794 : f32 to vector<8x8xf32>
    %797 = arith.mulf %796, %795 : vector<8x8xf32>
    %798 = arith.addf %793, %797 : vector<8x8xf32>
    %c163 = arith.constant 163 : index
    %799 = memref.load %arg2[%c163] : memref<196xf32, #tpu.memory_space<smem>>
    %800 = vector.extract_strided_slice %773 {offsets = [1, 1], sizes = [8, 8], strides = [1, 1]} : vector<11x11xf32> to vector<8x8xf32>
    %801 = vector.broadcast %799 : f32 to vector<8x8xf32>
    %802 = arith.mulf %801, %800 : vector<8x8xf32>
    %803 = arith.addf %798, %802 : vector<8x8xf32>
    %c165 = arith.constant 165 : index
    %804 = memref.load %arg2[%c165] : memref<196xf32, #tpu.memory_space<smem>>
    %805 = vector.extract_strided_slice %773 {offsets = [1, 2], sizes = [8, 8], strides = [1, 1]} : vector<11x11xf32> to vector<8x8xf32>
    %806 = vector.broadcast %804 : f32 to vector<8x8xf32>
    %807 = arith.mulf %806, %805 : vector<8x8xf32>
    %808 = arith.addf %803, %807 : vector<8x8xf32>
    %c167 = arith.constant 167 : index
    %809 = memref.load %arg2[%c167] : memref<196xf32, #tpu.memory_space<smem>>
    %810 = vector.extract_strided_slice %773 {offsets = [1, 3], sizes = [8, 8], strides = [1, 1]} : vector<11x11xf32> to vector<8x8xf32>
    %811 = vector.broadcast %809 : f32 to vector<8x8xf32>
    %812 = arith.mulf %811, %810 : vector<8x8xf32>
    %813 = arith.addf %808, %812 : vector<8x8xf32>
    %c175 = arith.constant 175 : index
    %814 = memref.load %arg2[%c175] : memref<196xf32, #tpu.memory_space<smem>>
    %815 = vector.extract_strided_slice %773 {offsets = [2, 0], sizes = [8, 8], strides = [1, 1]} : vector<11x11xf32> to vector<8x8xf32>
    %816 = vector.broadcast %814 : f32 to vector<8x8xf32>
    %817 = arith.mulf %816, %815 : vector<8x8xf32>
    %818 = arith.addf %813, %817 : vector<8x8xf32>
    %c177 = arith.constant 177 : index
    %819 = memref.load %arg2[%c177] : memref<196xf32, #tpu.memory_space<smem>>
    %820 = vector.extract_strided_slice %773 {offsets = [2, 1], sizes = [8, 8], strides = [1, 1]} : vector<11x11xf32> to vector<8x8xf32>
    %821 = vector.broadcast %819 : f32 to vector<8x8xf32>
    %822 = arith.mulf %821, %820 : vector<8x8xf32>
    %823 = arith.addf %818, %822 : vector<8x8xf32>
    %c179 = arith.constant 179 : index
    %824 = memref.load %arg2[%c179] : memref<196xf32, #tpu.memory_space<smem>>
    %825 = vector.extract_strided_slice %773 {offsets = [2, 2], sizes = [8, 8], strides = [1, 1]} : vector<11x11xf32> to vector<8x8xf32>
    %826 = vector.broadcast %824 : f32 to vector<8x8xf32>
    %827 = arith.mulf %826, %825 : vector<8x8xf32>
    %828 = arith.addf %823, %827 : vector<8x8xf32>
    %c181 = arith.constant 181 : index
    %829 = memref.load %arg2[%c181] : memref<196xf32, #tpu.memory_space<smem>>
    %830 = vector.extract_strided_slice %773 {offsets = [2, 3], sizes = [8, 8], strides = [1, 1]} : vector<11x11xf32> to vector<8x8xf32>
    %831 = vector.broadcast %829 : f32 to vector<8x8xf32>
    %832 = arith.mulf %831, %830 : vector<8x8xf32>
    %833 = arith.addf %828, %832 : vector<8x8xf32>
    %c189 = arith.constant 189 : index
    %834 = memref.load %arg2[%c189] : memref<196xf32, #tpu.memory_space<smem>>
    %835 = vector.extract_strided_slice %773 {offsets = [3, 0], sizes = [8, 8], strides = [1, 1]} : vector<11x11xf32> to vector<8x8xf32>
    %836 = vector.broadcast %834 : f32 to vector<8x8xf32>
    %837 = arith.mulf %836, %835 : vector<8x8xf32>
    %838 = arith.addf %833, %837 : vector<8x8xf32>
    %c191 = arith.constant 191 : index
    %839 = memref.load %arg2[%c191] : memref<196xf32, #tpu.memory_space<smem>>
    %840 = vector.extract_strided_slice %773 {offsets = [3, 1], sizes = [8, 8], strides = [1, 1]} : vector<11x11xf32> to vector<8x8xf32>
    %841 = vector.broadcast %839 : f32 to vector<8x8xf32>
    %842 = arith.mulf %841, %840 : vector<8x8xf32>
    %843 = arith.addf %838, %842 : vector<8x8xf32>
    %c193 = arith.constant 193 : index
    %844 = memref.load %arg2[%c193] : memref<196xf32, #tpu.memory_space<smem>>
    %845 = vector.extract_strided_slice %773 {offsets = [3, 2], sizes = [8, 8], strides = [1, 1]} : vector<11x11xf32> to vector<8x8xf32>
    %846 = vector.broadcast %844 : f32 to vector<8x8xf32>
    %847 = arith.mulf %846, %845 : vector<8x8xf32>
    %848 = arith.addf %843, %847 : vector<8x8xf32>
    %c195 = arith.constant 195 : index
    %849 = memref.load %arg2[%c195] : memref<196xf32, #tpu.memory_space<smem>>
    %850 = vector.extract_strided_slice %773 {offsets = [3, 3], sizes = [8, 8], strides = [1, 1]} : vector<11x11xf32> to vector<8x8xf32>
    %851 = vector.broadcast %849 : f32 to vector<8x8xf32>
    %852 = arith.mulf %851, %850 : vector<8x8xf32>
    %853 = arith.addf %848, %852 : vector<8x8xf32>
    %c0_58 = arith.constant 0 : index
    %c7_59 = arith.constant 7 : index
    %c0_60 = arith.constant 0 : index
    %c0_61 = arith.constant 0 : index
    %854 = vector.load %arg1[%c0_58, %c7_59, %c0_60, %c0_61] : memref<1x16x11x11xf32, #tpu.memory_space<vmem>>, vector<1x1x11x11xf32>
    %855 = vector.shape_cast %854 : vector<1x1x11x11xf32> to vector<11x11xf32>
    %c148 = arith.constant 148 : index
    %856 = memref.load %arg2[%c148] : memref<196xf32, #tpu.memory_space<smem>>
    %857 = vector.extract_strided_slice %855 {offsets = [0, 0], sizes = [8, 8], strides = [1, 1]} : vector<11x11xf32> to vector<8x8xf32>
    %858 = vector.broadcast %856 : f32 to vector<8x8xf32>
    %859 = arith.mulf %858, %857 : vector<8x8xf32>
    %860 = arith.addf %853, %859 : vector<8x8xf32>
    %c150 = arith.constant 150 : index
    %861 = memref.load %arg2[%c150] : memref<196xf32, #tpu.memory_space<smem>>
    %862 = vector.extract_strided_slice %855 {offsets = [0, 1], sizes = [8, 8], strides = [1, 1]} : vector<11x11xf32> to vector<8x8xf32>
    %863 = vector.broadcast %861 : f32 to vector<8x8xf32>
    %864 = arith.mulf %863, %862 : vector<8x8xf32>
    %865 = arith.addf %860, %864 : vector<8x8xf32>
    %c152 = arith.constant 152 : index
    %866 = memref.load %arg2[%c152] : memref<196xf32, #tpu.memory_space<smem>>
    %867 = vector.extract_strided_slice %855 {offsets = [0, 2], sizes = [8, 8], strides = [1, 1]} : vector<11x11xf32> to vector<8x8xf32>
    %868 = vector.broadcast %866 : f32 to vector<8x8xf32>
    %869 = arith.mulf %868, %867 : vector<8x8xf32>
    %870 = arith.addf %865, %869 : vector<8x8xf32>
    %c162 = arith.constant 162 : index
    %871 = memref.load %arg2[%c162] : memref<196xf32, #tpu.memory_space<smem>>
    %872 = vector.extract_strided_slice %855 {offsets = [1, 0], sizes = [8, 8], strides = [1, 1]} : vector<11x11xf32> to vector<8x8xf32>
    %873 = vector.broadcast %871 : f32 to vector<8x8xf32>
    %874 = arith.mulf %873, %872 : vector<8x8xf32>
    %875 = arith.addf %870, %874 : vector<8x8xf32>
    %c164 = arith.constant 164 : index
    %876 = memref.load %arg2[%c164] : memref<196xf32, #tpu.memory_space<smem>>
    %877 = vector.extract_strided_slice %855 {offsets = [1, 1], sizes = [8, 8], strides = [1, 1]} : vector<11x11xf32> to vector<8x8xf32>
    %878 = vector.broadcast %876 : f32 to vector<8x8xf32>
    %879 = arith.mulf %878, %877 : vector<8x8xf32>
    %880 = arith.addf %875, %879 : vector<8x8xf32>
    %c166 = arith.constant 166 : index
    %881 = memref.load %arg2[%c166] : memref<196xf32, #tpu.memory_space<smem>>
    %882 = vector.extract_strided_slice %855 {offsets = [1, 2], sizes = [8, 8], strides = [1, 1]} : vector<11x11xf32> to vector<8x8xf32>
    %883 = vector.broadcast %881 : f32 to vector<8x8xf32>
    %884 = arith.mulf %883, %882 : vector<8x8xf32>
    %885 = arith.addf %880, %884 : vector<8x8xf32>
    %c176 = arith.constant 176 : index
    %886 = memref.load %arg2[%c176] : memref<196xf32, #tpu.memory_space<smem>>
    %887 = vector.extract_strided_slice %855 {offsets = [2, 0], sizes = [8, 8], strides = [1, 1]} : vector<11x11xf32> to vector<8x8xf32>
    %888 = vector.broadcast %886 : f32 to vector<8x8xf32>
    %889 = arith.mulf %888, %887 : vector<8x8xf32>
    %890 = arith.addf %885, %889 : vector<8x8xf32>
    %c178 = arith.constant 178 : index
    %891 = memref.load %arg2[%c178] : memref<196xf32, #tpu.memory_space<smem>>
    %892 = vector.extract_strided_slice %855 {offsets = [2, 1], sizes = [8, 8], strides = [1, 1]} : vector<11x11xf32> to vector<8x8xf32>
    %893 = vector.broadcast %891 : f32 to vector<8x8xf32>
    %894 = arith.mulf %893, %892 : vector<8x8xf32>
    %895 = arith.addf %890, %894 : vector<8x8xf32>
    %c180 = arith.constant 180 : index
    %896 = memref.load %arg2[%c180] : memref<196xf32, #tpu.memory_space<smem>>
    %897 = vector.extract_strided_slice %855 {offsets = [2, 2], sizes = [8, 8], strides = [1, 1]} : vector<11x11xf32> to vector<8x8xf32>
    %898 = vector.broadcast %896 : f32 to vector<8x8xf32>
    %899 = arith.mulf %898, %897 : vector<8x8xf32>
    %900 = arith.addf %895, %899 : vector<8x8xf32>
    %c190 = arith.constant 190 : index
    %901 = memref.load %arg2[%c190] : memref<196xf32, #tpu.memory_space<smem>>
    %902 = vector.extract_strided_slice %855 {offsets = [3, 0], sizes = [8, 8], strides = [1, 1]} : vector<11x11xf32> to vector<8x8xf32>
    %903 = vector.broadcast %901 : f32 to vector<8x8xf32>
    %904 = arith.mulf %903, %902 : vector<8x8xf32>
    %905 = arith.addf %900, %904 : vector<8x8xf32>
    %c192 = arith.constant 192 : index
    %906 = memref.load %arg2[%c192] : memref<196xf32, #tpu.memory_space<smem>>
    %907 = vector.extract_strided_slice %855 {offsets = [3, 1], sizes = [8, 8], strides = [1, 1]} : vector<11x11xf32> to vector<8x8xf32>
    %908 = vector.broadcast %906 : f32 to vector<8x8xf32>
    %909 = arith.mulf %908, %907 : vector<8x8xf32>
    %910 = arith.addf %905, %909 : vector<8x8xf32>
    %c194 = arith.constant 194 : index
    %911 = memref.load %arg2[%c194] : memref<196xf32, #tpu.memory_space<smem>>
    %912 = vector.extract_strided_slice %855 {offsets = [3, 2], sizes = [8, 8], strides = [1, 1]} : vector<11x11xf32> to vector<8x8xf32>
    %913 = vector.broadcast %911 : f32 to vector<8x8xf32>
    %914 = arith.mulf %913, %912 : vector<8x8xf32>
    %915 = arith.addf %910, %914 : vector<8x8xf32>
    %c0_62 = arith.constant 0 : index
    %c11_63 = arith.constant 11 : index
    %c0_64 = arith.constant 0 : index
    %c0_65 = arith.constant 0 : index
    %916 = vector.load %arg1[%c0_62, %c11_63, %c0_64, %c0_65] : memref<1x16x11x11xf32, #tpu.memory_space<vmem>>, vector<1x1x11x11xf32>
    %917 = vector.shape_cast %916 : vector<1x1x11x11xf32> to vector<11x11xf32>
    %c154 = arith.constant 154 : index
    %918 = memref.load %arg2[%c154] : memref<196xf32, #tpu.memory_space<smem>>
    %919 = vector.extract_strided_slice %917 {offsets = [0, 0], sizes = [8, 8], strides = [1, 1]} : vector<11x11xf32> to vector<8x8xf32>
    %920 = vector.broadcast %918 : f32 to vector<8x8xf32>
    %921 = arith.mulf %920, %919 : vector<8x8xf32>
    %922 = arith.addf %915, %921 : vector<8x8xf32>
    %c156 = arith.constant 156 : index
    %923 = memref.load %arg2[%c156] : memref<196xf32, #tpu.memory_space<smem>>
    %924 = vector.extract_strided_slice %917 {offsets = [0, 1], sizes = [8, 8], strides = [1, 1]} : vector<11x11xf32> to vector<8x8xf32>
    %925 = vector.broadcast %923 : f32 to vector<8x8xf32>
    %926 = arith.mulf %925, %924 : vector<8x8xf32>
    %927 = arith.addf %922, %926 : vector<8x8xf32>
    %c158 = arith.constant 158 : index
    %928 = memref.load %arg2[%c158] : memref<196xf32, #tpu.memory_space<smem>>
    %929 = vector.extract_strided_slice %917 {offsets = [0, 2], sizes = [8, 8], strides = [1, 1]} : vector<11x11xf32> to vector<8x8xf32>
    %930 = vector.broadcast %928 : f32 to vector<8x8xf32>
    %931 = arith.mulf %930, %929 : vector<8x8xf32>
    %932 = arith.addf %927, %931 : vector<8x8xf32>
    %c160 = arith.constant 160 : index
    %933 = memref.load %arg2[%c160] : memref<196xf32, #tpu.memory_space<smem>>
    %934 = vector.extract_strided_slice %917 {offsets = [0, 3], sizes = [8, 8], strides = [1, 1]} : vector<11x11xf32> to vector<8x8xf32>
    %935 = vector.broadcast %933 : f32 to vector<8x8xf32>
    %936 = arith.mulf %935, %934 : vector<8x8xf32>
    %937 = arith.addf %932, %936 : vector<8x8xf32>
    %c168 = arith.constant 168 : index
    %938 = memref.load %arg2[%c168] : memref<196xf32, #tpu.memory_space<smem>>
    %939 = vector.extract_strided_slice %917 {offsets = [1, 0], sizes = [8, 8], strides = [1, 1]} : vector<11x11xf32> to vector<8x8xf32>
    %940 = vector.broadcast %938 : f32 to vector<8x8xf32>
    %941 = arith.mulf %940, %939 : vector<8x8xf32>
    %942 = arith.addf %937, %941 : vector<8x8xf32>
    %c170 = arith.constant 170 : index
    %943 = memref.load %arg2[%c170] : memref<196xf32, #tpu.memory_space<smem>>
    %944 = vector.extract_strided_slice %917 {offsets = [1, 1], sizes = [8, 8], strides = [1, 1]} : vector<11x11xf32> to vector<8x8xf32>
    %945 = vector.broadcast %943 : f32 to vector<8x8xf32>
    %946 = arith.mulf %945, %944 : vector<8x8xf32>
    %947 = arith.addf %942, %946 : vector<8x8xf32>
    %c172 = arith.constant 172 : index
    %948 = memref.load %arg2[%c172] : memref<196xf32, #tpu.memory_space<smem>>
    %949 = vector.extract_strided_slice %917 {offsets = [1, 2], sizes = [8, 8], strides = [1, 1]} : vector<11x11xf32> to vector<8x8xf32>
    %950 = vector.broadcast %948 : f32 to vector<8x8xf32>
    %951 = arith.mulf %950, %949 : vector<8x8xf32>
    %952 = arith.addf %947, %951 : vector<8x8xf32>
    %c174 = arith.constant 174 : index
    %953 = memref.load %arg2[%c174] : memref<196xf32, #tpu.memory_space<smem>>
    %954 = vector.extract_strided_slice %917 {offsets = [1, 3], sizes = [8, 8], strides = [1, 1]} : vector<11x11xf32> to vector<8x8xf32>
    %955 = vector.broadcast %953 : f32 to vector<8x8xf32>
    %956 = arith.mulf %955, %954 : vector<8x8xf32>
    %957 = arith.addf %952, %956 : vector<8x8xf32>
    %c182 = arith.constant 182 : index
    %958 = memref.load %arg2[%c182] : memref<196xf32, #tpu.memory_space<smem>>
    %959 = vector.extract_strided_slice %917 {offsets = [2, 0], sizes = [8, 8], strides = [1, 1]} : vector<11x11xf32> to vector<8x8xf32>
    %960 = vector.broadcast %958 : f32 to vector<8x8xf32>
    %961 = arith.mulf %960, %959 : vector<8x8xf32>
    %962 = arith.addf %957, %961 : vector<8x8xf32>
    %c184 = arith.constant 184 : index
    %963 = memref.load %arg2[%c184] : memref<196xf32, #tpu.memory_space<smem>>
    %964 = vector.extract_strided_slice %917 {offsets = [2, 1], sizes = [8, 8], strides = [1, 1]} : vector<11x11xf32> to vector<8x8xf32>
    %965 = vector.broadcast %963 : f32 to vector<8x8xf32>
    %966 = arith.mulf %965, %964 : vector<8x8xf32>
    %967 = arith.addf %962, %966 : vector<8x8xf32>
    %c186 = arith.constant 186 : index
    %968 = memref.load %arg2[%c186] : memref<196xf32, #tpu.memory_space<smem>>
    %969 = vector.extract_strided_slice %917 {offsets = [2, 2], sizes = [8, 8], strides = [1, 1]} : vector<11x11xf32> to vector<8x8xf32>
    %970 = vector.broadcast %968 : f32 to vector<8x8xf32>
    %971 = arith.mulf %970, %969 : vector<8x8xf32>
    %972 = arith.addf %967, %971 : vector<8x8xf32>
    %c188 = arith.constant 188 : index
    %973 = memref.load %arg2[%c188] : memref<196xf32, #tpu.memory_space<smem>>
    %974 = vector.extract_strided_slice %917 {offsets = [2, 3], sizes = [8, 8], strides = [1, 1]} : vector<11x11xf32> to vector<8x8xf32>
    %975 = vector.broadcast %973 : f32 to vector<8x8xf32>
    %976 = arith.mulf %975, %974 : vector<8x8xf32>
    %977 = arith.addf %972, %976 : vector<8x8xf32>
    %c0_66 = arith.constant 0 : index
    %c15_67 = arith.constant 15 : index
    %c0_68 = arith.constant 0 : index
    %c0_69 = arith.constant 0 : index
    %978 = vector.load %arg1[%c0_66, %c15_67, %c0_68, %c0_69] : memref<1x16x11x11xf32, #tpu.memory_space<vmem>>, vector<1x1x11x11xf32>
    %979 = vector.shape_cast %978 : vector<1x1x11x11xf32> to vector<11x11xf32>
    %c155 = arith.constant 155 : index
    %980 = memref.load %arg2[%c155] : memref<196xf32, #tpu.memory_space<smem>>
    %981 = vector.extract_strided_slice %979 {offsets = [0, 0], sizes = [8, 8], strides = [1, 1]} : vector<11x11xf32> to vector<8x8xf32>
    %982 = vector.broadcast %980 : f32 to vector<8x8xf32>
    %983 = arith.mulf %982, %981 : vector<8x8xf32>
    %984 = arith.addf %977, %983 : vector<8x8xf32>
    %c157 = arith.constant 157 : index
    %985 = memref.load %arg2[%c157] : memref<196xf32, #tpu.memory_space<smem>>
    %986 = vector.extract_strided_slice %979 {offsets = [0, 1], sizes = [8, 8], strides = [1, 1]} : vector<11x11xf32> to vector<8x8xf32>
    %987 = vector.broadcast %985 : f32 to vector<8x8xf32>
    %988 = arith.mulf %987, %986 : vector<8x8xf32>
    %989 = arith.addf %984, %988 : vector<8x8xf32>
    %c159 = arith.constant 159 : index
    %990 = memref.load %arg2[%c159] : memref<196xf32, #tpu.memory_space<smem>>
    %991 = vector.extract_strided_slice %979 {offsets = [0, 2], sizes = [8, 8], strides = [1, 1]} : vector<11x11xf32> to vector<8x8xf32>
    %992 = vector.broadcast %990 : f32 to vector<8x8xf32>
    %993 = arith.mulf %992, %991 : vector<8x8xf32>
    %994 = arith.addf %989, %993 : vector<8x8xf32>
    %c169 = arith.constant 169 : index
    %995 = memref.load %arg2[%c169] : memref<196xf32, #tpu.memory_space<smem>>
    %996 = vector.extract_strided_slice %979 {offsets = [1, 0], sizes = [8, 8], strides = [1, 1]} : vector<11x11xf32> to vector<8x8xf32>
    %997 = vector.broadcast %995 : f32 to vector<8x8xf32>
    %998 = arith.mulf %997, %996 : vector<8x8xf32>
    %999 = arith.addf %994, %998 : vector<8x8xf32>
    %c171 = arith.constant 171 : index
    %1000 = memref.load %arg2[%c171] : memref<196xf32, #tpu.memory_space<smem>>
    %1001 = vector.extract_strided_slice %979 {offsets = [1, 1], sizes = [8, 8], strides = [1, 1]} : vector<11x11xf32> to vector<8x8xf32>
    %1002 = vector.broadcast %1000 : f32 to vector<8x8xf32>
    %1003 = arith.mulf %1002, %1001 : vector<8x8xf32>
    %1004 = arith.addf %999, %1003 : vector<8x8xf32>
    %c173 = arith.constant 173 : index
    %1005 = memref.load %arg2[%c173] : memref<196xf32, #tpu.memory_space<smem>>
    %1006 = vector.extract_strided_slice %979 {offsets = [1, 2], sizes = [8, 8], strides = [1, 1]} : vector<11x11xf32> to vector<8x8xf32>
    %1007 = vector.broadcast %1005 : f32 to vector<8x8xf32>
    %1008 = arith.mulf %1007, %1006 : vector<8x8xf32>
    %1009 = arith.addf %1004, %1008 : vector<8x8xf32>
    %c183 = arith.constant 183 : index
    %1010 = memref.load %arg2[%c183] : memref<196xf32, #tpu.memory_space<smem>>
    %1011 = vector.extract_strided_slice %979 {offsets = [2, 0], sizes = [8, 8], strides = [1, 1]} : vector<11x11xf32> to vector<8x8xf32>
    %1012 = vector.broadcast %1010 : f32 to vector<8x8xf32>
    %1013 = arith.mulf %1012, %1011 : vector<8x8xf32>
    %1014 = arith.addf %1009, %1013 : vector<8x8xf32>
    %c185 = arith.constant 185 : index
    %1015 = memref.load %arg2[%c185] : memref<196xf32, #tpu.memory_space<smem>>
    %1016 = vector.extract_strided_slice %979 {offsets = [2, 1], sizes = [8, 8], strides = [1, 1]} : vector<11x11xf32> to vector<8x8xf32>
    %1017 = vector.broadcast %1015 : f32 to vector<8x8xf32>
    %1018 = arith.mulf %1017, %1016 : vector<8x8xf32>
    %1019 = arith.addf %1014, %1018 : vector<8x8xf32>
    %c187 = arith.constant 187 : index
    %1020 = memref.load %arg2[%c187] : memref<196xf32, #tpu.memory_space<smem>>
    %1021 = vector.extract_strided_slice %979 {offsets = [2, 2], sizes = [8, 8], strides = [1, 1]} : vector<11x11xf32> to vector<8x8xf32>
    %1022 = vector.broadcast %1020 : f32 to vector<8x8xf32>
    %1023 = arith.mulf %1022, %1021 : vector<8x8xf32>
    %1024 = arith.addf %1019, %1023 : vector<8x8xf32>
    %c3_70 = arith.constant 3 : index
    %1025 = memref.load %arg3[%c3_70] : memref<4xf32, #tpu.memory_space<smem>>
    %1026 = vector.broadcast %1025 : f32 to vector<8x8xf32>
    %1027 = arith.addf %1024, %1026 : vector<8x8xf32>
    %1028 = vector.shape_cast %256 : vector<8x8xf32> to vector<1x8x8xf32>
    %1029 = vector.shape_cast %513 : vector<8x8xf32> to vector<1x8x8xf32>
    %1030 = vector.shape_cast %770 : vector<8x8xf32> to vector<1x8x8xf32>
    %1031 = vector.shape_cast %1027 : vector<8x8xf32> to vector<1x8x8xf32>
    %1032 = tpu.concatenate %1028, %1029, %1030, %1031 in 0 : vector<1x8x8xf32>, vector<1x8x8xf32>, vector<1x8x8xf32>, vector<1x8x8xf32> -> vector<4x8x8xf32>
    %1033 = vector.shape_cast %1032 : vector<4x8x8xf32> to vector<1x4x8x8xf32>
    %c0_71 = arith.constant 0 : index
    %c0_72 = arith.constant 0 : index
    %c0_73 = arith.constant 0 : index
    %c0_74 = arith.constant 0 : index
    %1034 = vector.load %arg4[%c0_71, %c0_72, %c0_73, %c0_74] : memref<1x4x8x8xf32, #tpu.memory_space<vmem>>, vector<1x4x8x8xf32>
    tpu.vector_store %arg4[%c0_71, %c0_72, %c0_73, %c0_74], %1033 {strides = array<i32>} : memref<1x4x8x8xf32, #tpu.memory_space<vmem>>, vector<1x4x8x8xf32>,
    return
  }
  func.func @transform_0(%arg0: i32) -> (i32, i32, i32, i32) {
    %c0_i32 = arith.constant 0 : i32
    %c0_i32_0 = arith.constant 0 : i32
    %c0_i32_1 = arith.constant 0 : i32
    %c0_i32_2 = arith.constant 0 : i32
    return %arg0, %c0_i32, %c0_i32_0, %c0_i32_1 : i32, i32, i32, i32
  }
  func.func @transform_1(%arg0: i32) -> i32 {
    %c0_i32 = arith.constant 0 : i32
    %c0_i32_0 = arith.constant 0 : i32
    return %c0_i32 : i32
  }
  func.func @transform_2(%arg0: i32) -> i32 {
    %c0_i32 = arith.constant 0 : i32
    %c0_i32_0 = arith.constant 0 : i32
    return %c0_i32 : i32
  }
  func.func @transform_3(%arg0: i32) -> (i32, i32, i32, i32) {
    %c0_i32 = arith.constant 0 : i32
    %c0_i32_0 = arith.constant 0 : i32
    %c0_i32_1 = arith.constant 0 : i32
    %c0_i32_2 = arith.constant 0 : i32
    return %arg0, %c0_i32, %c0_i32_0, %c0_i32_1 : i32, i32, i32, i32
  }
}

module attributes {stable_mosaic.version = 11 : i64} {
  func.func @_pw_dw_ln_kernel(%arg0: i32, %arg1: memref<1x64x4xf32, #tpu.memory_space<vmem>>, %arg2: memref<4x32xf32, #tpu.memory_space<vmem>>, %arg3: memref<1x32xf32, #tpu.memory_space<vmem>>, %arg4: memref<9x32xf32, #tpu.memory_space<vmem>>, %arg5: memref<1x32xf32, #tpu.memory_space<vmem>>, %arg6: memref<1x32xf32, #tpu.memory_space<vmem>>, %arg7: memref<1x32xf32, #tpu.memory_space<vmem>>, %arg8: memref<1x64x32xf32, #tpu.memory_space<vmem>>) attributes {dimension_semantics = [#tpu.dimension_semantics<parallel>], iteration_bounds = array<i64: 2>, scalar_prefetch = 0 : i64, scratch_operands = 0 : i64, tpu.core_type = #tpu.core_type<tc>, window_params = [{transform_indices = @transform_0, window_bounds = array<i64: 1, 64, 4>}, {pipeline_mode = #tpu.pipeline_mode<synchronous>, transform_indices = @transform_1, window_bounds = array<i64: 4, 32>}, {pipeline_mode = #tpu.pipeline_mode<synchronous>, transform_indices = @transform_2, window_bounds = array<i64: 1, 32>}, {pipeline_mode = #tpu.pipeline_mode<synchronous>, transform_indices = @transform_3, window_bounds = array<i64: 9, 32>}, {pipeline_mode = #tpu.pipeline_mode<synchronous>, transform_indices = @transform_4, window_bounds = array<i64: 1, 32>}, {pipeline_mode = #tpu.pipeline_mode<synchronous>, transform_indices = @transform_5, window_bounds = array<i64: 1, 32>}, {pipeline_mode = #tpu.pipeline_mode<synchronous>, transform_indices = @transform_6, window_bounds = array<i64: 1, 32>}, {transform_indices = @transform_7, window_bounds = array<i64: 1, 64, 32>}]} {
    %c0 = arith.constant 0 : index
    %c0_0 = arith.constant 0 : index
    %c0_1 = arith.constant 0 : index
    %0 = vector.load %arg1[%c0, %c0_0, %c0_1] : memref<1x64x4xf32, #tpu.memory_space<vmem>>, vector<1x64x4xf32>
    %1 = vector.shape_cast %0 : vector<1x64x4xf32> to vector<64x4xf32>
    %cst = arith.constant 0.000000e+00 : f32
    %2 = vector.broadcast %cst : f32 to vector<64x32xf32>
    %3 = vector.extract_strided_slice %1 {offsets = [0, 0], sizes = [64, 1], strides = [1, 1]} : vector<64x4xf32> to vector<64x1xf32>
    %c0_2 = arith.constant 0 : index
    %c0_3 = arith.constant 0 : index
    %4 = vector.load %arg2[%c0_2, %c0_3] : memref<4x32xf32, #tpu.memory_space<vmem>>, vector<1x32xf32>
    %5 = vector.shape_cast %4 : vector<1x32xf32> to vector<32xf32>
    %6 = vector.shape_cast %5 : vector<32xf32> to vector<1x32xf32>
    %7 = vector.broadcast %3 : vector<64x1xf32> to vector<64x32xf32>
    %8 = vector.broadcast %6 : vector<1x32xf32> to vector<64x32xf32>
    %9 = arith.mulf %7, %8 : vector<64x32xf32>
    %10 = arith.addf %2, %9 : vector<64x32xf32>
    %11 = vector.extract_strided_slice %1 {offsets = [0, 1], sizes = [64, 1], strides = [1, 1]} : vector<64x4xf32> to vector<64x1xf32>
    %c1 = arith.constant 1 : index
    %c0_4 = arith.constant 0 : index
    %12 = vector.load %arg2[%c1, %c0_4] : memref<4x32xf32, #tpu.memory_space<vmem>>, vector<1x32xf32>
    %13 = vector.shape_cast %12 : vector<1x32xf32> to vector<32xf32>
    %14 = vector.shape_cast %13 : vector<32xf32> to vector<1x32xf32>
    %15 = vector.broadcast %11 : vector<64x1xf32> to vector<64x32xf32>
    %16 = vector.broadcast %14 : vector<1x32xf32> to vector<64x32xf32>
    %17 = arith.mulf %15, %16 : vector<64x32xf32>
    %18 = arith.addf %10, %17 : vector<64x32xf32>
    %19 = vector.extract_strided_slice %1 {offsets = [0, 2], sizes = [64, 1], strides = [1, 1]} : vector<64x4xf32> to vector<64x1xf32>
    %c2 = arith.constant 2 : index
    %c0_5 = arith.constant 0 : index
    %20 = vector.load %arg2[%c2, %c0_5] : memref<4x32xf32, #tpu.memory_space<vmem>>, vector<1x32xf32>
    %21 = vector.shape_cast %20 : vector<1x32xf32> to vector<32xf32>
    %22 = vector.shape_cast %21 : vector<32xf32> to vector<1x32xf32>
    %23 = vector.broadcast %19 : vector<64x1xf32> to vector<64x32xf32>
    %24 = vector.broadcast %22 : vector<1x32xf32> to vector<64x32xf32>
    %25 = arith.mulf %23, %24 : vector<64x32xf32>
    %26 = arith.addf %18, %25 : vector<64x32xf32>
    %27 = vector.extract_strided_slice %1 {offsets = [0, 3], sizes = [64, 1], strides = [1, 1]} : vector<64x4xf32> to vector<64x1xf32>
    %c3 = arith.constant 3 : index
    %c0_6 = arith.constant 0 : index
    %28 = vector.load %arg2[%c3, %c0_6] : memref<4x32xf32, #tpu.memory_space<vmem>>, vector<1x32xf32>
    %29 = vector.shape_cast %28 : vector<1x32xf32> to vector<32xf32>
    %30 = vector.shape_cast %29 : vector<32xf32> to vector<1x32xf32>
    %31 = vector.broadcast %27 : vector<64x1xf32> to vector<64x32xf32>
    %32 = vector.broadcast %30 : vector<1x32xf32> to vector<64x32xf32>
    %33 = arith.mulf %31, %32 : vector<64x32xf32>
    %34 = arith.addf %26, %33 : vector<64x32xf32>
    %c0_7 = arith.constant 0 : index
    %c0_8 = arith.constant 0 : index
    %35 = vector.load %arg3[%c0_7, %c0_8] : memref<1x32xf32, #tpu.memory_space<vmem>>, vector<1x32xf32>
    %36 = vector.broadcast %35 : vector<1x32xf32> to vector<64x32xf32>
    %37 = arith.addf %34, %36 : vector<64x32xf32>
    %38 = vector.shape_cast %37 : vector<64x32xf32> to vector<8x8x32xf32>
    %39 = vector.extract_strided_slice %38 {offsets = [1, 0, 0], sizes = [1, 8, 32], strides = [1, 1, 1]} : vector<8x8x32xf32> to vector<1x8x32xf32>
    %40 = vector.extract_strided_slice %38 {offsets = [6, 0, 0], sizes = [1, 8, 32], strides = [1, 1, 1]} : vector<8x8x32xf32> to vector<1x8x32xf32>
    %41 = tpu.concatenate %39, %38, %40 in 0 : vector<1x8x32xf32>, vector<8x8x32xf32>, vector<1x8x32xf32> -> vector<10x8x32xf32>
    %42 = vector.extract_strided_slice %41 {offsets = [0, 1, 0], sizes = [10, 1, 32], strides = [1, 1, 1]} : vector<10x8x32xf32> to vector<10x1x32xf32>
    %43 = vector.extract_strided_slice %41 {offsets = [0, 6, 0], sizes = [10, 1, 32], strides = [1, 1, 1]} : vector<10x8x32xf32> to vector<10x1x32xf32>
    %44 = tpu.concatenate %42, %41, %43 in 1 : vector<10x1x32xf32>, vector<10x8x32xf32>, vector<10x1x32xf32> -> vector<10x10x32xf32>
    %cst_9 = arith.constant 0.000000e+00 : f32
    %45 = vector.broadcast %cst_9 : f32 to vector<8x8x32xf32>
    %c0_10 = arith.constant 0 : index
    %c0_11 = arith.constant 0 : index
    %46 = vector.load %arg4[%c0_10, %c0_11] : memref<9x32xf32, #tpu.memory_space<vmem>>, vector<1x32xf32>
    %47 = vector.shape_cast %46 : vector<1x32xf32> to vector<32xf32>
    %48 = vector.extract_strided_slice %44 {offsets = [0, 0, 0], sizes = [8, 8, 32], strides = [1, 1, 1]} : vector<10x10x32xf32> to vector<8x8x32xf32>
    %49 = vector.shape_cast %47 : vector<32xf32> to vector<1x1x32xf32>
    %50 = vector.broadcast %49 : vector<1x1x32xf32> to vector<8x8x32xf32>
    %51 = arith.mulf %50, %48 : vector<8x8x32xf32>
    %52 = arith.addf %45, %51 : vector<8x8x32xf32>
    %c1_12 = arith.constant 1 : index
    %c0_13 = arith.constant 0 : index
    %53 = vector.load %arg4[%c1_12, %c0_13] : memref<9x32xf32, #tpu.memory_space<vmem>>, vector<1x32xf32>
    %54 = vector.shape_cast %53 : vector<1x32xf32> to vector<32xf32>
    %55 = vector.extract_strided_slice %44 {offsets = [0, 1, 0], sizes = [8, 8, 32], strides = [1, 1, 1]} : vector<10x10x32xf32> to vector<8x8x32xf32>
    %56 = vector.shape_cast %54 : vector<32xf32> to vector<1x1x32xf32>
    %57 = vector.broadcast %56 : vector<1x1x32xf32> to vector<8x8x32xf32>
    %58 = arith.mulf %57, %55 : vector<8x8x32xf32>
    %59 = arith.addf %52, %58 : vector<8x8x32xf32>
    %c2_14 = arith.constant 2 : index
    %c0_15 = arith.constant 0 : index
    %60 = vector.load %arg4[%c2_14, %c0_15] : memref<9x32xf32, #tpu.memory_space<vmem>>, vector<1x32xf32>
    %61 = vector.shape_cast %60 : vector<1x32xf32> to vector<32xf32>
    %62 = vector.extract_strided_slice %44 {offsets = [0, 2, 0], sizes = [8, 8, 32], strides = [1, 1, 1]} : vector<10x10x32xf32> to vector<8x8x32xf32>
    %63 = vector.shape_cast %61 : vector<32xf32> to vector<1x1x32xf32>
    %64 = vector.broadcast %63 : vector<1x1x32xf32> to vector<8x8x32xf32>
    %65 = arith.mulf %64, %62 : vector<8x8x32xf32>
    %66 = arith.addf %59, %65 : vector<8x8x32xf32>
    %c3_16 = arith.constant 3 : index
    %c0_17 = arith.constant 0 : index
    %67 = vector.load %arg4[%c3_16, %c0_17] : memref<9x32xf32, #tpu.memory_space<vmem>>, vector<1x32xf32>
    %68 = vector.shape_cast %67 : vector<1x32xf32> to vector<32xf32>
    %69 = vector.extract_strided_slice %44 {offsets = [1, 0, 0], sizes = [8, 8, 32], strides = [1, 1, 1]} : vector<10x10x32xf32> to vector<8x8x32xf32>
    %70 = vector.shape_cast %68 : vector<32xf32> to vector<1x1x32xf32>
    %71 = vector.broadcast %70 : vector<1x1x32xf32> to vector<8x8x32xf32>
    %72 = arith.mulf %71, %69 : vector<8x8x32xf32>
    %73 = arith.addf %66, %72 : vector<8x8x32xf32>
    %c4 = arith.constant 4 : index
    %c0_18 = arith.constant 0 : index
    %74 = vector.load %arg4[%c4, %c0_18] : memref<9x32xf32, #tpu.memory_space<vmem>>, vector<1x32xf32>
    %75 = vector.shape_cast %74 : vector<1x32xf32> to vector<32xf32>
    %76 = vector.extract_strided_slice %44 {offsets = [1, 1, 0], sizes = [8, 8, 32], strides = [1, 1, 1]} : vector<10x10x32xf32> to vector<8x8x32xf32>
    %77 = vector.shape_cast %75 : vector<32xf32> to vector<1x1x32xf32>
    %78 = vector.broadcast %77 : vector<1x1x32xf32> to vector<8x8x32xf32>
    %79 = arith.mulf %78, %76 : vector<8x8x32xf32>
    %80 = arith.addf %73, %79 : vector<8x8x32xf32>
    %c5 = arith.constant 5 : index
    %c0_19 = arith.constant 0 : index
    %81 = vector.load %arg4[%c5, %c0_19] : memref<9x32xf32, #tpu.memory_space<vmem>>, vector<1x32xf32>
    %82 = vector.shape_cast %81 : vector<1x32xf32> to vector<32xf32>
    %83 = vector.extract_strided_slice %44 {offsets = [1, 2, 0], sizes = [8, 8, 32], strides = [1, 1, 1]} : vector<10x10x32xf32> to vector<8x8x32xf32>
    %84 = vector.shape_cast %82 : vector<32xf32> to vector<1x1x32xf32>
    %85 = vector.broadcast %84 : vector<1x1x32xf32> to vector<8x8x32xf32>
    %86 = arith.mulf %85, %83 : vector<8x8x32xf32>
    %87 = arith.addf %80, %86 : vector<8x8x32xf32>
    %c6 = arith.constant 6 : index
    %c0_20 = arith.constant 0 : index
    %88 = vector.load %arg4[%c6, %c0_20] : memref<9x32xf32, #tpu.memory_space<vmem>>, vector<1x32xf32>
    %89 = vector.shape_cast %88 : vector<1x32xf32> to vector<32xf32>
    %90 = vector.extract_strided_slice %44 {offsets = [2, 0, 0], sizes = [8, 8, 32], strides = [1, 1, 1]} : vector<10x10x32xf32> to vector<8x8x32xf32>
    %91 = vector.shape_cast %89 : vector<32xf32> to vector<1x1x32xf32>
    %92 = vector.broadcast %91 : vector<1x1x32xf32> to vector<8x8x32xf32>
    %93 = arith.mulf %92, %90 : vector<8x8x32xf32>
    %94 = arith.addf %87, %93 : vector<8x8x32xf32>
    %c7 = arith.constant 7 : index
    %c0_21 = arith.constant 0 : index
    %95 = vector.load %arg4[%c7, %c0_21] : memref<9x32xf32, #tpu.memory_space<vmem>>, vector<1x32xf32>
    %96 = vector.shape_cast %95 : vector<1x32xf32> to vector<32xf32>
    %97 = vector.extract_strided_slice %44 {offsets = [2, 1, 0], sizes = [8, 8, 32], strides = [1, 1, 1]} : vector<10x10x32xf32> to vector<8x8x32xf32>
    %98 = vector.shape_cast %96 : vector<32xf32> to vector<1x1x32xf32>
    %99 = vector.broadcast %98 : vector<1x1x32xf32> to vector<8x8x32xf32>
    %100 = arith.mulf %99, %97 : vector<8x8x32xf32>
    %101 = arith.addf %94, %100 : vector<8x8x32xf32>
    %c8 = arith.constant 8 : index
    %c0_22 = arith.constant 0 : index
    %102 = vector.load %arg4[%c8, %c0_22] : memref<9x32xf32, #tpu.memory_space<vmem>>, vector<1x32xf32>
    %103 = vector.shape_cast %102 : vector<1x32xf32> to vector<32xf32>
    %104 = vector.extract_strided_slice %44 {offsets = [2, 2, 0], sizes = [8, 8, 32], strides = [1, 1, 1]} : vector<10x10x32xf32> to vector<8x8x32xf32>
    %105 = vector.shape_cast %103 : vector<32xf32> to vector<1x1x32xf32>
    %106 = vector.broadcast %105 : vector<1x1x32xf32> to vector<8x8x32xf32>
    %107 = arith.mulf %106, %104 : vector<8x8x32xf32>
    %108 = arith.addf %101, %107 : vector<8x8x32xf32>
    %c0_23 = arith.constant 0 : index
    %c0_24 = arith.constant 0 : index
    %109 = vector.load %arg5[%c0_23, %c0_24] : memref<1x32xf32, #tpu.memory_space<vmem>>, vector<1x32xf32>
    %110 = vector.shape_cast %109 : vector<1x32xf32> to vector<1x1x32xf32>
    %111 = vector.broadcast %110 : vector<1x1x32xf32> to vector<8x8x32xf32>
    %112 = arith.addf %108, %111 : vector<8x8x32xf32>
    %cst_25 = arith.constant dense<0.000000e+00> : vector<8x8xf32>
    %113 = vector.multi_reduction <add>, %112, %cst_25 [2] : vector<8x8x32xf32> to vector<8x8xf32>
    %114 = vector.shape_cast %113 : vector<8x8xf32> to vector<8x8x1xf32>
    %cst_26 = arith.constant 3.200000e+01 : f32
    %115 = vector.broadcast %cst_26 : f32 to vector<8x8x1xf32>
    %116 = arith.divf %114, %115 : vector<8x8x1xf32>
    %117 = vector.broadcast %116 : vector<8x8x1xf32> to vector<8x8x32xf32>
    %118 = arith.subf %112, %117 : vector<8x8x32xf32>
    %119 = arith.mulf %118, %118 : vector<8x8x32xf32>
    %cst_27 = arith.constant dense<0.000000e+00> : vector<8x8xf32>
    %120 = vector.multi_reduction <add>, %119, %cst_27 [2] : vector<8x8x32xf32> to vector<8x8xf32>
    %121 = vector.shape_cast %120 : vector<8x8xf32> to vector<8x8x1xf32>
    %cst_28 = arith.constant 3.200000e+01 : f32
    %122 = vector.broadcast %cst_28 : f32 to vector<8x8x1xf32>
    %123 = arith.divf %121, %122 : vector<8x8x1xf32>
    %124 = vector.broadcast %116 : vector<8x8x1xf32> to vector<8x8x32xf32>
    %125 = arith.subf %112, %124 : vector<8x8x32xf32>
    %cst_29 = arith.constant 9.99999974E-6 : f32
    %126 = vector.broadcast %cst_29 : f32 to vector<8x8x1xf32>
    %127 = arith.addf %123, %126 : vector<8x8x1xf32>
    %128 = math.rsqrt %127 : vector<8x8x1xf32>
    %129 = vector.broadcast %128 : vector<8x8x1xf32> to vector<8x8x32xf32>
    %130 = arith.mulf %125, %129 : vector<8x8x32xf32>
    %c0_30 = arith.constant 0 : index
    %c0_31 = arith.constant 0 : index
    %131 = vector.load %arg6[%c0_30, %c0_31] : memref<1x32xf32, #tpu.memory_space<vmem>>, vector<1x32xf32>
    %132 = vector.shape_cast %131 : vector<1x32xf32> to vector<1x1x32xf32>
    %133 = vector.broadcast %132 : vector<1x1x32xf32> to vector<8x8x32xf32>
    %134 = arith.mulf %130, %133 : vector<8x8x32xf32>
    %c0_32 = arith.constant 0 : index
    %c0_33 = arith.constant 0 : index
    %135 = vector.load %arg7[%c0_32, %c0_33] : memref<1x32xf32, #tpu.memory_space<vmem>>, vector<1x32xf32>
    %136 = vector.shape_cast %135 : vector<1x32xf32> to vector<1x1x32xf32>
    %137 = vector.broadcast %136 : vector<1x1x32xf32> to vector<8x8x32xf32>
    %138 = arith.addf %134, %137 : vector<8x8x32xf32>
    %139 = vector.shape_cast %138 : vector<8x8x32xf32> to vector<1x64x32xf32>
    %c0_34 = arith.constant 0 : index
    %c0_35 = arith.constant 0 : index
    %c0_36 = arith.constant 0 : index
    %140 = vector.load %arg8[%c0_34, %c0_35, %c0_36] : memref<1x64x32xf32, #tpu.memory_space<vmem>>, vector<1x64x32xf32>
    tpu.vector_store %arg8[%c0_34, %c0_35, %c0_36], %139 {strides = array<i32>} : memref<1x64x32xf32, #tpu.memory_space<vmem>>, vector<1x64x32xf32>,
    return
  }
  func.func @transform_0(%arg0: i32) -> (i32, i32, i32) {
    %c0_i32 = arith.constant 0 : i32
    %c0_i32_0 = arith.constant 0 : i32
    %c0_i32_1 = arith.constant 0 : i32
    return %arg0, %c0_i32, %c0_i32_0 : i32, i32, i32
  }
  func.func @transform_1(%arg0: i32) -> (i32, i32) {
    %c0_i32 = arith.constant 0 : i32
    %c0_i32_0 = arith.constant 0 : i32
    %c0_i32_1 = arith.constant 0 : i32
    return %c0_i32, %c0_i32_0 : i32, i32
  }
  func.func @transform_2(%arg0: i32) -> (i32, i32) {
    %c0_i32 = arith.constant 0 : i32
    %c0_i32_0 = arith.constant 0 : i32
    %c0_i32_1 = arith.constant 0 : i32
    return %c0_i32, %c0_i32_0 : i32, i32
  }
  func.func @transform_3(%arg0: i32) -> (i32, i32) {
    %c0_i32 = arith.constant 0 : i32
    %c0_i32_0 = arith.constant 0 : i32
    %c0_i32_1 = arith.constant 0 : i32
    return %c0_i32, %c0_i32_0 : i32, i32
  }
  func.func @transform_4(%arg0: i32) -> (i32, i32) {
    %c0_i32 = arith.constant 0 : i32
    %c0_i32_0 = arith.constant 0 : i32
    %c0_i32_1 = arith.constant 0 : i32
    return %c0_i32, %c0_i32_0 : i32, i32
  }
  func.func @transform_5(%arg0: i32) -> (i32, i32) {
    %c0_i32 = arith.constant 0 : i32
    %c0_i32_0 = arith.constant 0 : i32
    %c0_i32_1 = arith.constant 0 : i32
    return %c0_i32, %c0_i32_0 : i32, i32
  }
  func.func @transform_6(%arg0: i32) -> (i32, i32) {
    %c0_i32 = arith.constant 0 : i32
    %c0_i32_0 = arith.constant 0 : i32
    %c0_i32_1 = arith.constant 0 : i32
    return %c0_i32, %c0_i32_0 : i32, i32
  }
  func.func @transform_7(%arg0: i32) -> (i32, i32, i32) {
    %c0_i32 = arith.constant 0 : i32
    %c0_i32_0 = arith.constant 0 : i32
    %c0_i32_1 = arith.constant 0 : i32
    return %arg0, %c0_i32, %c0_i32_0 : i32, i32, i32
  }
}

</mosaic_0001>

<bundles_post_ra>
// kernel: patch_embed_forward.3
= control target key start
LH: loop header
LB: loop body
LE: loop exit
PB: predicated region body
PF: predicated region fallthrough
CT: control target
= control target key end

     0   :  { %s1422_s24 = smov 0   ;;  %s2068_s0 = inlined_call_operand.vmem [shape: f32[2,64,4], index: 0, kind: input, shape index: {}]   ;;  %s2069_s1 = inlined_call_operand.vmem [shape: f32[4,32], index: 1, kind: input, shape index: {}]   ;;  %s2070_s2 = inlined_call_operand.vmem [shape: f32[1,32], index: 2, kind: input, shape index: {}]   ;;  %s2071_s3 = inlined_call_operand.vmem [shape: f32[9,32], index: 3, kind: input, shape index: {}]   ;;  %s2072_s4 = inlined_call_operand.vmem [shape: f32[1,32], index: 4, kind: input, shape index: {}]   ;;  %s2073_s5 = inlined_call_operand.vmem [shape: f32[1,32], index: 5, kind: input, shape index: {}]   ;;  %s2074_s6 = inlined_call_operand.vmem [shape: f32[1,32], index: 6, kind: input, shape index: {}]   ;;  %s2075_s7 = inlined_call_operand.vmem [shape: f32[2,64,32], index: 7, kind: output, shape index: {}]  }
   0x1 LB: > { %s1299_s25 = sadd.s32 4294967295, %s1376_s24   ;;  %p1303_p0 = scmp.ge.s32.totalorder %s1376_s24, 1  ;;  %s1376_s24 = sphi %s1422_s24, %s17_s24  }
   0x2   : > { %p237_p1 = scmp.lt.s32.totalorder %s1376_s24, 3 }
   0x4   : > { %p238_p2 = pnand %p1303_p0, %p237_p1 }
   0x5   : > { %p269_p3 = scmp.lt.s32.totalorder (!%p238_p2), %s1299_s25, 1  ;;  %v1378_v0 = vmov (!%p238_p2), 0   ;;  %v1379_v8 = vmov (!%p238_p2), 1   ;;  %v1380_v9 = vmov (!%p238_p2), 2   ;;  %v1381_v10 = vmov (!%p238_p2), 3  }
   0x6   : > { %241 = sbr.rel (%p238_p2) target bundleno = 617 (0x269), region = 48  ;;  %1342 = vset.pattern.permute.xlu1 (!%p238_p2), %v1378_v0  ;;  %1341 = vset.pattern.permute.xlu0 (!%p238_p2), %v1378_v0  ;;  %v1451_v24 = vld [vmem:[%s2069_s1] ss:$0 sm:$0xff] (!%p238_p2)  ;;  %v1456_v25 = vld [vmem:[%s2069_s1 + $0x1] ss:$0 sm:$0xff] (!%p238_p2)  ;;  %vm578_vm0 = vcmask (!%p238_p2), 1040384  }
   0x7   : > { %v1463_v35 = vld [vmem:[%s2069_s1 + $0x2] ss:$0 sm:$0xff] (!%p238_p2)  ;;  %v1474_v43 = vld [vmem:[%s2069_s1 + $0x3] ss:$0 sm:$0xff] (!%p238_p2)  ;;  %v1489_v58 = vld [vmem:[%s2070_s2] ss:$0 sm:$0xff] (!%p238_p2) }
   0x8   : > { %vm647_vm1 = vcmask (!%p238_p2), 1046528   ;;  %vm716_vm2 = vcmask (!%p238_p2), 1045504   ;;  %vm1100_vm3 = vcmask (!%p238_p2), 261120  }
   0xd   : > { %s2077_s25 = smov (!%p269_p3, %s1299_s25), 1 }
   0xe   : > { %s1327_s26 = sshll.u32 %s2077_s25, 6 }
   0xf   : > { %s1438_s29 = scalar_lea.vmem %s2068_s0, %s1327_s26  ;;  %s2027_s23 = scalar_lea.vmem %s2075_s7, %s1327_s26 }
  0x10   : > { %v281_v1 = vld [vmem:[%s1438_s29 + $0x10] sm:$0xff]  ;;  %v279_v2 = vld [vmem:[%s1438_s29] sm:$0xff]  ;;  %v282_v3 = vld [vmem:[%s1438_s29 + $0x18] sm:$0xff] }
  0x11   : > { %300 = vperm.xlu1 %1342, %v281_v1   ;;  %290 = vperm.xlu0 %1341, %v279_v2   ;;  %v280_v4 = vld [vmem:[%s1438_s29 + $0x8] sm:$0xff]  ;;  %v283_v6 = vld [vmem:[%s1438_s29 + $0x20] sm:$0xff]  ;;  %v285_v7 = vld [vmem:[%s1438_s29 + $0x30] sm:$0xff] }
  0x12   : > { %v284_v5 = vld [vmem:[%s1438_s29 + $0x28] sm:$0xff]  ;;  %v286_v11 = vld [vmem:[%s1438_s29 + $0x38] sm:$0xff] }
  0x15   : > { %305 = vperm.xlu1 %1342, %v282_v3   ;;  %295 = vperm.xlu0 %1341, %v280_v4  }
  0x19   : > { %315 = vperm.xlu1 %1342, %v284_v5   ;;  %310 = vperm.xlu0 %1341, %v283_v6  }
  0x1d   : > { %1343 = vset.pattern.permute.xlu1 %v1379_v8  ;;  %320 = vperm.xlu0 %1341, %v285_v7  }
  0x1e   : > { %350 = vperm.xlu1 %1343, %v279_v2  }
  0x21   : > { %1344 = vset.pattern.permute.xlu0 %v1379_v8 }
  0x22   : > { %358 = vperm.xlu1 %1343, %v281_v1   ;;  %354 = vperm.xlu0 %1344, %v280_v4  }
  0x26   : > { %362 = vperm.xlu1 %1343, %v282_v3   ;;  %366 = vperm.xlu0 %1344, %v283_v6  }
  0x2a   : > { %370 = vperm.xlu1 %1343, %v284_v5   ;;  %374 = vperm.xlu0 %1344, %v285_v7  }
  0x2e   : > { %1345 = vset.pattern.permute.xlu1 %v1380_v9  ;;  %1346 = vset.pattern.permute.xlu0 %v1380_v9 }
  0x2f   : > { %403 = vperm.xlu1 %1345, %v279_v2   ;;  %407 = vperm.xlu0 %1346, %v280_v4  }
  0x33   : > { %411 = vperm.xlu1 %1345, %v281_v1   ;;  %419 = vperm.xlu0 %1346, %v283_v6  }
  0x37   : > { %415 = vperm.xlu1 %1345, %v282_v3   ;;  %427 = vperm.xlu0 %1346, %v285_v7  }
  0x3b   : > { %423 = vperm.xlu1 %1345, %v284_v5   ;;  %1348 = vset.pattern.permute.xlu0 %v1381_v10 }
  0x3c   : > { %460 = vperm.xlu0 %1348, %v280_v4  }
  0x3f   : > { %1347 = vset.pattern.permute.xlu1 %v1381_v10 }
  0x40   : > { %456 = vperm.xlu1 %1347, %v279_v2   ;;  %472 = vperm.xlu0 %1348, %v283_v6  }
  0x44   : > { %464 = vperm.xlu1 %1347, %v281_v1   ;;  %480 = vperm.xlu0 %1348, %v285_v7  }
  0x48   : > { %468 = vperm.xlu1 %1347, %v282_v3   ;;  %1350 = vset.pattern.permute.xlu0 %v1379_v8 }
  0x49   : > { %378 = vperm.xlu0 %1350, %v286_v11  }
  0x4c   : > { %476 = vperm.xlu1 %1347, %v284_v5  }
  0x4d   : > { %1353 = vset.pattern.permute.xlu0 %v1381_v10 }
  0x50   : > { %1349 = vset.pattern.permute.xlu1 %v1378_v0 }
  0x51   : > { %325 = vperm.xlu1 %1349, %v286_v11  }
  0x55   : > { %1351 = vset.pattern.permute.xlu1 %v1380_v9 }
  0x56   : > { %431 = vperm.xlu1 %1351, %v286_v11  }
  0x5a   : > { %1352 = vset.pattern.permute.xlu1 %v1381_v10 }
  0x5b   : > { %484 = vperm.xlu1 %1352, %v286_v11  }
  0x90   : > { %v301_v12 = vpop.permute.xlu1 %300  ;;  %v291_v13 = vpop.permute.xlu0 %290 }
  0x91   : > { %v334_v47 = vmul.f32 %v1451_v24, %v301_v12  ;;  %v332_v50 = vmul.f32 %v1451_v24, %v291_v13  ;;  %v1503_v13 = vld [vmem:[%s2071_s3 + $0x1] ss:$0 sm:$0xff] }
  0x94   : > { %v306_v14 = vpop.permute.xlu1 %305  ;;  %v296_v15 = vpop.permute.xlu0 %295 }
  0x95   : > { %v333_v40 = vmul.f32 %v1451_v24, %v296_v15  ;;  %v335_v59 = vmul.f32 %v1451_v24, %v306_v14 }
  0x98   : > { %v316_v16 = vpop.permute.xlu1 %315  ;;  %v311_v17 = vpop.permute.xlu0 %310 }
  0x99   : > { %v336_v54 = vmul.f32 %v1451_v24, %v311_v17  ;;  %v337_v60 = vmul.f32 %v1451_v24, %v316_v16 }
  0x9c   : > { %v321_v18 = vpop.permute.xlu0 %320 }
  0x9d   : > { %v351_v19 = vpop.permute.xlu1 %350  ;;  %v338_v28 = vmul.f32 %v1451_v24, %v321_v18 }
  0x9e   : > { %v385_v44 = vmul.f32 %v1456_v25, %v351_v19 }
  0xa0   : > { %v393_v61 = vadd.f32 %v385_v44, %v332_v50 }
  0xa1   : > { %v359_v20 = vpop.permute.xlu1 %358  ;;  %v355_v21 = vpop.permute.xlu0 %354 }
  0xa2   : > { %v386_v36 = vmul.f32 %v1456_v25, %v355_v21  ;;  %v387_v55 = vmul.f32 %v1456_v25, %v359_v20 }
  0xa4   : > { %v394_v45 = vadd.f32 %v386_v36, %v333_v40  ;;  %v395_v9 = vadd.f32 %v387_v55, %v334_v47  ;;  %v1529_v47 = vld [vmem:[%s2071_s3 + $0x2] ss:$0 sm:$0xff] }
  0xa5   : > { %v363_v22 = vpop.permute.xlu1 %362  ;;  %v367_v23 = vpop.permute.xlu0 %366 }
  0xa6   : > { %v389_v48 = vmul.f32 %v1456_v25, %v367_v23  ;;  %v388_v56 = vmul.f32 %v1456_v25, %v363_v22 }
  0xa8   : > { %v397_v63 = vadd.f32 %v389_v48, %v336_v54  ;;  %v396_v10 = vadd.f32 %v388_v56, %v335_v59 }
  0xa9   : > { %v371_v26 = vpop.permute.xlu1 %370  ;;  %v375_v27 = vpop.permute.xlu0 %374 }
  0xaa   : > { %v391_v29 = vmul.f32 %v1456_v25, %v375_v27  ;;  %v390_v0 = vmul.f32 %v1456_v25, %v371_v26 }
  0xac   : > { %v399_v30 = vadd.f32 %v391_v29, %v338_v28  ;;  %v398_v18 = vadd.f32 %v390_v0, %v337_v60 }
  0xae   : > { %v404_v31 = vpop.permute.xlu1 %403  ;;  %v408_v32 = vpop.permute.xlu0 %407 }
  0xaf   : > { %v439_v41 = vmul.f32 %v1463_v35, %v408_v32  ;;  %v438_v51 = vmul.f32 %v1463_v35, %v404_v31 }
  0xb1   : > { %v447_v52 = vadd.f32 %v439_v41, %v394_v45  ;;  %v446_v5 = vadd.f32 %v438_v51, %v393_v61 }
  0xb2   : > { %v412_v33 = vpop.permute.xlu1 %411  ;;  %v420_v34 = vpop.permute.xlu0 %419 }
  0xb3   : > { %v442_v57 = vmul.f32 %v1463_v35, %v420_v34  ;;  %v440_v1 = vmul.f32 %v1463_v35, %v412_v33 }
  0xb5   : > { %v450_v11 = vadd.f32 %v442_v57, %v397_v63  ;;  %v448_v19 = vadd.f32 %v440_v1, %v395_v9 }
  0xb6   : > { %v416_v37 = vpop.permute.xlu1 %415  ;;  %v428_v38 = vpop.permute.xlu0 %427 }
  0xb7   : > { %v444_v39 = vmul.f32 %v1463_v35, %v428_v38  ;;  %v441_v2 = vmul.f32 %v1463_v35, %v416_v37 }
  0xb9   : > { %v1469_v42 = vadd.f32 %v444_v39, %v399_v30  ;;  %v449_v20 = vadd.f32 %v441_v2, %v396_v10  ;;  %v1516_v30 = vld [vmem:[%s2071_s3] ss:$0 sm:$0xff] }
  0xba   : > { %v424_v46 = vpop.permute.xlu1 %423 }
  0xbb   : > { %v461_v49 = vpop.permute.xlu0 %460  ;;  %v443_v12 = vmul.f32 %v1463_v35, %v424_v46 }
  0xbc   : > { %v492_v53 = vmul.f32 %v1474_v43, %v461_v49 }
  0xbd   : > { %v451_v31 = vadd.f32 %v443_v12, %v398_v18 }
  0xbe   : > { %v500_v62 = vadd.f32 %v492_v53, %v447_v52  ;;  %v1542_v53 = vld [vmem:[%s2071_s3 + $0x4] ss:$0 sm:$0xff] }
  0xbf   : > { %v457_v3 = vpop.permute.xlu1 %456  ;;  %v473_v4 = vpop.permute.xlu0 %472 }
  0xc0   : > { %v515_v6 = vadd.f32 %v1489_v58, %v500_v62  ;;  %v491_v7 = vmul.f32 %v1474_v43, %v457_v3  ;;  %v495_v8 = vmul.f32 %v1474_v43, %v473_v4 }
  0xc2   : > { %v530_v14 = vrot.slane %v515_v6, 1  ;;  %v546_v15 = vrot.slane %v515_v6, 7  ;;  %v562_v16 = vrot.slane %v515_v6, 5  ;;  %v499_v17 = vadd.f32 %v491_v7, %v446_v5 }
  0xc3   : > { %v503_v21 = vadd.f32 %v495_v8, %v450_v11  ;;  %v465_v22 = vpop.permute.xlu1 %464  ;;  %v481_v23 = vpop.permute.xlu0 %480 }
  0xc4   : > { %v1506_v26 = vsel %vm578_vm0, %v530_v14, %v546_v15  ;;  %v1509_v27 = vsel %vm578_vm0, %v546_v15, %v562_v16  ;;  %v514_v28 = vadd.f32 %v1489_v58, %v499_v17  ;;  %v493_v29 = vmul.f32 %v1474_v43, %v465_v22 }
  0xc5   : > { %v620_v32 = vmul.f32 %v1503_v13, %v1509_v27  ;;  %v518_v33 = vadd.f32 %v1489_v58, %v503_v21  ;;  %v497_v34 = vmul.f32 %v1474_v43, %v481_v23  ;;  %v1524_v46 = vmul.f32 %v1516_v30, %v1506_v26 }
  0xc6   : > { %v531_v36 = vrot.slane %v514_v28, 1  ;;  %v547_v37 = vrot.slane %v514_v28, 7  ;;  %v563_v38 = vrot.slane %v514_v28, 5  ;;  %v501_v39 = vadd.f32 %v493_v29, %v448_v19 }
  0xc7   : > { %v534_v40 = vrot.slane %v518_v33, 1  ;;  %v550_v41 = vrot.slane %v518_v33, 7  ;;  %v566_v44 = vrot.slane %v518_v33, 5  ;;  %v469_v45 = vpop.permute.xlu1 %468  ;;  %v505_v51 = vadd.f32 %v497_v34, %v1469_v42 }
  0xc8   : > { %v1532_v48 = vsel %vm578_vm0, %v531_v36, %v547_v37  ;;  %v1535_v49 = vsel %vm578_vm0, %v547_v37, %v563_v38  ;;  %v516_v50 = vadd.f32 %v1489_v58, %v501_v39  ;;  %v649_v52 = vrot.slane %v620_v32, 1  ;;  %v379_v9 = vpop.permute.xlu0 %378 }
  0xc9   : > { %v1546_v54 = vmul.f32 %v1503_v13, %v1532_v48  ;;  %v1550_v55 = vmul.f32 %v1503_v13, %v1535_v49  ;;  %v1554_v56 = vmul.f32 %v1529_v47, %v1535_v49  ;;  %v1558_v42 = vmul.f32 %v1542_v53, %v1535_v49 }
  0xca   : > { %v1561_v57 = vsel %vm578_vm0, %v550_v41, %v566_v44  ;;  %v532_v59 = vrot.slane %v516_v50, 1  ;;  %v548_v60 = vrot.slane %v516_v50, 7  ;;  %v1566_v63 = vsel %vm578_vm0, %v534_v40, %v550_v41 }
  0xcb   : > { %v651_v61 = vrot.slane %v1546_v54, 1  ;;  %v652_v62 = vrot.slane %v1550_v55, 1  ;;  %v1570_v0 = vmul.f32 %v1503_v13, %v1561_v57  ;;  %v477_v1 = vpop.permute.xlu1 %476  ;;  %v721_v2 = vrot.slane %v1554_v56, 2 }
  0xcc   : > { %v564_v3 = vrot.slane %v516_v50, 5  ;;  %v520_v4 = vadd.f32 %v1489_v58, %v505_v51  ;;  %v494_v5 = vmul.f32 %v1474_v43, %v469_v45  ;;  %v1577_v7 = vsel %vm578_vm0, %v532_v59, %v548_v60 }
  0xcd   : > { %v661_v6 = vrot.slane %v1570_v0, 1  ;;  %v496_v8 = vmul.f32 %v1474_v43, %v477_v1  ;;  %v619_v10 = vmul.f32 %v1503_v13, %v1506_v26  ;;  %v392_v23 = vmul.f32 %v1456_v25, %v379_v9  ;;  %v1629_v9 = vld [vmem:[%s2071_s3 + $0x3] ss:$0 sm:$0xff] }
  0xce   : > { %v1583_v11 = vsel %vm578_vm0, %v548_v60, %v564_v3  ;;  %v536_v12 = vrot.slane %v520_v4, 1  ;;  %v552_v14 = vrot.slane %v520_v4, 7  ;;  %v568_v15 = vrot.slane %v520_v4, 5 }
  0xcf   : > { %v1587_v16 = vmul.f32 %v1503_v13, %v1583_v11  ;;  %v502_v17 = vadd.f32 %v494_v5, %v449_v20  ;;  %v504_v18 = vadd.f32 %v496_v8, %v451_v31  ;;  %v648_v19 = vrot.slane %v619_v10, 1 }
  0xd0   : > { %v1590_v21 = vsel %vm578_vm0, %v552_v14, %v568_v15  ;;  %v326_v22 = vpop.permute.xlu1 %325  ;;  %v688_v28 = vmul.f32 %v1529_v47, %v1506_v26  ;;  %v689_v29 = vmul.f32 %v1529_v47, %v1509_v27  ;;  %v1598_v32 = vsel %vm578_vm0, %v536_v12, %v552_v14  ;;  %v1649_v15 = vld [vmem:[%s2071_s3 + $0x7] ss:$0 sm:$0xff] }
  0xd1   : > { %v1602_v20 = vmul.f32 %v1503_v13, %v1590_v21  ;;  %v517_v31 = vadd.f32 %v1489_v58, %v502_v17  ;;  %v519_v33 = vadd.f32 %v1489_v58, %v504_v18  ;;  %v339_v34 = vmul.f32 %v1451_v24, %v326_v22 }
  0xd2   : > { %v650_v25 = vsel %vm647_vm1, %v648_v19, %v649_v52  ;;  %v717_v36 = vrot.slane %v688_v28, 2  ;;  %v718_v37 = vrot.slane %v689_v29, 2  ;;  %v655_v38 = vrot.slane %v1587_v16, 1 }
  0xd3   : > { %v533_v39 = vrot.slane %v517_v31, 1  ;;  %v549_v40 = vrot.slane %v517_v31, 7  ;;  %v565_v41 = vrot.slane %v517_v31, 5  ;;  %v667_v44 = vrot.slane %v1602_v20, 1 }
  0xd4   : > { %v535_v45 = vrot.slane %v519_v33, 1  ;;  %v551_v50 = vrot.slane %v519_v33, 7  ;;  %v567_v51 = vrot.slane %v519_v33, 5  ;;  %v400_v24 = vadd.f32 %v392_v23, %v339_v34  ;;  %v1660_v23 = vld [vmem:[%s2071_s3 + $0x8] ss:$0 sm:$0xff] }
  0xd5   : > { %v1611_v59 = vsel %vm578_vm0, %v533_v39, %v549_v40  ;;  %v1614_v60 = vsel %vm578_vm0, %v549_v40, %v565_v41  ;;  %v432_v52 = vpop.permute.xlu1 %431  ;;  %v676_v1 = vadd.f32 %v650_v25, %v1524_v46  ;;  %v719_v8 = vsel %vm716_vm2, %v717_v36, %v718_v37 }
  0xd6   : > { %v1619_v3 = vmul.f32 %v1503_v13, %v1614_v60  ;;  %v1622_v4 = vsel %vm578_vm0, %v551_v50, %v567_v51  ;;  %v445_v5 = vmul.f32 %v1463_v35, %v432_v52  ;;  %v757_v12 = vmul.f32 %v1629_v9, %v1532_v48  ;;  %v1644_v35 = vld [vmem:[%s2071_s3 + $0x5] ss:$0 sm:$0xff] }
  0xd7   : > { %v1633_v10 = vmul.f32 %v1503_v13, %v1622_v4  ;;  %v1635_v46 = vadd.f32 %v719_v8, %v676_v1  ;;  %v778_v14 = vmul.f32 %v1542_v53, %v1532_v48  ;;  %v1652_v17 = vsel %vm578_vm0, %v535_v45, %v551_v50  ;;  %v1676_v45 = vld [vmem:[%s2071_s3 + $0x6] ss:$0 sm:$0xff] }
  0xd8   : > { %v453_v18 = vadd.f32 %v445_v5, %v400_v24  ;;  %v811_v19 = vrot.slane %v1558_v42, 1  ;;  %v855_v22 = vmul.f32 %v1644_v35, %v1532_v48  ;;  %v658_v28 = vrot.slane %v1619_v3, 1 }
  0xd9   : > { %v765_v29 = vadd.f32 %v757_v12, %v1635_v46  ;;  %v810_v31 = vrot.slane %v778_v14, 1  ;;  %v856_v33 = vmul.f32 %v1644_v35, %v1535_v49  ;;  %v664_v34 = vrot.slane %v1633_v10, 1 }
  0xda   : > { %v485_v25 = vpop.permute.xlu1 %484  ;;  %v887_v42 = vrot.slane %v855_v22, 2  ;;  %v952_v36 = vmul.f32 %v1649_v15, %v1506_v26  ;;  %v953_v37 = vmul.f32 %v1649_v15, %v1509_v27  ;;  %v1021_v49 = vmul.f32 %v1660_v23, %v1506_v26 }
  0xdb   : > { %v498_v39 = vmul.f32 %v1474_v43, %v485_v25  ;;  %v812_v40 = vsel %vm647_vm1, %v810_v31, %v811_v19  ;;  %v888_v41 = vrot.slane %v856_v33, 2  ;;  %v1022_v52 = vmul.f32 %v1660_v23, %v1509_v27 }
  0xdc   : > { %v842_v50 = vadd.f32 %v812_v40, %v765_v29  ;;  %v980_v51 = vrot.slane %v952_v36, 1  ;;  %v981_v24 = vrot.slane %v953_v37, 1  ;;  %v1049_v5 = vrot.slane %v1021_v49, 2 }
  0xdd   : > { %v506_v1 = vadd.f32 %v498_v39, %v453_v18  ;;  %v889_v43 = vsel %vm716_vm2, %v887_v42, %v888_v41  ;;  %v601_v8 = vmul.f32 %v1516_v30, %v1532_v48  ;;  %v932_v14 = vmul.f32 %v1676_v45, %v1506_v26 }
  0xde   : > { %v919_v12 = vadd.f32 %v889_v43, %v842_v50  ;;  %v1050_v19 = vrot.slane %v1022_v52, 2  ;;  %v653_v22 = vsel %vm647_vm1, %v651_v61, %v652_v62  ;;  %v982_v29 = vsel %vm647_vm1, %v980_v51, %v981_v24  ;;  %v1712_v50 = vld [vmem:[%s2072_s4] ss:$0 sm:$0xff] }
  0xdf   : > { %v521_v18 = vadd.f32 %v1489_v58, %v506_v1  ;;  %v677_v31 = vadd.f32 %v653_v22, %v601_v8  ;;  %v690_v33 = vmul.f32 %v1529_v47, %v1532_v48  ;;  %v780_v36 = vmul.f32 %v1542_v53, %v1506_v26 }
  0xe0   : > { %v939_v25 = vadd.f32 %v932_v14, %v919_v12  ;;  %v1051_v42 = vsel %vm716_vm2, %v1049_v5, %v1050_v19  ;;  %v781_v55 = vmul.f32 %v1542_v53, %v1509_v27  ;;  %v857_v41 = vmul.f32 %v1644_v35, %v1506_v26 }
  0xe1   : > { %v537_v54 = vrot.slane %v521_v18, 1  ;;  %v553_v37 = vrot.slane %v521_v18, 7  ;;  %v569_v61 = vrot.slane %v521_v18, 5  ;;  %v720_v62 = vrot.slane %v690_v33, 2 }
  0xe2   : > { %v1008_v58 = vadd.f32 %v982_v29, %v939_v25  ;;  %v813_v39 = vrot.slane %v780_v36, 1  ;;  %v814_v40 = vrot.slane %v781_v55, 1  ;;  %v858_v24 = vmul.f32 %v1644_v35, %v1509_v27 }
  0xe3   : > { %v1704_v48 = vsel %vm578_vm0, %v537_v54, %v553_v37  ;;  %v1707_v49 = vsel %vm578_vm0, %v553_v37, %v569_v61  ;;  %v722_v51 = vsel %vm716_vm2, %v720_v62, %v721_v2  ;;  %v758_v5 = vmul.f32 %v1629_v9, %v1506_v26 }
  0xe4   : > { %v1721_v52 = vmul.f32 %v1542_v53, %v1707_v49  ;;  %v1077_v1 = vadd.f32 %v1051_v42, %v1008_v58  ;;  %v746_v43 = vadd.f32 %v722_v51, %v677_v31  ;;  %v815_v8 = vsel %vm647_vm1, %v813_v39, %v814_v40 }
  0xe5   : > { %v890_v12 = vrot.slane %v857_v41, 2  ;;  %v891_v14 = vrot.slane %v858_v24, 2  ;;  %v954_v56 = vmul.f32 %v1649_v15, %v1577_v7  ;;  %v955_v19 = vmul.f32 %v1649_v15, %v1583_v11 }
  0xe6   : > { %v1729_v2 = vadd.f32 %v1712_v50, %v1077_v1  ;;  %v766_v27 = vadd.f32 %v758_v5, %v746_v43  ;;  %v1023_v22 = vmul.f32 %v1660_v23, %v1577_v7  ;;  %v933_v26 = vmul.f32 %v1676_v45, %v1577_v7 }
  0xe7   : > { %v983_v18 = vrot.slane %v954_v56, 1  ;;  %v1024_v29 = vmul.f32 %v1660_v23, %v1583_v11  ;;  %v759_v31 = vmul.f32 %v1629_v9, %v1577_v7  ;;  %v984_v42 = vrot.slane %v955_v19, 1 }
  0xe8   : > { %v1101_v33 = vsel %vm1100_vm3, %v1729_v2, 0.0  ;;  %v843_v25 = vadd.f32 %v815_v8, %v766_v27  ;;  %v1052_v36 = vrot.slane %v1023_v22, 2  ;;  %v892_v55 = vsel %vm716_vm2, %v890_v12, %v891_v14 }
  0xe9   : > { %1102 = vadd.xlane.f32.xlu0 %v1101_v33  ;;  %v1053_v54 = vrot.slane %v1024_v29, 2  ;;  %v782_v37 = vmul.f32 %v1542_v53, %v1577_v7  ;;  %v783_v61 = vmul.f32 %v1542_v53, %v1583_v11  ;;  %v767_v58 = vadd.f32 %v759_v31, %v1635_v46 }
  0xea   : > { %v920_v62 = vadd.f32 %v892_v55, %v843_v25  ;;  %v859_v39 = vmul.f32 %v1644_v35, %v1577_v7  ;;  %v860_v40 = vmul.f32 %v1644_v35, %v1583_v11  ;;  %v985_v41 = vsel %vm647_vm1, %v983_v18, %v984_v42 }
  0xeb   : > { %v1054_v51 = vsel %vm716_vm2, %v1052_v36, %v1053_v54  ;;  %v816_v24 = vrot.slane %v782_v37, 1  ;;  %v817_v1 = vrot.slane %v783_v61, 1  ;;  %v956_v12 = vmul.f32 %v1649_v15, %v1611_v59 }
  0xec   : > { %v940_v43 = vadd.f32 %v933_v26, %v920_v62  ;;  %v893_v5 = vrot.slane %v859_v39, 2  ;;  %v894_v8 = vrot.slane %v860_v40, 2  ;;  %v957_v14 = vmul.f32 %v1649_v15, %v1614_v60 }
  0xed   : > { %v818_v46 = vsel %vm647_vm1, %v816_v24, %v817_v1  ;;  %v1025_v56 = vmul.f32 %v1660_v23, %v1611_v59  ;;  %v1026_v27 = vmul.f32 %v1660_v23, %v1614_v60  ;;  %v934_v26 = vmul.f32 %v1676_v45, %v1611_v59 }
  0xee   : > { %v1009_v19 = vadd.f32 %v985_v41, %v940_v43  ;;  %v844_v22 = vadd.f32 %v818_v46, %v767_v58  ;;  %v986_v18 = vrot.slane %v956_v12, 1  ;;  %v895_v29 = vsel %vm716_vm2, %v893_v5, %v894_v8 }
  0xef   : > { %v987_v31 = vrot.slane %v957_v14, 1  ;;  %v1055_v33 = vrot.slane %v1025_v56, 2  ;;  %v1056_v25 = vrot.slane %v1026_v27, 2  ;;  %v623_v55 = vmul.f32 %v1503_v13, %v1577_v7 }
  0xf0   : > { %v1078_v42 = vadd.f32 %v1054_v51, %v1009_v19  ;;  %v921_v36 = vadd.f32 %v895_v29, %v844_v22  ;;  %v692_v54 = vmul.f32 %v1529_v47, %v1577_v7  ;;  %v602_v62 = vmul.f32 %v1516_v30, %v1577_v7 }
  0xf1   : > { %v988_v37 = vsel %vm647_vm1, %v986_v18, %v987_v31  ;;  %v1057_v61 = vsel %vm716_vm2, %v1055_v33, %v1056_v25  ;;  %v693_v58 = vmul.f32 %v1529_v47, %v1583_v11  ;;  %v654_v41 = vrot.slane %v623_v55, 1 }
  0xf2   : > { %v1778_v39 = vadd.f32 %v1712_v50, %v1078_v42  ;;  %v941_v40 = vadd.f32 %v934_v26, %v921_v36  ;;  %v723_v51 = vrot.slane %v692_v54, 2  ;;  %v784_v1 = vmul.f32 %v1542_v53, %v1611_v59 }
  0xf3   : > { %v724_v24 = vrot.slane %v693_v58, 2  ;;  %v785_v43 = vmul.f32 %v1542_v53, %v1614_v60  ;;  %v861_v5 = vmul.f32 %v1644_v35, %v1611_v59  ;;  %v656_v8 = vsel %vm647_vm1, %v654_v41, %v655_v38 }
  0xf4   : > { %v1104_v7 = vsel %vm1100_vm3, %v1778_v39, 0.0  ;;  %v1010_v11 = vadd.f32 %v988_v37, %v941_v40  ;;  %v862_v12 = vmul.f32 %v1644_v35, %v1614_v60  ;;  %v678_v46 = vadd.f32 %v656_v8, %v602_v62 }
  0xf5   : > { %1105 = vadd.xlane.f32.xlu1 %v1104_v7  ;;  %v760_v14 = vmul.f32 %v1629_v9, %v1611_v59  ;;  %v819_v56 = vrot.slane %v784_v1, 1  ;;  %v820_v27 = vrot.slane %v785_v43, 1  ;;  %v725_v22 = vsel %vm716_vm2, %v723_v51, %v724_v24 }
  0xf6   : > { %v1079_v19 = vadd.f32 %v1057_v61, %v1010_v11  ;;  %v896_v26 = vrot.slane %v861_v5, 2  ;;  %v897_v18 = vrot.slane %v862_v12, 2  ;;  %v747_v29 = vadd.f32 %v725_v22, %v678_v46 }
  0xf7   : > { %v935_v16 = vmul.f32 %v1676_v45, %v1566_v63  ;;  %v958_v38 = vmul.f32 %v1649_v15, %v1566_v63  ;;  %v959_v31 = vmul.f32 %v1649_v15, %v1561_v57  ;;  %v821_v25 = vsel %vm647_vm1, %v819_v56, %v820_v27 }
  0xf8   : > { %v1803_v33 = vadd.f32 %v1712_v50, %v1079_v19  ;;  %v1027_v42 = vmul.f32 %v1660_v23, %v1566_v63  ;;  %v1028_v36 = vmul.f32 %v1660_v23, %v1561_v57  ;;  %v768_v55 = vadd.f32 %v760_v14, %v747_v29 }
  0xf9   : > { %v898_v54 = vsel %vm716_vm2, %v896_v26, %v897_v18  ;;  %v989_v37 = vrot.slane %v958_v38, 1  ;;  %v990_v61 = vrot.slane %v959_v31, 1  ;;  %v625_v41 = vmul.f32 %v1503_v13, %v1611_v59 }
  0xfa   : > { %v1107_v62 = vsel %vm1100_vm3, %v1803_v33, 0.0  ;;  %v1058_v58 = vrot.slane %v1027_v42, 2  ;;  %v1059_v40 = vrot.slane %v1028_v36, 2  ;;  %v845_v51 = vadd.f32 %v821_v25, %v768_v55 }
  0xfb   : > { %1108 = vadd.xlane.f32.xlu0 %v1107_v62  ;;  %v603_v24 = vmul.f32 %v1516_v30, %v1611_v59  ;;  %v694_v1 = vmul.f32 %v1529_v47, %v1611_v59  ;;  %v695_v43 = vmul.f32 %v1529_v47, %v1614_v60  ;;  %v991_v5 = vsel %vm647_vm1, %v989_v37, %v990_v61 }
  0xfc   : > { %v1060_v7 = vsel %vm716_vm2, %v1058_v58, %v1059_v40  ;;  %v657_v11 = vrot.slane %v625_v41, 1  ;;  %v786_v8 = vmul.f32 %v1542_v53, %v1566_v63  ;;  %v922_v12 = vadd.f32 %v898_v54, %v845_v51 }
  0xfd   : > { %v726_v46 = vrot.slane %v694_v1, 2  ;;  %v727_v14 = vrot.slane %v695_v43, 2  ;;  %v787_v56 = vmul.f32 %v1542_v53, %v1561_v57  ;;  %v863_v60 = vmul.f32 %v1644_v35, %v1566_v63 }
  0xfe   : > { %v659_v59 = vsel %vm647_vm1, %v657_v11, %v658_v28  ;;  %v822_v27 = vrot.slane %v786_v8, 1  ;;  %v864_v19 = vmul.f32 %v1644_v35, %v1561_v57  ;;  %v942_v22 = vadd.f32 %v935_v16, %v922_v12 }
  0xff   : > { %v679_v26 = vadd.f32 %v659_v59, %v603_v24  ;;  %v761_v18 = vmul.f32 %v1629_v9, %v1566_v63  ;;  %v823_v29 = vrot.slane %v787_v56, 1  ;;  %v728_v38 = vsel %vm716_vm2, %v726_v46, %v727_v14 }
 0x100   : > { %v899_v31 = vrot.slane %v863_v60, 2  ;;  %v900_v25 = vrot.slane %v864_v19, 2  ;;  %v960_v3 = vmul.f32 %v1649_v15, %v1652_v17  ;;  %v1011_v28 = vadd.f32 %v991_v5, %v942_v22 }
 0x101   : > { %v748_v42 = vadd.f32 %v728_v38, %v679_v26  ;;  %v936_v36 = vmul.f32 %v1676_v45, %v1652_v17  ;;  %v961_v16 = vmul.f32 %v1649_v15, %v1622_v4  ;;  %v824_v55 = vsel %vm647_vm1, %v822_v27, %v823_v29 }
 0x102   : > { %v992_v54 = vrot.slane %v960_v3, 1  ;;  %v1029_v37 = vmul.f32 %v1660_v23, %v1652_v17  ;;  %v1030_v61 = vmul.f32 %v1660_v23, %v1622_v4  ;;  %v1080_v62 = vadd.f32 %v1060_v7, %v1011_v28 }
 0x103   : > { %v769_v58 = vadd.f32 %v761_v18, %v748_v42  ;;  %v901_v40 = vsel %vm716_vm2, %v899_v31, %v900_v25  ;;  %v993_v41 = vrot.slane %v961_v16, 1  ;;  %v627_v1 = vmul.f32 %v1503_v13, %v1566_v63 }
 0x104   : > { %v1061_v51 = vrot.slane %v1029_v37, 2  ;;  %v1062_v24 = vrot.slane %v1030_v61, 2  ;;  %v696_v43 = vmul.f32 %v1529_v47, %v1566_v63  ;;  %v1854_v5 = vadd.f32 %v1712_v50, %v1080_v62 }
 0x105   : > { %v846_v11 = vadd.f32 %v824_v55, %v769_v58  ;;  %v604_v8 = vmul.f32 %v1516_v30, %v1566_v63  ;;  %v697_v7 = vmul.f32 %v1529_v47, %v1561_v57  ;;  %v994_v12 = vsel %vm647_vm1, %v992_v54, %v993_v41 }
 0x106   : > { %v1063_v46 = vsel %vm716_vm2, %v1061_v51, %v1062_v24  ;;  %v660_v14 = vrot.slane %v627_v1, 1  ;;  %v729_v56 = vrot.slane %v696_v43, 2  ;;  %v1110_v59 = vsel %vm1100_vm3, %v1854_v5, 0.0 }
 0x107   : > { %v923_v27 = vadd.f32 %v901_v40, %v846_v11  ;;  %v730_v60 = vrot.slane %v697_v7, 2  ;;  %v788_v19 = vmul.f32 %v1542_v53, %v1652_v17  ;;  %1111 = vadd.xlane.f32.xlu0 %v1110_v59  ;;  %v789_v57 = vmul.f32 %v1542_v53, %v1622_v4 }
 0x108   : > { %v662_v63 = vsel %vm647_vm1, %v660_v14, %v661_v6  ;;  %v865_v22 = vmul.f32 %v1644_v35, %v1652_v17  ;;  %v866_v26 = vmul.f32 %v1644_v35, %v1622_v4  ;;  %v762_v38 = vmul.f32 %v1629_v9, %v1652_v17 }
 0x109   : > { %v943_v18 = vadd.f32 %v936_v36, %v923_v27  ;;  %v680_v29 = vadd.f32 %v662_v63, %v604_v8  ;;  %v825_v31 = vrot.slane %v788_v19, 1  ;;  %v731_v25 = vsel %vm716_vm2, %v729_v56, %v730_v60 }
 0x10a   : > { %v826_v0 = vrot.slane %v789_v57, 1  ;;  %v902_v3 = vrot.slane %v865_v22, 2  ;;  %v903_v6 = vrot.slane %v866_v26, 2  ;;  %v962_v16 = vmul.f32 %v1649_v15, %v1598_v32 }
 0x10b   : > { %v1012_v28 = vadd.f32 %v994_v12, %v943_v18  ;;  %v749_v42 = vadd.f32 %v731_v25, %v680_v29  ;;  %v963_v55 = vmul.f32 %v1649_v15, %v1590_v21  ;;  %v1885_v54 = vmul.f32 %v1676_v45, %v1598_v32 }
 0x10c   : > { %v827_v36 = vsel %vm647_vm1, %v825_v31, %v826_v0  ;;  %v1031_v37 = vmul.f32 %v1660_v23, %v1598_v32  ;;  %v1032_v61 = vmul.f32 %v1660_v23, %v1590_v21  ;;  %v995_v40 = vrot.slane %v962_v16, 1 }
 0x10d   : > { %v1081_v62 = vadd.f32 %v1063_v46, %v1012_v28  ;;  %v770_v58 = vadd.f32 %v762_v38, %v749_v42  ;;  %v996_v41 = vrot.slane %v963_v55, 1  ;;  %v904_v51 = vsel %vm716_vm2, %v902_v3, %v903_v6 }
 0x10e   : > { %v1064_v24 = vrot.slane %v1031_v37, 2  ;;  %v1065_v1 = vrot.slane %v1032_v61, 2  ;;  %v629_v43 = vmul.f32 %v1503_v13, %v1652_v17  ;;  %v605_v7 = vmul.f32 %v1516_v30, %v1652_v17 }
 0x10f   : > { %v1895_v11 = vadd.f32 %v1712_v50, %v1081_v62  ;;  %v847_v8 = vadd.f32 %v827_v36, %v770_v58  ;;  %v698_v12 = vmul.f32 %v1529_v47, %v1652_v17  ;;  %v1902_v46 = vsel %vm647_vm1, %v995_v40, %v996_v41 }
 0x110   : > { %v1905_v14 = vsel %vm716_vm2, %v1064_v24, %v1065_v1  ;;  %v663_v56 = vrot.slane %v629_v43, 1  ;;  %v699_v59 = vmul.f32 %v1529_v47, %v1622_v4  ;;  %v790_v63 = vmul.f32 %v1542_v53, %v1598_v32 }
 0x111   : > { %v1113_v27 = vsel %vm1100_vm3, %v1895_v11, 0.0  ;;  %v924_v60 = vadd.f32 %v904_v51, %v847_v8  ;;  %v732_v19 = vrot.slane %v698_v12, 2  ;;  %v791_v22 = vmul.f32 %v1542_v53, %v1590_v21 }
 0x112   : > { %1114 = vadd.xlane.f32.xlu1 %v1113_v27  ;;  %v665_v17 = vsel %vm647_vm1, %v663_v56, %v664_v34  ;;  %v733_v57 = vrot.slane %v699_v59, 2  ;;  %v867_v4 = vmul.f32 %v1644_v35, %v1598_v32  ;;  %v828_v29 = vrot.slane %v790_v63, 1 }
 0x113   : > { %v944_v26 = vadd.f32 %v1885_v54, %v924_v60  ;;  %v681_v18 = vadd.f32 %v665_v17, %v605_v7  ;;  %v868_v38 = vmul.f32 %v1644_v35, %v1590_v21  ;;  %v763_v10 = vmul.f32 %v1629_v9, %v1598_v32 }
 0x114   : > { %v734_v31 = vsel %vm716_vm2, %v732_v19, %v733_v57  ;;  %v829_v34 = vrot.slane %v791_v22, 1  ;;  %v905_v25 = vrot.slane %v867_v4, 2  ;;  %v964_v28 = vmul.f32 %v1649_v15, %v1704_v48 }
 0x115   : > { %v1013_v0 = vadd.f32 %v1902_v46, %v944_v26  ;;  %v750_v3 = vadd.f32 %v734_v31, %v681_v18  ;;  %v906_v6 = vrot.slane %v868_v38, 2  ;;  %v938_v42 = vmul.f32 %v1676_v45, %v1704_v48 }
 0x116   : > { %v965_v16 = vmul.f32 %v1649_v15, %v1707_v49  ;;  %v1033_v55 = vmul.f32 %v1660_v23, %v1704_v48  ;;  %v1034_v36 = vmul.f32 %v1660_v23, %v1707_v49  ;;  %v830_v62 = vsel %vm647_vm1, %v828_v29, %v829_v34 }
 0x117   : > { %v1082_v37 = vadd.f32 %v1905_v14, %v1013_v0  ;;  %v771_v61 = vadd.f32 %v763_v10, %v750_v3  ;;  %v998_v58 = vrot.slane %v964_v28, 1  ;;  %v907_v40 = vsel %vm716_vm2, %v905_v25, %v906_v6 }
 0x118   : > { %v999_v41 = vrot.slane %v965_v16, 1  ;;  %v1067_v51 = vrot.slane %v1033_v55, 2  ;;  %v1068_v45 = vrot.slane %v1034_v36, 2  ;;  %v631_v1 = vmul.f32 %v1503_v13, %v1598_v32 }
 0x119   : > { %v1941_v24 = vadd.f32 %v1712_v50, %v1082_v37  ;;  %v848_v15 = vadd.f32 %v830_v62, %v771_v61  ;;  %v700_v23 = vmul.f32 %v1529_v47, %v1598_v32  ;;  %v606_v7 = vmul.f32 %v1516_v30, %v1598_v32 }
 0x11a   : > { %v1000_v43 = vsel %vm647_vm1, %v998_v58, %v999_v41  ;;  %v1069_v8 = vsel %vm716_vm2, %v1067_v51, %v1068_v45  ;;  %v701_v12 = vmul.f32 %v1529_v47, %v1590_v21  ;;  %v666_v27 = vrot.slane %v631_v1, 1 }
 0x11b   : > { %v1116_v56 = vsel %vm1100_vm3, %v1941_v24, 0.0  ;;  %v925_v59 = vadd.f32 %v907_v40, %v848_v15  ;;  %v735_v60 = vrot.slane %v700_v23, 2  ;;  %v792_v19 = vmul.f32 %v1542_v53, %v1704_v48 }
 0x11c   : > { %1117 = vadd.xlane.f32.xlu0 %v1116_v56  ;;  %v736_v13 = vrot.slane %v701_v12, 2  ;;  %v832_v63 = vrot.slane %v1721_v52, 1  ;;  %v869_v17 = vmul.f32 %v1644_v35, %v1704_v48  ;;  %v668_v47 = vsel %vm647_vm1, %v666_v27, %v667_v44 }
 0x11d   : > { %v945_v30 = vadd.f32 %v938_v42, %v925_v59  ;;  %v870_v21 = vmul.f32 %v1644_v35, %v1707_v49  ;;  %v682_v32 = vadd.f32 %v668_v47, %v606_v7  ;;  %v764_v57 = vmul.f32 %v1629_v9, %v1704_v48 }
 0x11e   : > { %v831_v22 = vrot.slane %v792_v19, 1  ;;  %v908_v4 = vrot.slane %v869_v17, 2  ;;  %v737_v52 = vsel %vm716_vm2, %v735_v60, %v736_v13 }
 0x11f   : > { %v1014_v53 = vadd.f32 %v1000_v43, %v945_v30  ;;  %v909_v26 = vrot.slane %v870_v21, 2  ;;  %v751_v18 = vadd.f32 %v737_v52, %v682_v32 }
 0x120   : > { %v833_v29 = vsel %vm647_vm1, %v831_v22, %v832_v63 }
 0x121   : > { %v1083_v38 = vadd.f32 %v1069_v8, %v1014_v53  ;;  %v910_v20 = vsel %vm716_vm2, %v908_v4, %v909_v26  ;;  %v772_v44 = vadd.f32 %v764_v57, %v751_v18  ;;  %v2014_v4 = vld [vmem:[%s2073_s5] ss:$0 sm:$0xff] }
 0x122   : > { %v2019_v26 = vld [vmem:[%s2074_s6] ss:$0 sm:$0xff] }
 0x123   : > { %v1098_v31 = vadd.f32 %v1712_v50, %v1083_v38  ;;  %v849_v35 = vadd.f32 %v833_v29, %v772_v44 }
 0x125   : > { %v1119_v49 = vsel %vm1100_vm3, %v1098_v31, 0.0  ;;  %v926_v9 = vadd.f32 %v910_v20, %v849_v35 }
 0x126   : > { %1120 = vadd.xlane.f32.xlu1 %v1119_v49 }
 0x127   : > { %v946_v48 = vadd.f32 %v1885_v54, %v926_v9 }
 0x129   : > { %v1015_v10 = vadd.f32 %v1902_v46, %v946_v48 }
 0x12b   : > { %v1084_v34 = vadd.f32 %v1905_v14, %v1015_v10 }
 0x12d   : > { %v1099_v25 = vadd.f32 %v1712_v50, %v1084_v34 }
 0x12f   : > { %v1122_v0 = vsel %vm1100_vm3, %v1099_v25, 0.0 }
 0x130   : > { %1123 = vadd.xlane.f32.xlu0 %v1122_v0 }
 0x176   : > { %v1103_v3 = vpop.xlane.xlu0 %1102 }
 0x177   : > { %v1126_v6 = vmul.f32 0.03125, %v1103_v3 }
 0x179   : > { %v1134_v28 = vsub.f32 %v1729_v2, %v1126_v6 }
 0x17b   : > { %v1142_v42 = vmul.f32 %v1134_v28, %v1134_v28 }
 0x17d   : > { %v1150_v16 = vsel %vm1100_vm3, %v1142_v42, 0.0 }
 0x17e   : > { %1151 = vadd.xlane.f32.xlu1 %v1150_v16 }
 0x182   : > { %v1106_v55 = vpop.xlane.xlu1 %1105 }
 0x183   : > { %v1127_v36 = vmul.f32 0.03125, %v1106_v55 }
 0x185   : > { %v1135_v54 = vsub.f32 %v1778_v39, %v1127_v36 }
 0x187   : > { %v1143_v46 = vmul.f32 %v1135_v54, %v1135_v54 }
 0x188   : > { %v1109_v37 = vpop.xlane.xlu0 %1108 }
 0x189   : > { %v1128_v14 = vmul.f32 0.03125, %v1109_v37  ;;  %v1153_v50 = vsel %vm1100_vm3, %v1143_v46, 0.0 }
 0x18a   : > { %1154 = vadd.xlane.f32.xlu0 %v1153_v50 }
 0x18b   : > { %v1136_v61 = vsub.f32 %v1803_v33, %v1128_v14 }
 0x18d   : > { %v1144_v62 = vmul.f32 %v1136_v61, %v1136_v61 }
 0x18f   : > { %v1156_v58 = vsel %vm1100_vm3, %v1144_v62, 0.0 }
 0x190   : > { %1157 = vadd.xlane.f32.xlu1 %v1156_v58 }
 0x194   : > { %v1112_v2 = vpop.xlane.xlu0 %1111 }
 0x195   : > { %v1129_v40 = vmul.f32 0.03125, %v1112_v2 }
 0x197   : > { %v1984_v41 = vsub.f32 %v1854_v5, %v1129_v40 }
 0x199   : > { %v1145_v39 = vmul.f32 %v1984_v41, %v1984_v41 }
 0x19b   : > { %v1159_v51 = vsel %vm1100_vm3, %v1145_v39, 0.0 }
 0x19c   : > { %1160 = vadd.xlane.f32.xlu0 %v1159_v51 }
 0x19f   : > { %v1115_v45 = vpop.xlane.xlu1 %1114 }
 0x1a0   : > { %v1130_v15 = vmul.f32 0.03125, %v1115_v45 }
 0x1a2   : > { %v1990_v1 = vsub.f32 %v1895_v11, %v1130_v15 }
 0x1a4   : > { %v1146_v33 = vmul.f32 %v1990_v1, %v1990_v1 }
 0x1a6   : > { %v1162_v23 = vsel %vm1100_vm3, %v1146_v33, 0.0 }
 0x1a7   : > { %1163 = vadd.xlane.f32.xlu1 %v1162_v23 }
 0x1a9   : > { %v1118_v43 = vpop.xlane.xlu0 %1117 }
 0x1aa   : > { %v1131_v5 = vmul.f32 0.03125, %v1118_v43 }
 0x1ac   : > { %v1996_v8 = vsub.f32 %v1941_v24, %v1131_v5 }
 0x1ae   : > { %v1147_v7 = vmul.f32 %v1996_v8, %v1996_v8 }
 0x1b0   : > { %v1165_v12 = vsel %vm1100_vm3, %v1147_v7, 0.0 }
 0x1b1   : > { %1166 = vadd.xlane.f32.xlu0 %v1165_v12 }
 0x1b3   : > { %v1121_v56 = vpop.xlane.xlu1 %1120 }
 0x1b4   : > { %v1132_v11 = vmul.f32 0.03125, %v1121_v56 }
 0x1b6   : > { %v2001_v59 = vsub.f32 %v1098_v31, %v1132_v11 }
 0x1b8   : > { %v1148_v27 = vmul.f32 %v2001_v59, %v2001_v59 }
 0x1ba   : > { %v1168_v60 = vsel %vm1100_vm3, %v1148_v27, 0.0 }
 0x1bb   : > { %1169 = vadd.xlane.f32.xlu1 %v1168_v60 }
 0x1bd   : > { %v1124_v13 = vpop.xlane.xlu0 %1123 }
 0x1be   : > { %v1133_v19 = vmul.f32 0.03125, %v1124_v13 }
 0x1c0   : > { %v2006_v24 = vsub.f32 %v1099_v25, %v1133_v19 }
 0x1c2   : > { %v1149_v63 = vmul.f32 %v2006_v24, %v2006_v24 }
 0x1c4   : > { %v1171_v17 = vsel %vm1100_vm3, %v1149_v63, 0.0 }
 0x1c5   : > { %1172 = vadd.xlane.f32.xlu0 %v1171_v17 }
 0x20b   : > { %v1152_v30 = vpop.xlane.xlu1 %1151 }
 0x20c   : > { %v1174_v47 = vmul.f32 0.03125, %v1152_v30 }
 0x20e   : > { %v1182_v21 = vadd.f32 1e-05, %v1174_v47 }
 0x210   : > { %1354 = vrsqrt.f32 %v1182_v21 }
 0x217   : > { %v1155_v32 = vpop.xlane.xlu0 %1154 }
 0x218   : > { %v1175_v57 = vmul.f32 0.03125, %v1155_v32 }
 0x21a   : > { %v1355_v22 = vpop.eup %1354  ;;  %v1183_v53 = vadd.f32 1e-05, %v1175_v57 }
 0x21b   : > { %v1198_v52 = vmul.f32 %v1355_v22, %v1134_v28 }
 0x21c   : > { %1356 = vrsqrt.f32 %v1183_v53 }
 0x21d   : > { %v1213_v18 = vmul.f32 %v2014_v4, %v1198_v52  ;;  %v1158_v29 = vpop.xlane.xlu1 %1157 }
 0x21e   : > { %v1176_v38 = vmul.f32 0.03125, %v1158_v29 }
 0x21f   : > { %v1228_v20 = vadd.f32 %v2019_v26, %v1213_v18 }
 0x220   : > { %v1184_v44 = vadd.f32 1e-05, %v1176_v38 }
 0x221   : > { %1236 = vst.msk [vmem:[%s2027_s23] sm:$0xff] %vm1100_vm3, %v1228_v20 }
 0x222   : > { %1358 = vrsqrt.f32 %v1184_v44 }
 0x226   : > { %v1357_v31 = vpop.eup %1356 }
 0x227   : > { %v1199_v35 = vmul.f32 %v1357_v31, %v1135_v54 }
 0x229   : > { %v1214_v49 = vmul.f32 %v2014_v4, %v1199_v35  ;;  %v1161_v9 = vpop.xlane.xlu0 %1160 }
 0x22a   : > { %v1177_v10 = vmul.f32 0.03125, %v1161_v9 }
 0x22b   : > { %v1229_v48 = vadd.f32 %v2019_v26, %v1214_v49 }
 0x22c   : > { %v1359_v34 = vpop.eup %1358  ;;  %v1185_v0 = vadd.f32 1e-05, %v1177_v10 }
 0x22d   : > { %v1200_v25 = vmul.f32 %v1359_v34, %v1136_v61  ;;  %1237 = vst.msk [vmem:[%s2027_s23 + $0x8] sm:$0xff] %vm1100_vm3, %v1229_v48 }
 0x22e   : > { %1360 = vrsqrt.f32 %v1185_v0 }
 0x22f   : > { %v1215_v3 = vmul.f32 %v2014_v4, %v1200_v25 }
 0x231   : > { %v1230_v6 = vadd.f32 %v2019_v26, %v1215_v3 }
 0x233   : > { %1238 = vst.msk [vmem:[%s2027_s23 + $0x10] sm:$0xff] %vm1100_vm3, %v1230_v6 }
 0x234   : > { %v1164_v28 = vpop.xlane.xlu1 %1163 }
 0x235   : > { %v1178_v42 = vmul.f32 0.03125, %v1164_v28 }
 0x237   : > { %v1186_v16 = vadd.f32 1e-05, %v1178_v42 }
 0x238   : > { %v1361_v55 = vpop.eup %1360 }
 0x239   : > { %1362 = vrsqrt.f32 %v1186_v16  ;;  %v1201_v36 = vmul.f32 %v1361_v55, %v1984_v41 }
 0x23b   : > { %v1216_v54 = vmul.f32 %v2014_v4, %v1201_v36 }
 0x23d   : > { %v1231_v46 = vadd.f32 %v2019_v26, %v1216_v54 }
 0x23e   : > { %v1167_v37 = vpop.xlane.xlu0 %1166 }
 0x23f   : > { %v1179_v14 = vmul.f32 0.03125, %v1167_v37  ;;  %1239 = vst.msk [vmem:[%s2027_s23 + $0x18] sm:$0xff] %vm1100_vm3, %v1231_v46 }
 0x241   : > { %v1187_v50 = vadd.f32 1e-05, %v1179_v14 }
 0x243   : > { %v1363_v61 = vpop.eup %1362  ;;  %1364 = vrsqrt.f32 %v1187_v50 }
 0x244   : > { %v1202_v62 = vmul.f32 %v1363_v61, %v1990_v1 }
 0x246   : > { %v1217_v58 = vmul.f32 %v2014_v4, %v1202_v62 }
 0x248   : > { %v1232_v2 = vadd.f32 %v2019_v26, %v1217_v58  ;;  %v1170_v40 = vpop.xlane.xlu1 %1169 }
 0x249   : > { %v1180_v41 = vmul.f32 0.03125, %v1170_v40 }
 0x24a   : > { %1240 = vst.msk [vmem:[%s2027_s23 + $0x20] sm:$0xff] %vm1100_vm3, %v1232_v2 }
 0x24b   : > { %v1188_v39 = vadd.f32 1e-05, %v1180_v41 }
 0x24d   : > { %v1365_v51 = vpop.eup %1364  ;;  %1366 = vrsqrt.f32 %v1188_v39 }
 0x24e   : > { %v1203_v45 = vmul.f32 %v1365_v51, %v1996_v8 }
 0x250   : > { %v1218_v15 = vmul.f32 %v2014_v4, %v1203_v45 }
 0x252   : > { %v1233_v33 = vadd.f32 %v2019_v26, %v1218_v15  ;;  %v1173_v1 = vpop.xlane.xlu0 %1172 }
 0x253   : > { %v1181_v23 = vmul.f32 0.03125, %v1173_v1 }
 0x254   : > { %1241 = vst.msk [vmem:[%s2027_s23 + $0x28] sm:$0xff] %vm1100_vm3, %v1233_v33 }
 0x255   : > { %v1189_v43 = vadd.f32 1e-05, %v1181_v23 }
 0x257   : > { %v1367_v5 = vpop.eup %1366  ;;  %1368 = vrsqrt.f32 %v1189_v43 }
 0x258   : > { %v1204_v7 = vmul.f32 %v1367_v5, %v2001_v59 }
 0x25a   : > { %v1219_v12 = vmul.f32 %v2014_v4, %v1204_v7 }
 0x25c   : > { %v1234_v56 = vadd.f32 %v2019_v26, %v1219_v12 }
 0x25e   : > { %1242 = vst.msk [vmem:[%s2027_s23 + $0x30] sm:$0xff] %vm1100_vm3, %v1234_v56 }
 0x261   : > { %v1369_v8 = vpop.eup %1368 }
 0x262   : > { %v1205_v11 = vmul.f32 %v1369_v8, %v2006_v24 }
 0x264   : > { %v1220_v27 = vmul.f32 %v2014_v4, %v1205_v11 }
 0x266   : > { %v1235_v60 = vadd.f32 %v2019_v26, %v1220_v27 }
 0x268   : > { %1243 = vst.msk [vmem:[%s2027_s23 + $0x38] sm:$0xff] %vm1100_vm3, %v1235_v60 }
 0x269 PF: > { %s17_s24 = sadd.s32 1, %s1376_s24  }
 0x26a   : > { %p14_p4 = scmp.ge.s32.totalorder %s17_s24, 4  }
 0x26c   :  { %16 = sbr.rel (!%p14_p4) target bundleno = 1 (0x1), region = 78 }

// kernel: patch_embed_forward.2
= control target key start
LH: loop header
LB: loop body
LE: loop exit
PB: predicated region body
PF: predicated region fallthrough
CT: control target
= control target key end

     0   :  { %8 = vsyncpa [#allocation3], 0  ;;  %s4356_s0 = inlined_call_operand.vmem [shape: f32[2,16,11,11], index: 0, kind: input, shape index: {}]   ;;  %s4357_s1 = inlined_call_operand.vmem [shape: f32[196], index: 1, kind: input, shape index: {}]   ;;  %s4358_s2 = inlined_call_operand.vmem [shape: f32[4], index: 2, kind: input, shape index: {}]   ;;  %s4359_s3 = inlined_call_operand.vmem [shape: f32[2,4,8,8], index: 3, kind: output, shape index: {}]  }
   0x1   :  { %9 = vsyncpa [#allocation5], 0  ;;  %s2836_s12 = smov 0  }
   0x2 LB: > { %s2842_s13 = sadd.s32 4294967295, %s2809_s12   ;;  %p2468_p0 = scmp.ge.s32.totalorder %s2809_s12, 1  ;;  %s2809_s12 = sphi %s2836_s12, %s15_s12  }
   0x3   : > { %p114_p1 = scmp.lt.s32.totalorder %s2809_s12, 3  ;;  %s127_s16 = sshll.u32 %s4357_s1, 4  ;;  %s128_s16 = int_to_ptr.vmem [resolvable:$true] %s127_s16 }
   0x4   : > { %p4360_p3 = scmp.eq.s32.totalorder %s2842_s13, 0  ;;  %s138_s20 = sshll.u32 %s4358_s2, 4  ;;  %s139_s20 = int_to_ptr.vmem [resolvable:$true] %s138_s20 }
   0x5   : > { %p2849_p2 = pnand %p2468_p0, %p114_p1  ;;  %s2765_s22 = scalar_lea.vmem %s128_s16, 32 }
   0x6   : > { %p2766_p6 = scmp.ne.s32.totalorder %s128_s16, %s2765_s22  ;;  %p2773_p10 = scmp.lt.s32.totalorder %s128_s16, %s128_s16 }
   0x7   : > { %s4362_s17 = scalar_select %p2849_p2, 1, 0 }
   0x8   : > { %p2719_p4 = pneg %p2849_p2  ;;  %p2774_p11 = scmp.lt.s32.totalorder %s2765_s22, %s2765_s22 }
   0xa   : > { %p2861_p5 = pnand %p4360_p3, %p2719_p4  ;;  %p2775_p12 = por %p2774_p11, %p2773_p10 }
   0xc   : > { %p2767_p7 = pneg %p2861_p5 }
   0xe   : > { %p2768_p8 = pnand %p2767_p7, %p2766_p6 }
  0x10   : > { %p2769_p9 = pneg %p2768_p8 }
  0x12   : > { %p2776_p13 = pnand %p2775_p12, %p2769_p9 }
  0x14   : > { %2779 = shalt.err (!%p2776_p13)
}
  0x15   : > { %s2811_s23 = smov [#allocation2]   ;;  %s2780_s24 = scalar_lea.vmem %s139_s20, 16 }
  0x16   : > { %2722 = dma.vmem_to_smem (!%p2861_p5), %s128_s16, 32, %s2811_s23, [#allocation3]  }
  0x17   : > { %p2781_p0 = scmp.ne.s32.totalorder %s139_s20, %s2780_s24  ;;  %p2788_p3 = scmp.lt.s32.totalorder %s139_s20, %s139_s20 }
  0x18   : > { %p2789_p2 = scmp.lt.s32.totalorder %s2780_s24, %s2780_s24 }
  0x19   : > { %p2783_p1 = pnand %p2781_p0, %p2767_p7 }
  0x1a   : > { %p2790_p6 = por %p2789_p2, %p2788_p3 }
  0x1b   : > { %p2784_p4 = pneg %p2783_p1 }
  0x1d   : > { %p2791_p8 = pnand %p2790_p6, %p2784_p4 }
  0x1f   : > { %2794 = shalt.err (!%p2791_p8)
}
  0x20   : > { %s2812_s25 = smov [#allocation4]   ;;  %p4364_p9 = scmp.ne.s32.totalorder %s4362_s17, 0 }
  0x21   : > { %2725 = dma.vmem_to_smem (!%p2861_p5), %s139_s20, 16, %s2812_s25, [#allocation5]  }
  0x22   : > { %159 = sbr.rel (%p4364_p9) target bundleno = 454 (0x1c6), region = 32  ;;  %p4365_p10 = scmp.eq.s32.totalorder (!%p4364_p9), %s2842_s13, 0 }
  0x29   : > { %2800 = dma.done.wait (%p4365_p10), [#allocation3], 32   ;;  %p4366_p11 = pmov %p4365_p10 }
  0x2a   : > { %p4367_p7 = pmov %p4365_p10 }
  0x2b   : > { %2802 = vsyncadd (%p4366_p11), [#allocation3], 4294967264 }
  0x2c   : > { %2804 = dma.done.wait (%p4367_p7), [#allocation5], 16   ;;  %p4368_p2 = pmov %p4367_p7 }
  0x2e   : > { %2806 = vsyncadd (%p4368_p2), [#allocation5], 4294967280 }
  0x2f   : > { %169 = sfence }
  0x30   : > { %p188_p3 = scmp.lt.s32.totalorder %s2842_s13, 1  ;;  %s2481_s26 = sld [smem:[#allocation2 + $0x6]]  ;;  %vm234_vm0 = vcmask 1046528   ;;  %vm285_vm1 = vcmask 1045504   ;;  %vm336_vm2 = vcmask 1044480   ;;  %vm2384_vm3 = vcmask 64512  }
  0x31   : > { %s2479_s27 = sld [smem:[#allocation2 + $0x2]]  ;;  %s2483_s28 = sld [smem:[#allocation2 + $0x10]] }
  0x32   : > { %s4370_s13 = smov (!%p188_p3, %s2842_s13), 1  ;;  %s2480_s30 = sld [smem:[#allocation2 + $0x4]] }
  0x33   : > { %s2709_s29 = sshll.u32 %s4370_s13, 8  ;;  %s2485_s7 = sld [smem:[#allocation2 + $0x14]] }
  0x34   : > { %s2889_s6 = scalar_lea.vmem %s4356_s0, %s2709_s29  ;;  %s2898_s8 = sld [smem:[#allocation2 + $0x12]] }
  0x35   : > { %v2892_v0 = vld [vmem:[%s2889_s6] sm:$0xff]  ;;  %v2896_v4 = vld [vmem:[%s2889_s6 + $0x8] sm:$0x7]  ;;  %s2900_s9 = sld [smem:[#allocation2 + $0x20]]  ;;  %s2903_s10 = sld [smem:[#allocation2 + $0x1e]] }
  0x36   : > { %v221_v1 = vstv %s2481_s26  ;;  %s2813_s11 = smov 125   ;;  %s2906_s14 = sld [smem:[#allocation2 + $0x2c]]  ;;  %v2965_v56 = vld [vmem:[%s2889_s6 + $0x40] sm:$0xff]  ;;  %v2968_v57 = vld [vmem:[%s2889_s6 + $0x48] sm:$0x7] }
  0x37   : > { %v222_v2 = vmul.f32 %v221_v1, %v2892_v0  ;;  %v205_v3 = vstv %s2479_s27  ;;  %v241_v6 = vstv %s2483_s28  ;;  %s2814_s15 = smov 127   ;;  %s2912_s16 = sld [smem:[#allocation2 + $0x22]] }
  0x38   : > { %v206_v5 = vmul.f32 %v205_v3, %v2892_v0  ;;  %v242_v7 = vmul.f32 %v241_v6, %v2892_v0  ;;  %v243_v8 = vmul.f32 %v241_v6, %v2896_v4  ;;  %v213_v9 = vstv %s2480_s30  ;;  %s2914_s17 = sld [smem:[#allocation2 + $0x30]]  ;;  %s2920_s18 = sld [smem:[#allocation2 + $0x2e]] }
  0x39   : > { %224 = vrot.lane.b32.xlu1 %v222_v2, %s2813_s11  ;;  %v214_v10 = vmul.f32 %v213_v9, %v2892_v0  ;;  %v267_v13 = vstv %s2485_s7  ;;  %s2815_s19 = smov 126   ;;  %s2934_s20 = sld [smem:[#allocation2 + $0x13]] }
  0x3a   : > { %208 = vrot.lane.b32.xlu0 %v206_v5, %s2814_s15  ;;  %v246_v11 = vrot.slane %v242_v7, 1  ;;  %v247_v12 = vrot.slane %v243_v8, 1  ;;  %v268_v14 = vmul.f32 %v267_v13, %v2892_v0  ;;  %v269_v15 = vmul.f32 %v267_v13, %v2896_v4  ;;  %s2939_s21 = sld [smem:[#allocation2 + $0x5]]  ;;  %s2941_s22 = sld [smem:[#allocation2 + $0x11]] }
  0x3b   : > { %v254_v16 = vstv %s2898_s8  ;;  %v305_v17 = vstv %s2900_s9  ;;  %v292_v25 = vstv %s2903_s10  ;;  %s2948_s23 = sld [smem:[#allocation2 + $0x3]]  ;;  %s2950_s24 = sld [smem:[#allocation2 + $0x21]] }
  0x3c   : > { %v248_v18 = vsel %vm234_vm0, %v246_v11, %v247_v12  ;;  %v255_v19 = vmul.f32 %v254_v16, %v2892_v0  ;;  %v256_v20 = vmul.f32 %v254_v16, %v2896_v4  ;;  %v306_v21 = vmul.f32 %v305_v17, %v2892_v0  ;;  %s2954_s25 = sld [smem:[#allocation2 + $0x1f]]  ;;  %s2975_s27 = sld [smem:[#allocation2 + $0x2d]] }
  0x3d   : > { %249 = vrot.lane.b32.xlu1 %v248_v18, %s2814_s15  ;;  %v272_v22 = vrot.slane %v268_v14, 1  ;;  %v273_v23 = vrot.slane %v269_v15, 1  ;;  %v307_v24 = vmul.f32 %v305_v17, %v2896_v4  ;;  %v293_v29 = vmul.f32 %v292_v25, %v2892_v0  ;;  %s2972_s26 = sld [smem:[#allocation2 + $0x2f]]  ;;  %s3003_s29 = sld [smem:[#allocation2 + $0xb]] }
  0x3e   : > { %216 = vrot.lane.b32.xlu0 %v214_v10, %s2815_s19  ;;  %v259_v26 = vrot.slane %v255_v19, 1  ;;  %v260_v27 = vrot.slane %v256_v20, 1  ;;  %v310_v28 = vrot.slane %v306_v21, 2  ;;  %v294_v32 = vmul.f32 %v292_v25, %v2896_v4  ;;  %s2999_s28 = sld [smem:[#allocation2 + $0x17]]  ;;  %s3008_s30 = sld [smem:[#allocation2 + $0x9]] }
  0x3f   : > { %v274_v30 = vsel %vm234_vm0, %v272_v22, %v273_v23  ;;  %v311_v31 = vrot.slane %v307_v24, 2  ;;  %v343_v33 = vstv %s2906_s14  ;;  %v297_v35 = vrot.slane %v293_v29, 2  ;;  %s3014_s4 = sld [smem:[#allocation2 + $0x1b]]  ;;  %s3016_s5 = sld [smem:[#allocation2 + $0x19]] }
  0x40   : > { %v261_v34 = vsel %vm234_vm0, %v259_v26, %v260_v27  ;;  %v344_v36 = vmul.f32 %v343_v33, %v2892_v0  ;;  %v345_v37 = vmul.f32 %v343_v33, %v2896_v4  ;;  %v298_v39 = vrot.slane %v294_v32, 2  ;;  %s3018_s7 = sld [smem:[#allocation2 + $0xd]]  ;;  %s3027_s8 = sld [smem:[#allocation2 + $0x27]] }
  0x41   : > { %275 = vrot.lane.b32.xlu1 %v274_v30, %s2813_s11  ;;  %v312_v38 = vsel %vm285_vm1, %v310_v28, %v311_v31  ;;  %v318_v40 = vstv %s2912_s16  ;;  %v369_v41 = vstv %s2914_s17  ;;  %v356_v49 = vstv %s2920_s18  ;;  %s3033_s9 = sld [smem:[#allocation2 + $0x25]]  ;;  %s3045_s10 = sld [smem:[#allocation2 + $0x29]] }
  0x42   : > { %262 = vrot.lane.b32.xlu0 %v261_v34, %s2815_s19  ;;  %v348_v42 = vrot.slane %v344_v36, 3  ;;  %v349_v43 = vrot.slane %v345_v37, 3  ;;  %v319_v44 = vmul.f32 %v318_v40, %v2892_v0  ;;  %v320_v45 = vmul.f32 %v318_v40, %v2896_v4  ;;  %v3025_v37 = vld [vmem:[%s2889_s6 + $0x88] sm:$0x7]  ;;  %s3058_s14 = sld [smem:[#allocation2 + $0x18]]  ;;  %s3062_s16 = sld [smem:[#allocation2 + $0xa]] }
  0x43   : > { %v299_v46 = vsel %vm285_vm1, %v297_v35, %v298_v39  ;;  %v370_v47 = vmul.f32 %v369_v41, %v2892_v0  ;;  %v371_v48 = vmul.f32 %v369_v41, %v2896_v4  ;;  %v357_v52 = vmul.f32 %v356_v49, %v2892_v0  ;;  %v3030_v41 = vld [vmem:[%s2889_s6 + $0x80] sm:$0xff]  ;;  %s3069_s17 = sld [smem:[#allocation2 + $0x26]]  ;;  %s3071_s18 = sld [smem:[#allocation2 + $0x1a]] }
  0x44   : > { %v323_v50 = vrot.slane %v319_v44, 2  ;;  %v324_v51 = vrot.slane %v320_v45, 2  ;;  %v358_v55 = vmul.f32 %v356_v49, %v2896_v4  ;;  %v350_v58 = vsel %vm336_vm2, %v348_v42, %v349_v43 }
  0x45   : > { %313 = vrot.lane.b32.xlu1 %v312_v38, %s2815_s19  ;;  %v374_v53 = vrot.slane %v370_v47, 3  ;;  %v375_v54 = vrot.slane %v371_v48, 3  ;;  %v361_v60 = vrot.slane %v357_v52, 3  ;;  %v429_v62 = vstv %s2934_s20  ;;  %s3077_s20 = sld [smem:[#allocation2 + $0xc]] }
  0x46   : > { %300 = vrot.lane.b32.xlu0 %v299_v46, %s2814_s15  ;;  %v325_v59 = vsel %vm285_vm1, %v323_v50, %v324_v51  ;;  %v362_v61 = vrot.slane %v358_v55, 3  ;;  %v397_v63 = vstv %s2939_s21  ;;  %v430_v1 = vmul.f32 %v2965_v56, %v429_v62  ;;  %s3086_s21 = sld [smem:[#allocation2 + $0x28]] }
  0x47   : > { %v431_v2 = vmul.f32 %v2968_v57, %v429_v62  ;;  %v416_v3 = vstv %s2941_s22  ;;  %v376_v5 = vsel %vm336_vm2, %v374_v53, %v375_v54  ;;  %v389_v6 = vstv %s2948_s23  ;;  %s3098_s22 = sld [smem:[#allocation2 + $0x33]] }
  0x48   : > { %v466_v7 = vstv %s2950_s24  ;;  %v363_v8 = vsel %vm336_vm2, %v361_v60, %v362_v61  ;;  %v417_v9 = vmul.f32 %v2965_v56, %v416_v3  ;;  %v418_v10 = vmul.f32 %v2968_v57, %v416_v3  ;;  %s3100_s23 = sld [smem:[#allocation2 + $0x43]]  ;;  %s3103_s24 = sld [smem:[#allocation2 + $0x41]] }
  0x49   : > { %351 = vrot.lane.b32.xlu1 %v350_v58, %s2814_s15  ;;  %v453_v11 = vstv %s2954_s25  ;;  %v398_v12 = vmul.f32 %v2965_v56, %v397_v63  ;;  %v390_v13 = vmul.f32 %v2965_v56, %v389_v6  ;;  %v434_v14 = vrot.slane %v430_v1, 1  ;;  %s3106_s25 = sld [smem:[#allocation2 + $0x37]] }
  0x4a   : > { %326 = vrot.lane.b32.xlu0 %v325_v59, %s2813_s11  ;;  %v435_v15 = vrot.slane %v431_v2, 1  ;;  %v467_v16 = vmul.f32 %v2965_v56, %v466_v7  ;;  %v468_v17 = vmul.f32 %v2968_v57, %v466_v7  ;;  %v454_v18 = vmul.f32 %v2965_v56, %v453_v11 }
  0x4b   : > { %v455_v19 = vmul.f32 %v2968_v57, %v453_v11  ;;  %v421_v20 = vrot.slane %v417_v9, 1  ;;  %v422_v21 = vrot.slane %v418_v10, 1  ;;  %v503_v22 = vstv %s2972_s26  ;;  %s3110_s26 = sld [smem:[#allocation2 + $0x4f]] }
  0x4c   : > { %v490_v23 = vstv %s2975_s27  ;;  %v436_v24 = vsel %vm234_vm0, %v434_v14, %v435_v15  ;;  %v471_v25 = vrot.slane %v467_v16, 2  ;;  %v472_v26 = vrot.slane %v468_v17, 2  ;;  %s3113_s27 = sld [smem:[#allocation2 + $0x35]] }
  0x4d   : > { %377 = vrot.lane.b32.xlu1 %v376_v5, %s2813_s11  ;;  %v458_v27 = vrot.slane %v454_v18, 2  ;;  %v459_v28 = vrot.slane %v455_v19, 2  ;;  %v504_v29 = vmul.f32 %v2965_v56, %v503_v22  ;;  %v423_v30 = vsel %vm234_vm0, %v421_v20, %v422_v21  ;;  %v2522_v21 = vld [vmem:[%s2889_s6 + $0xc0] sm:$0xff] }
  0x4e   : > { %364 = vrot.lane.b32.xlu0 %v363_v8, %s2815_s19  ;;  %v505_v31 = vmul.f32 %v2968_v57, %v503_v22  ;;  %v491_v32 = vmul.f32 %v2965_v56, %v490_v23  ;;  %v492_v33 = vmul.f32 %v2968_v57, %v490_v23  ;;  %v473_v34 = vsel %vm285_vm1, %v471_v25, %v472_v26  ;;  %v2523_v22 = vld [vmem:[%s2889_s6 + $0xc8] sm:$0x7] }
  0x4f   : > { %v460_v35 = vsel %vm285_vm1, %v458_v27, %v459_v28  ;;  %v508_v36 = vrot.slane %v504_v29, 3  ;;  %v558_v42 = vstv %s2999_s28  ;;  %v531_v43 = vstv %s3003_s29  ;;  %s3115_s28 = sld [smem:[#allocation2 + $0x45]]  ;;  %s3125_s29 = sld [smem:[#allocation2 + $0x53]] }
  0x50   : > { %v509_v38 = vrot.slane %v505_v31, 3  ;;  %v495_v39 = vrot.slane %v491_v32, 3  ;;  %v496_v40 = vrot.slane %v492_v33, 3  ;;  %v523_v44 = vstv %s3008_s30  ;;  %s3132_s30 = sld [smem:[#allocation2 + $0x51]] }
  0x51   : > { %400 = vrot.lane.b32.xlu1 %v398_v12, %s2815_s19  ;;  %v559_v45 = vmul.f32 %v3030_v41, %v558_v42  ;;  %v560_v46 = vmul.f32 %v3025_v37, %v558_v42  ;;  %v584_v49 = vstv %s3014_s4  ;;  %v571_v50 = vstv %s3016_s5  ;;  %s3142_s4 = sld [smem:[#allocation2 + $0x5f]]  ;;  %s3147_s5 = sld [smem:[#allocation2 + $0x5d]] }
  0x52   : > { %392 = vrot.lane.b32.xlu0 %v390_v13, %s2814_s15  ;;  %v510_v47 = vsel %vm336_vm2, %v508_v36, %v509_v38  ;;  %v497_v48 = vsel %vm336_vm2, %v495_v39, %v496_v40  ;;  %v532_v51 = vmul.f32 %v3030_v41, %v531_v43  ;;  %v524_v52 = vmul.f32 %v3030_v41, %v523_v44 }
  0x53   : > { %v539_v53 = vstv %s3018_s7  ;;  %v563_v54 = vrot.slane %v559_v45, 1  ;;  %v564_v55 = vrot.slane %v560_v46, 1  ;;  %v585_v58 = vmul.f32 %v3030_v41, %v584_v49  ;;  %s3160_s7 = sld [smem:[#allocation2 + $0x61]] }
  0x54   : > { %v621_v59 = vstv %s3027_s8  ;;  %v586_v60 = vmul.f32 %v3025_v37, %v584_v49  ;;  %v572_v61 = vmul.f32 %v3030_v41, %v571_v50  ;;  %v573_v62 = vmul.f32 %v3025_v37, %v571_v50  ;;  %s3172_s8 = sld [smem:[#allocation2 + $0x42]] }
  0x55   : > { %437 = vrot.lane.b32.xlu1 %v436_v24, %s2815_s19  ;;  %v608_v63 = vstv %s3033_s9  ;;  %v540_v1 = vmul.f32 %v3030_v41, %v539_v53  ;;  %v622_v2 = vmul.f32 %v3030_v41, %v621_v59  ;;  %v589_v3 = vrot.slane %v585_v58, 1  ;;  %v3118_v53 = vld [vmem:[%s2889_s6 + $0x18] sm:$0x7]  ;;  %s3179_s9 = sld [smem:[#allocation2 + $0x34]] }
  0x56   : > { %424 = vrot.lane.b32.xlu0 %v423_v30, %s2814_s15  ;;  %v623_v5 = vmul.f32 %v3025_v37, %v621_v59  ;;  %v609_v6 = vmul.f32 %v3030_v41, %v608_v63  ;;  %v610_v7 = vmul.f32 %v3025_v37, %v608_v63  ;;  %v565_v8 = vsel %vm234_vm0, %v563_v54, %v564_v55 }
  0x57   : > { %v590_v9 = vrot.slane %v586_v60, 1  ;;  %v576_v10 = vrot.slane %v572_v61, 1  ;;  %v577_v11 = vrot.slane %v573_v62, 1  ;;  %v634_v12 = vstv %s3045_s10  ;;  %v3129_v60 = vld [vmem:[%s2889_s6 + $0x10] sm:$0xff]  ;;  %s3181_s10 = sld [smem:[#allocation2 + $0x50]] }
  0x58   : > { %v626_v13 = vrot.slane %v622_v2, 2  ;;  %v627_v14 = vrot.slane %v623_v5, 2  ;;  %v613_v15 = vrot.slane %v609_v6, 2  ;;  %v614_v16 = vrot.slane %v610_v7, 2 }
  0x59   : > { %474 = vrot.lane.b32.xlu1 %v473_v34, %s2815_s19  ;;  %v591_v17 = vsel %vm234_vm0, %v589_v3, %v590_v9  ;;  %v578_v18 = vsel %vm234_vm0, %v576_v10, %v577_v11  ;;  %v635_v19 = vmul.f32 %v3030_v41, %v634_v12  ;;  %v636_v20 = vmul.f32 %v3025_v37, %v634_v12 }
  0x5a   : > { %461 = vrot.lane.b32.xlu0 %v460_v35, %s2814_s15  ;;  %v681_v23 = vstv %s3058_s14  ;;  %v654_v24 = vstv %s3062_s16  ;;  %v628_v25 = vsel %vm285_vm1, %v626_v13, %v627_v14  ;;  %v615_v26 = vsel %vm285_vm1, %v613_v15, %v614_v16  ;;  %s3187_s14 = sld [smem:[#allocation2 + $0x44]]  ;;  %s3190_s16 = sld [smem:[#allocation2 + $0x36]] }
  0x5b   : > { %v718_v27 = vstv %s3069_s17  ;;  %v694_v28 = vstv %s3071_s18  ;;  %v639_v29 = vrot.slane %v635_v19, 2  ;;  %v640_v30 = vrot.slane %v636_v20, 2  ;;  %s3195_s17 = sld [smem:[#allocation2 + $0x5e]]  ;;  %s3202_s18 = sld [smem:[#allocation2 + $0x52]] }
  0x5c   : > { %v682_v31 = vmul.f32 %v2522_v21, %v681_v23  ;;  %v683_v32 = vmul.f32 %v2523_v22, %v681_v23  ;;  %v655_v33 = vmul.f32 %v2522_v21, %v654_v24  ;;  %v662_v34 = vstv %s3077_s20  ;;  %s3211_s20 = sld [smem:[#allocation2 + $0x60]] }
  0x5d   : > { %511 = vrot.lane.b32.xlu1 %v510_v47, %s2815_s19  ;;  %v719_v35 = vmul.f32 %v2522_v21, %v718_v27  ;;  %v720_v36 = vmul.f32 %v2523_v22, %v718_v27  ;;  %v695_v38 = vmul.f32 %v2522_v21, %v694_v28  ;;  %v641_v39 = vsel %vm285_vm1, %v639_v29, %v640_v30 }
  0x5e   : > { %498 = vrot.lane.b32.xlu0 %v497_v48, %s2814_s15  ;;  %v686_v40 = vrot.slane %v682_v31, 1  ;;  %v687_v42 = vrot.slane %v683_v32, 1  ;;  %v696_v43 = vmul.f32 %v2523_v22, %v694_v28  ;;  %v731_v44 = vstv %s3086_s21  ;;  %s3219_s21 = sld [smem:[#allocation2 + $0x3a]] }
  0x5f   : > { %v663_v45 = vmul.f32 %v2522_v21, %v662_v34  ;;  %v723_v46 = vrot.slane %v719_v35, 2  ;;  %v724_v47 = vrot.slane %v720_v36, 2  ;;  %v699_v48 = vrot.slane %v695_v38, 1 }
  0x60   : > { %v688_v49 = vsel %vm234_vm0, %v686_v40, %v687_v42  ;;  %v700_v50 = vrot.slane %v696_v43, 1  ;;  %v754_v55 = vstv %s3098_s22  ;;  %v802_v58 = vstv %s3100_s23  ;;  %s3223_s22 = sld [smem:[#allocation2 + $0x4a]]  ;;  %s3225_s23 = sld [smem:[#allocation2 + $0x48]] }
  0x61   : > { %534 = vrot.lane.b32.xlu1 %v532_v51, %s2815_s19  ;;  %v732_v51 = vmul.f32 %v2522_v21, %v731_v44  ;;  %v725_v54 = vsel %vm285_vm1, %v723_v46, %v724_v47  ;;  %v789_v63 = vstv %s3103_s24  ;;  %v804_v2 = vmul.f32 %v3118_v53, %v802_v58  ;;  %s3228_s24 = sld [smem:[#allocation2 + $0x56]] }
  0x62   : > { %526 = vrot.lane.b32.xlu0 %v524_v52, %s2814_s15  ;;  %v733_v52 = vmul.f32 %v2523_v22, %v731_v44  ;;  %v701_v59 = vsel %vm234_vm0, %v699_v48, %v700_v50  ;;  %v755_v3 = vmul.f32 %v3129_v60, %v754_v55  ;;  %v770_v5 = vstv %s3106_s25  ;;  %s3231_s25 = sld [smem:[#allocation2 + $0x3e]] }
  0x63   : > { %v736_v61 = vrot.slane %v732_v51, 2  ;;  %v790_v6 = vmul.f32 %v3129_v60, %v789_v63  ;;  %v839_v7 = vstv %s3110_s26  ;;  %v762_v9 = vstv %s3113_s27  ;;  %s3233_s26 = sld [smem:[#allocation2 + $0x4c]]  ;;  %s3235_s27 = sld [smem:[#allocation2 + $0xe]] }
  0x64   : > { %v737_v62 = vrot.slane %v733_v52, 2  ;;  %v791_v10 = vmul.f32 %v3118_v53, %v789_v63  ;;  %v815_v11 = vstv %s3115_s28  ;;  %v771_v12 = vmul.f32 %v3129_v60, %v770_v5  ;;  %s3239_s28 = sld [smem:[#allocation2 + $0x3c]] }
  0x65   : > { %566 = vrot.lane.b32.xlu1 %v565_v8, %s2814_s15  ;;  %v808_v14 = vrot.slane %v804_v2, 1  ;;  %v840_v15 = vmul.f32 %v3129_v60, %v839_v7  ;;  %v763_v16 = vmul.f32 %v3129_v60, %v762_v9  ;;  %v865_v19 = vstv %s3125_s29  ;;  %s3243_s29 = sld [smem:[#allocation2 + $0x1c]] }
  0x66   : > { %542 = vrot.lane.b32.xlu0 %v540_v1, %s2813_s11  ;;  %v803_v1 = vmul.f32 %v3129_v60, %v802_v58  ;;  %v738_v8 = vsel %vm285_vm1, %v736_v61, %v737_v62  ;;  %v795_v20 = vrot.slane %v791_v10, 1  ;;  %v816_v21 = vmul.f32 %v3129_v60, %v815_v11  ;;  %v2551_v58 = vld [vmem:[%s2889_s6 + $0x50] sm:$0xff]  ;;  %v2552_v62 = vld [vmem:[%s2889_s6 + $0x58] sm:$0x7] }
  0x67   : > { %v817_v22 = vmul.f32 %v3118_v53, %v815_v11  ;;  %v852_v23 = vstv %s3132_s30  ;;  %v867_v27 = vmul.f32 %v3118_v53, %v865_v19  ;;  %v902_v31 = vstv %s3142_s4  ;;  %s3246_s30 = sld [smem:[#allocation2]]  ;;  %s3255_s4 = sld [smem:[#allocation2 + $0x95]] }
  0x68   : > { %v807_v13 = vrot.slane %v803_v1, 1  ;;  %v853_v29 = vmul.f32 %v3129_v60, %v852_v23  ;;  %v854_v30 = vmul.f32 %v3118_v53, %v852_v23  ;;  %v889_v35 = vstv %s3147_s5  ;;  %s3261_s5 = sld [smem:[#allocation2 + $0x2a]] }
  0x69   : > { %592 = vrot.lane.b32.xlu1 %v591_v17, %s2813_s11  ;;  %v794_v17 = vrot.slane %v790_v6, 1  ;;  %v821_v34 = vrot.slane %v817_v22, 1  ;;  %v871_v38 = vrot.slane %v867_v27, 2  ;;  %v904_v43 = vmul.f32 %v3118_v53, %v902_v31 }
  0x6a   : > { %579 = vrot.lane.b32.xlu0 %v578_v18, %s2815_s19  ;;  %v841_v18 = vmul.f32 %v3118_v53, %v839_v7  ;;  %v809_v24 = vsel %vm234_vm0, %v807_v13, %v808_v14  ;;  %v857_v40 = vrot.slane %v853_v29, 2  ;;  %v858_v42 = vrot.slane %v854_v30, 2 }
  0x6b   : > { %v796_v32 = vsel %vm234_vm0, %v794_v17, %v795_v20  ;;  %v890_v44 = vmul.f32 %v3129_v60, %v889_v35  ;;  %v891_v47 = vmul.f32 %v3118_v53, %v889_v35  ;;  %v915_v48 = vstv %s3160_s7  ;;  %s3264_s7 = sld [smem:[#allocation2 + $0x64]] }
  0x6c   : > { %v845_v28 = vrot.slane %v841_v18, 2  ;;  %v859_v50 = vsel %vm285_vm1, %v857_v40, %v858_v42  ;;  %v908_v52 = vrot.slane %v904_v43, 3  ;;  %v917_v61 = vmul.f32 %v3118_v53, %v915_v48  ;;  %v2565_v40 = vld [vmem:[%s2889_s6 + $0x90] sm:$0xff]  ;;  %v2566_v42 = vld [vmem:[%s2889_s6 + $0x98] sm:$0x7] }
  0x6d   : > { %629 = vrot.lane.b32.xlu1 %v628_v25, %s2815_s19  ;;  %v844_v25 = vrot.slane %v840_v15, 2  ;;  %v895_v55 = vrot.slane %v891_v47, 3  ;;  %v962_v63 = vstv %s3172_s8  ;;  %v935_v1 = vstv %s3179_s9  ;;  %s3269_s8 = sld [smem:[#allocation2 + $0x97]]  ;;  %s3271_s9 = sld [smem:[#allocation2 + $0x66]] }
  0x6e   : > { %616 = vrot.lane.b32.xlu0 %v615_v26, %s2814_s15  ;;  %v866_v26 = vmul.f32 %v3129_v60, %v865_v19  ;;  %v963_v2 = vmul.f32 %v2551_v58, %v962_v63  ;;  %v999_v5 = vstv %s3181_s10  ;;  %v921_v53 = vrot.slane %v917_v61, 3  ;;  %s3277_s10 = sld [smem:[#allocation2 + $0x99]] }
  0x6f   : > { %v936_v9 = vmul.f32 %v2551_v58, %v935_v1  ;;  %v943_v10 = vstv %s3190_s16  ;;  %v1000_v11 = vmul.f32 %v2551_v58, %v999_v5  ;;  %v1001_v14 = vmul.f32 %v2552_v62, %v999_v5  ;;  %s3282_s16 = sld [smem:[#allocation2 + $0xa3]] }
  0x70   : > { %v870_v36 = vrot.slane %v866_v26, 2  ;;  %v1036_v15 = vstv %s3195_s17  ;;  %v1012_v19 = vstv %s3202_s18  ;;  %v944_v20 = vmul.f32 %v2551_v58, %v943_v10  ;;  %s3284_s17 = sld [smem:[#allocation2 + $0x72]]  ;;  %s3289_s18 = sld [smem:[#allocation2 + $0xa5]] }
  0x71   : > { %657 = vrot.lane.b32.xlu1 %v655_v33, %s2814_s15  ;;  %v820_v33 = vrot.slane %v816_v21, 1  ;;  %v1037_v21 = vmul.f32 %v2551_v58, %v1036_v15  ;;  %v1004_v22 = vrot.slane %v1000_v11, 2  ;;  %v1038_v23 = vmul.f32 %v2552_v62, %v1036_v15 }
  0x72   : > { %642 = vrot.lane.b32.xlu0 %v641_v39, %s2813_s11  ;;  %v903_v39 = vmul.f32 %v3129_v60, %v902_v31  ;;  %v1005_v27 = vrot.slane %v1001_v14, 2  ;;  %v1049_v30 = vstv %s3211_s20  ;;  %v1077_v61 = vstv %s3239_s28  ;;  %s3296_s20 = sld [smem:[#allocation2 + $0x74]]  ;;  %s3380_s28 = sld [smem:[#allocation2 + $0x2b]] }
  0x73   : > { %v822_v46 = vsel %vm234_vm0, %v820_v33, %v821_v34  ;;  %v1041_v31 = vrot.slane %v1037_v21, 3  ;;  %v201_v10 = vstv %s3246_s30  ;;  %s3390_s30 = sld [smem:[#allocation2 + $0x82]] }
  0x74   : > { %v907_v51 = vrot.slane %v903_v39, 3  ;;  %v1006_v35 = vsel %vm285_vm1, %v1004_v22, %v1005_v27  ;;  %v1051_v39 = vmul.f32 %v2552_v62, %v1049_v30 }
  0x75   : > { %689 = vrot.lane.b32.xlu1 %v688_v49, %s2814_s15  ;;  %v872_v49 = vsel %vm285_vm1, %v870_v36, %v871_v38  ;;  %v1050_v38 = vmul.f32 %v2551_v58, %v1049_v30 }
  0x76   : > { %665 = vrot.lane.b32.xlu0 %v663_v45, %s2815_s19  ;;  %v846_v45 = vsel %vm285_vm1, %v844_v25, %v845_v28  ;;  %v909_v6 = vsel %vm336_vm2, %v907_v51, %v908_v52  ;;  %v1014_v25 = vmul.f32 %v2552_v62, %v1012_v19  ;;  %v1085_v51 = vstv %s3231_s25  ;;  %s3359_s25 = sld [smem:[#allocation2 + $0x1d]] }
  0x77   : > { %v1054_v47 = vrot.slane %v1050_v38, 3  ;;  %v1130_v52 = vstv %s3233_s26  ;;  %s3371_s26 = sld [smem:[#allocation2 + $0xb1]] }
  0x78   : > { %v1018_v34 = vrot.slane %v1014_v25, 2  ;;  %v331_v25 = vstv %s3261_s5  ;;  %s3422_s5 = sld [smem:[#allocation2 + $0x84]] }
  0x79   : > { %726 = vrot.lane.b32.xlu1 %v725_v54, %s2814_s15  ;;  %v894_v54 = vrot.slane %v890_v44, 3 }
  0x7a   : > { %702 = vrot.lane.b32.xlu0 %v701_v59, %s2815_s19  ;;  %v916_v59 = vmul.f32 %v3129_v60, %v915_v48  ;;  %v1055_v48 = vrot.slane %v1051_v39, 3 }
  0x7b   : > { %v896_v60 = vsel %vm336_vm2, %v894_v54, %v895_v55 }
  0x7c   : > { %v920_v7 = vrot.slane %v916_v59, 3  ;;  %v229_v59 = vstv %s3235_s27  ;;  %s3378_s27 = sld [smem:[#allocation2 + $0x80]] }
  0x7d   : > { %757 = vrot.lane.b32.xlu1 %v755_v3, %s2814_s15  ;;  %v964_v3 = vmul.f32 %v2552_v62, %v962_v63 }
  0x7e   : > { %739 = vrot.lane.b32.xlu0 %v738_v8, %s2815_s19  ;;  %v975_v8 = vstv %s3187_s14  ;;  %s3279_s14 = sld [smem:[#allocation2 + $0x68]] }
  0x7f   : > { %v968_v13 = vrot.slane %v964_v3, 1  ;;  %v976_v17 = vmul.f32 %v2551_v58, %v975_v8  ;;  %v977_v18 = vmul.f32 %v2552_v62, %v975_v8  ;;  %v1086_v3 = vmul.f32 %v2565_v40, %v1085_v51 }
  0x80   : > { %v280_v8 = vstv %s3243_s29  ;;  %s3382_s29 = sld [smem:[#allocation2 + $0xb3]] }
  0x81   : > { %773 = vrot.lane.b32.xlu1 %v771_v12, %s2813_s11  ;;  %v967_v12 = vrot.slane %v963_v2, 1  ;;  %v980_v28 = vrot.slane %v976_v17, 1  ;;  %v981_v29 = vrot.slane %v977_v18, 1  ;;  %v1056_v2 = vsel %vm336_vm2, %v1054_v47, %v1055_v48  ;;  %v3335_v48 = vld [vmem:[%s2889_s6 + $0x38] sm:$0x7] }
  0x82   : > { %765 = vrot.lane.b32.xlu0 %v763_v16, %s2815_s19  ;;  %v922_v16 = vsel %vm336_vm2, %v920_v7, %v921_v53  ;;  %v230_v7 = vmul.f32 %v229_v59, %v2892_v0  ;;  %v231_v53 = vmul.f32 %v229_v59, %v2896_v4  ;;  %v282_v21 = vmul.f32 %v280_v8, %v2896_v4 }
  0x83   : > { %v969_v26 = vsel %vm234_vm0, %v967_v12, %v968_v13  ;;  %v982_v36 = vsel %vm234_vm0, %v980_v28, %v981_v29  ;;  %v3304_v28 = vld [vmem:[%s2889_s6 + $0x20] sm:$0xff]  ;;  %v1300_v29 = vstv %s3264_s7  ;;  %s3426_s7 = sld [smem:[#allocation2 + $0x7]] }
  0x84   : > { %v287_v39 = vrot.slane %v282_v21, 2 }
  0x85   : > { %810 = vrot.lane.b32.xlu1 %v809_v24, %s2815_s19  ;;  %v1013_v24 = vmul.f32 %v2551_v58, %v1012_v19  ;;  %v3292_v19 = vld [vmem:[%s2889_s6 + $0x30] sm:$0xff] }
  0x86   : > { %797 = vrot.lane.b32.xlu0 %v796_v32, %s2814_s15  ;;  %v1042_v32 = vrot.slane %v1038_v23, 3  ;;  %v235_v23 = vrot.slane %v230_v7, 1 }
  0x87   : > { %v1017_v33 = vrot.slane %v1013_v24, 2  ;;  %v236_v24 = vrot.slane %v231_v53, 1 }
  0x88   : > { %v1043_v43 = vsel %vm336_vm2, %v1041_v31, %v1042_v32 }
  0x89   : > { %847 = vrot.lane.b32.xlu1 %v846_v45, %s2814_s15  ;;  %v1019_v44 = vsel %vm285_vm1, %v1017_v33, %v1018_v34  ;;  %v1069_v45 = vstv %s3219_s21  ;;  %s3299_s21 = sld [smem:[#allocation2 + $0xf]]  ;;  %v1854_v33 = vstv %s3269_s8  ;;  %v1308_v34 = vstv %s3271_s9  ;;  %s3440_s8 = sld [smem:[#allocation2 + $0x15]] }
  0x8a   : > { %823 = vrot.lane.b32.xlu0 %v822_v46, %s2813_s11  ;;  %v1117_v46 = vstv %s3223_s22  ;;  %v1070_v54 = vmul.f32 %v2565_v40, %v1069_v45  ;;  %s3319_s22 = sld [smem:[#allocation2 + $0xa7]]  ;;  %v1862_v45 = vstv %s3277_s10  ;;  %v3331_v47 = vmul.f32 %v3304_v28, %v1308_v34  ;;  %s3454_s10 = sld [smem:[#allocation2 + $0x8e]] }
  0x8b   : > { %v1118_v55 = vmul.f32 %v2565_v40, %v1117_v46  ;;  %v1119_v58 = vmul.f32 %v2566_v42, %v1117_v46  ;;  %v3328_v46 = vmul.f32 %v3292_v19, %v1854_v33  ;;  %s3447_s9 = sld [smem:[#allocation2 + $0xbf]] }
  0x8d   : > { %873 = vrot.lane.b32.xlu1 %v872_v49, %s2813_s11  ;;  %v1104_v49 = vstv %s3225_s23  ;;  %v1122_v11 = vrot.slane %v1118_v55, 1  ;;  %v1123_v12 = vrot.slane %v1119_v58, 1  ;;  %s3325_s23 = sld [smem:[#allocation2 + $0x1]]  ;;  %v1894_v55 = vstv %s3289_s18  ;;  %s3491_s18 = sld [smem:[#allocation2 + $0xc3]] }
  0x8e   : > { %860 = vrot.lane.b32.xlu0 %v859_v50, %s2815_s19  ;;  %v1154_v50 = vstv %s3228_s24  ;;  %v1105_v62 = vmul.f32 %v2565_v40, %v1104_v49  ;;  %v1106_v63 = vmul.f32 %v2566_v42, %v1104_v49  ;;  %v1881_v49 = vstv %s3282_s16  ;;  %s3346_s24 = sld [smem:[#allocation2 + $0x76]]  ;;  %s3462_s16 = sld [smem:[#allocation2 + $0x90]] }
  0x8f   : > { %v1155_v1 = vmul.f32 %v2565_v40, %v1154_v50  ;;  %v1156_v5 = vmul.f32 %v2566_v42, %v1154_v50  ;;  %v1124_v27 = vsel %vm234_vm0, %v1122_v11, %v1123_v12  ;;  %v3339_v50 = vld [vmem:[%s2889_s6 + $0x28] sm:$0x7]  ;;  %v1895_v7 = vmul.f32 %v3292_v19, %v1894_v55 }
  0x90   : > { %v1109_v13 = vrot.slane %v1105_v62, 1  ;;  %v1110_v14 = vrot.slane %v1106_v63, 1  ;;  %v3353_v62 = vmul.f32 %v3292_v19, %v1862_v45  ;;  %v1348_v63 = vstv %s3296_s20  ;;  %s3499_s20 = sld [smem:[#allocation2 + $0x92]] }
  0x91   : > { %910 = vrot.lane.b32.xlu1 %v909_v6, %s2815_s19  ;;  %v1131_v6 = vmul.f32 %v2565_v40, %v1130_v52  ;;  %v1159_v15 = vrot.slane %v1155_v1, 2  ;;  %v1160_v17 = vrot.slane %v1156_v5, 2  ;;  %v405_v5 = vstv %s3299_s21  ;;  %s3511_s21 = sld [smem:[#allocation2 + $0x16]] }
  0x92   : > { %897 = vrot.lane.b32.xlu0 %v896_v60, %s2814_s15  ;;  %v1132_v60 = vmul.f32 %v2566_v42, %v1130_v52  ;;  %v1111_v31 = vsel %vm234_vm0, %v1109_v13, %v1110_v14  ;;  %v333_v52 = vmul.f32 %v331_v25, %v2896_v4  ;;  %v1883_v4 = vmul.f32 %v3335_v48, %v1881_v49 }
  0x93   : > { %v1135_v18 = vrot.slane %v1131_v6, 1  ;;  %v1896_v53 = vmul.f32 %v3335_v48, %v1894_v55  ;;  %v1349_v11 = vmul.f32 %v3304_v28, %v1348_v63  ;;  %v1350_v12 = vmul.f32 %v3339_v50, %v1348_v63 }
  0x94   : > { %v1136_v22 = vrot.slane %v1132_v60, 1  ;;  %v406_v13 = vmul.f32 %v2965_v56, %v405_v5  ;;  %v407_v14 = vmul.f32 %v2968_v57, %v405_v5  ;;  %v1887_v21 = vrot.slane %v1883_v4, 1 }
  0x95   : > { %938 = vrot.lane.b32.xlu1 %v936_v9, %s2814_s15  ;;  %v1078_v9 = vmul.f32 %v2565_v40, %v1077_v61  ;;  %v3317_v40 = vmul.f32 %v331_v25, %v2892_v0  ;;  %v1899_v25 = vrot.slane %v1895_v7, 1  ;;  %v1353_v33 = vrot.slane %v1349_v11, 1 }
  0x96   : > { %923 = vrot.lane.b32.xlu0 %v922_v16, %s2813_s11  ;;  %v1846_v16 = vstv %s3255_s4  ;;  %v1137_v42 = vsel %vm234_vm0, %v1135_v18, %v1136_v22  ;;  %v385_v22 = vstv %s3325_s23  ;;  %v1354_v34 = vrot.slane %v1350_v12, 1  ;;  %s3408_s4 = sld [smem:[#allocation2 + $0xb5]]  ;;  %s3533_s23 = sld [smem:[#allocation2 + $0x96]] }
  0x97   : > { %v3311_v32 = vmul.f32 %v3292_v19, %v1846_v16  ;;  %v337_v61 = vrot.slane %v3317_v40, 3  ;;  %v1931_v55 = vstv %s3371_s26  ;;  %v1385_v4 = vstv %s3378_s27  ;;  %s3544_s26 = sld [smem:[#allocation2 + $0xa4]]  ;;  %s3549_s27 = sld [smem:[#allocation2 + $0x98]] }
  0x98   : > { %v479_v5 = vstv %s3380_s28  ;;  %v1932_v7 = vmul.f32 %v3292_v19, %v1931_v55  ;;  %v1386_v11 = vmul.f32 %v3304_v28, %v1385_v4  ;;  %v1387_v12 = vmul.f32 %v3339_v50, %v1385_v4  ;;  %s3558_s28 = sld [smem:[#allocation2 + $0x67]] }
  0x99   : > { %970 = vrot.lane.b32.xlu1 %v969_v26, %s2814_s15  ;;  %v202_v26 = vmul.f32 %v201_v10, %v2892_v0 }
  0x9a   : > { %946 = vrot.lane.b32.xlu0 %v944_v20, %s2815_s19  ;;  %v281_v20 = vmul.f32 %v280_v8, %v2892_v0  ;;  %v1316_v0 = vstv %s3279_s14  ;;  %s3456_s14 = sld [smem:[#allocation2 + $0xc1]] }
  0x9b   : > { %v3368_v10 = vmul.f32 %v3304_v28, %v1316_v0 }
  0x9c   : > { %v286_v38 = vrot.slane %v281_v20, 2 }
  0x9d   : > { %1007 = vrot.lane.b32.xlu1 %v1006_v35, %s2814_s15 }
  0x9e   : > { %983 = vrot.lane.b32.xlu0 %v982_v36, %s2815_s19  ;;  %v1161_v36 = vsel %vm285_vm1, %v1159_v15, %v1160_v17  ;;  %v3349_v59 = vsel %vm285_vm1, %v286_v38, %v287_v39  ;;  %v1907_v15 = vstv %s3319_s22  ;;  %s3524_s22 = sld [smem:[#allocation2 + $0x8]] }
  0xa1   : > { %1044 = vrot.lane.b32.xlu1 %v1043_v43, %s2814_s15  ;;  %v237_v43 = vsel %vm234_vm0, %v235_v23, %v236_v24 }
  0xa2   : > { %1020 = vrot.lane.b32.xlu0 %v1019_v44, %s2815_s19  ;;  %v1301_v44 = vmul.f32 %v3304_v28, %v1300_v29  ;;  %v1908_v29 = vmul.f32 %v3292_v19, %v1907_v15 }
  0xa5   : > { %1072 = vrot.lane.b32.xlu1 %v1070_v54, %s2814_s15  ;;  %v1335_v54 = vstv %s3284_s17  ;;  %s3464_s17 = sld [smem:[#allocation2 + $0x23]] }
  0xa6   : > { %1057 = vrot.lane.b32.xlu0 %v1056_v2, %s2815_s19  ;;  %v1336_v6 = vmul.f32 %v3304_v28, %v1335_v54  ;;  %v1337_v60 = vmul.f32 %v3339_v50, %v1335_v54 }
  0xa8   : > { %v1340_v23 = vrot.slane %v1336_v6, 1  ;;  %v1341_v24 = vrot.slane %v1337_v60, 1 }
  0xa9   : > { %1088 = vrot.lane.b32.xlu1 %v1086_v3, %s2813_s11  ;;  %v1882_v3 = vmul.f32 %v3292_v19, %v1881_v49 }
  0xaa   : > { %1080 = vrot.lane.b32.xlu0 %v1078_v9, %s2815_s19  ;;  %v338_v9 = vrot.slane %v333_v52, 3  ;;  %v1342_v45 = vsel %vm234_vm0, %v1340_v23, %v1341_v24  ;;  %v1912_v52 = vrot.slane %v1908_v29, 1  ;;  %v1391_v29 = vrot.slane %v1387_v12, 2 }
  0xab   : > { %v225_v30 = vpop.permute.xlu1 %224  ;;  %v1886_v20 = vrot.slane %v1882_v3, 1 }
  0xac   : > { %v209_v35 = vpop.permute.xlu0 %208 }
  0xad   : > { %v211_v51 = vadd.f32 %v209_v35, %v202_v26  ;;  %1125 = vrot.lane.b32.xlu1 %v1124_v27, %s2815_s19  ;;  %v1900_v26 = vrot.slane %v1896_v53, 1  ;;  %v410_v35 = vrot.slane %v406_v13, 1  ;;  %v1944_v53 = vstv %s3382_s29  ;;  %s3569_s29 = sld [smem:[#allocation2 + $0x73]] }
  0xae   : > { %1112 = vrot.lane.b32.xlu0 %v1111_v31, %s2814_s15  ;;  %v1361_v31 = vstv %s3346_s24  ;;  %v480_v13 = vmul.f32 %v2965_v56, %v479_v5  ;;  %v1946_v23 = vmul.f32 %v3335_v48, %v1944_v53  ;;  %s3536_s24 = sld [smem:[#allocation2 + $0x24]] }
  0xaf   : > { %v250_v1 = vpop.permute.xlu1 %249  ;;  %v1362_v0 = vmul.f32 %v3304_v28, %v1361_v31  ;;  %v1363_v49 = vmul.f32 %v3339_v50, %v1361_v31 }
  0xb0   : > { %v217_v58 = vpop.permute.xlu0 %216 }
  0xb1   : > { %v219_v2 = vadd.f32 %v217_v58, %v211_v51  ;;  %1162 = vrot.lane.b32.xlu1 %v1161_v36, %s2814_s15  ;;  %v411_v36 = vrot.slane %v407_v14, 1  ;;  %v1901_v58 = vsel %vm234_vm0, %v1899_v25, %v1900_v26  ;;  %v1366_v6 = vrot.slane %v1362_v0, 1 }
  0xb2   : > { %1138 = vrot.lane.b32.xlu0 %v1137_v42, %s2813_s11  ;;  %v3393_v42 = vsel %vm336_vm2, %v337_v61, %v338_v9  ;;  %v1355_v61 = vsel %vm234_vm0, %v1353_v33, %v1354_v34  ;;  %v1367_v60 = vrot.slane %v1363_v49, 1  ;;  %v1933_v9 = vmul.f32 %v3335_v48, %v1931_v55 }
  0xb3   : > { %v227_v8 = vadd.f32 %v225_v30, %v219_v2  ;;  %v276_v16 = vpop.permute.xlu1 %275  ;;  %v1909_v30 = vmul.f32 %v3335_v48, %v1907_v15  ;;  %v3413_v63 = vsel %vm234_vm0, %v410_v35, %v411_v36  ;;  %v1398_v14 = vstv %s3390_s30  ;;  %s3575_s30 = sld [smem:[#allocation2 + $0x31]] }
  0xb4   : > { %v263_v17 = vpop.permute.xlu0 %262  ;;  %v1399_v24 = vmul.f32 %v3304_v28, %v1398_v14  ;;  %v1957_v25 = vstv %s3408_s4  ;;  %v1937_v26 = vrot.slane %v1933_v9, 2  ;;  %v547_v55 = vstv %s3440_s8  ;;  %s3577_s4 = sld [smem:[#allocation2 + $0xa6]]  ;;  %s3606_s8 = sld [smem:[#allocation2 + $0x81]] }
  0xb5   : > { %v239_v18 = vadd.f32 %v237_v43, %v227_v8  ;;  %1849 = vrot.lane.b32.xlu1 %v3311_v32, %s2814_s15  ;;  %v3396_v32 = vmul.f32 %v2965_v56, %v385_v22  ;;  %v442_v43 = vstv %s3359_s25  ;;  %v1913_v54 = vrot.slane %v1909_v30, 1  ;;  %s3542_s25 = sld [smem:[#allocation2 + $0x65]] }
  0xb6   : > { %1303 = vrot.lane.b32.xlu0 %v1301_v44, %s2814_s15  ;;  %v1888_v44 = vsel %vm234_vm0, %v1886_v20, %v1887_v21  ;;  %v444_v3 = vmul.f32 %v2968_v57, %v442_v43  ;;  %v1368_v20 = vsel %vm234_vm0, %v1366_v6, %v1367_v60  ;;  %v1936_v22 = vrot.slane %v1932_v7, 2 }
  0xb7   : > { %v252_v27 = vadd.f32 %v250_v1, %v239_v18  ;;  %v314_v39 = vpop.permute.xlu1 %313  ;;  %v3416_v1 = vmul.f32 %v2965_v56, %v442_v43  ;;  %v1945_v18 = vmul.f32 %v3292_v19, %v1944_v53  ;;  %v484_v30 = vrot.slane %v480_v13, 3 }
  0xb8   : > { %v301_v40 = vpop.permute.xlu0 %300  ;;  %v448_v21 = vrot.slane %v444_v3, 2  ;;  %v1958_v43 = vmul.f32 %v3292_v19, %v1957_v25  ;;  %v1403_v0 = vrot.slane %v1399_v24, 2  ;;  %v1981_v6 = vstv %s3447_s9  ;;  %s3613_s9 = sld [smem:[#allocation2 + $0x3f]] }
  0xb9   : > { %v265_v38 = vadd.f32 %v263_v17, %v252_v27  ;;  %1857 = vrot.lane.b32.xlu1 %v3328_v46, %s2815_s19  ;;  %v481_v17 = vmul.f32 %v2968_v57, %v479_v5  ;;  %v1400_v57 = vmul.f32 %v3339_v50, %v1398_v14  ;;  %v1390_v27 = vrot.slane %v1386_v11, 2 }
  0xba   : > { %1311 = vrot.lane.b32.xlu0 %v3331_v47, %s2815_s19  ;;  %v1949_v36 = vrot.slane %v1945_v18, 2  ;;  %v1962_v4 = vrot.slane %v1958_v43, 2  ;;  %v548_v53 = vmul.f32 %v3030_v41, %v547_v55  ;;  %v549_v12 = vmul.f32 %v3025_v37, %v547_v55 }
  0xbb   : > { %v278_v51 = vadd.f32 %v276_v16, %v265_v38  ;;  %v352_v2 = vpop.permute.xlu1 %351  ;;  %v485_v35 = vrot.slane %v481_v17, 3  ;;  %v1411_v38 = vstv %s3422_s5  ;;  %v1404_v49 = vrot.slane %v1400_v57, 2  ;;  %v2743_v57 = vld [vmem:[%s2889_s6 + $0x80] sm:$0xff]  ;;  %s3591_s5 = sld [smem:[#allocation2 + $0x75]] }
  0xbc   : > { %v327_v47 = vpop.permute.xlu0 %326  ;;  %v1994_v13 = vstv %s3456_s14  ;;  %v1983_v17 = vmul.f32 %v3335_v48, %v1981_v6  ;;  %s3654_s14 = sld [smem:[#allocation2 + $0x83]] }
  0xbd   : > { %v290_v46 = vadd.f32 %v3349_v59, %v278_v51  ;;  %1865 = vrot.lane.b32.xlu1 %v3353_v62, %s2813_s11  ;;  %v3433_v59 = vsel %vm234_vm0, %v1912_v52, %v1913_v54  ;;  %v1938_v51 = vsel %vm285_vm1, %v1936_v22, %v1937_v26  ;;  %v1412_v52 = vmul.f32 %v3304_v28, %v1411_v38 }
  0xbe   : > { %1319 = vrot.lane.b32.xlu0 %v3368_v10, %s2813_s11  ;;  %v447_v10 = vrot.slane %v3416_v1, 2  ;;  %v1413_v54 = vmul.f32 %v3339_v50, %v1411_v38  ;;  %v1405_v7 = vsel %vm285_vm1, %v1403_v0, %v1404_v49  ;;  %v1996_v22 = vmul.f32 %v3335_v48, %v1994_v13 }
  0xbf   : > { %v303_v8 = vadd.f32 %v301_v40, %v290_v46  ;;  %v378_v62 = vpop.permute.xlu1 %377  ;;  %v519_v40 = vstv %s3426_s7  ;;  %v1416_v9 = vrot.slane %v1412_v52, 2  ;;  %s3597_s7 = sld [smem:[#allocation2 + $0xb2]] }
  0xc0   : > { %v365_v16 = vpop.permute.xlu0 %364  ;;  %v1417_v11 = vrot.slane %v1413_v54, 2 }
  0xc1   : > { %v316_v15 = vadd.f32 %v314_v39, %v303_v8  ;;  %1889 = vrot.lane.b32.xlu1 %v1888_v44, %s2814_s15  ;;  %v1950_v39 = vrot.slane %v1946_v23, 2  ;;  %v1959_v44 = vmul.f32 %v3335_v48, %v1957_v25  ;;  %v1435_v8 = vstv %s3454_s10  ;;  %s3640_s10 = sld [smem:[#allocation2 + $0xb4]] }
  0xc2   : > { %1343 = vrot.lane.b32.xlu0 %v1342_v45, %s2814_s15  ;;  %v1436_v37 = vmul.f32 %v3304_v28, %v1435_v8  ;;  %v1437_v18 = vmul.f32 %v3339_v50, %v1435_v8  ;;  %v553_v23 = vrot.slane %v549_v12, 1 }
  0xc3   : > { %v329_v56 = vadd.f32 %v327_v47, %v316_v15  ;;  %v3459_v33 = vpop.permute.xlu1 %400  ;;  %v3487_v47 = vmul.f32 %v3030_v41, %v519_v40  ;;  %v1951_v3 = vsel %vm285_vm1, %v1949_v36, %v1950_v39  ;;  %v1963_v5 = vrot.slane %v1959_v44, 2 }
  0xc4   : > { %v393_v34 = vpop.permute.xlu0 %392  ;;  %v1987_v36 = vrot.slane %v1983_v17, 3  ;;  %v1440_v38 = vrot.slane %v1436_v37, 3  ;;  %v1441_v39 = vrot.slane %v1437_v18, 3  ;;  %v2007_v40 = vstv %s3491_s18  ;;  %v3594_v17 = vld [vmem:[%s2889_s6 + $0x60] sm:$0xff]  ;;  %s3698_s18 = sld [smem:[#allocation2 + $0x8f]] }
  0xc5   : > { %v341_v31 = vadd.f32 %v3393_v42, %v329_v56  ;;  %1902 = vrot.lane.b32.xlu1 %v1901_v58, %s2815_s19  ;;  %v3472_v42 = vsel %vm285_vm1, %v447_v10, %v448_v21  ;;  %v597_v10 = vstv %s3464_s17  ;;  %v1964_v41 = vsel %vm285_vm1, %v1962_v4, %v1963_v5  ;;  %s3684_s17 = sld [smem:[#allocation2 + $0xc0]] }
  0xc6   : > { %1356 = vrot.lane.b32.xlu0 %v1355_v61, %s2815_s19  ;;  %v1392_v61 = vsel %vm285_vm1, %v1390_v27, %v1391_v29  ;;  %v1995_v21 = vmul.f32 %v3292_v19, %v1994_v13  ;;  %v598_v25 = vmul.f32 %v2743_v57, %v597_v10  ;;  %v2000_v44 = vrot.slane %v1996_v22, 3  ;;  %v3611_v57 = vld [vmem:[%s2889_s6 + $0x78] sm:$0x7] }
  0xc7   : > { %v354_v45 = vadd.f32 %v352_v2, %v341_v31  ;;  %v3478_v46 = vpop.permute.xlu1 %437  ;;  %v3484_v2 = vsel %vm336_vm2, %v484_v30, %v485_v35  ;;  %v1418_v30 = vsel %vm285_vm1, %v1416_v9, %v1417_v11  ;;  %v2009_v5 = vmul.f32 %v3335_v48, %v2007_v40 }
  0xc8   : > { %v3480_v58 = vpop.permute.xlu0 %424  ;;  %v1999_v43 = vrot.slane %v1995_v21, 3  ;;  %v602_v52 = vrot.slane %v598_v25, 2  ;;  %v707_v37 = vstv %s3536_s24  ;;  %v2054_v21 = vstv %s3544_s26  ;;  %s3758_s24 = sld [smem:[#allocation2 + $0x6b]]  ;;  %s3770_s26 = sld [smem:[#allocation2 + $0x9e]] }
  0xc9   : > { %v367_v1 = vadd.f32 %v365_v16, %v354_v45  ;;  %1915 = vrot.lane.b32.xlu1 %v3433_v59, %s2813_s11  ;;  %v1982_v59 = vmul.f32 %v3292_v19, %v1981_v6  ;;  %v1448_v16 = vstv %s3462_s16  ;;  %v1461_v45 = vstv %s3499_s20  ;;  %s3680_s16 = sld [smem:[#allocation2 + $0x4d]]  ;;  %s3700_s20 = sld [smem:[#allocation2 + $0xc2]] }
  0xca   : > { %1369 = vrot.lane.b32.xlu0 %v1368_v20, %s2813_s11  ;;  %v552_v20 = vrot.slane %v548_v53, 1  ;;  %v1449_v56 = vmul.f32 %v3304_v28, %v1448_v16  ;;  %v1450_v24 = vmul.f32 %v3339_v50, %v1448_v16  ;;  %v1462_v6 = vmul.f32 %v3304_v28, %v1461_v45  ;;  %v2745_v28 = vld [vmem:[%s2889_s6 + $0xc0] sm:$0xff] }
  0xcb   : > { %v380_v60 = vadd.f32 %v378_v62, %v367_v1  ;;  %v3504_v15 = vpop.permute.xlu1 %474  ;;  %v1986_v31 = vrot.slane %v1982_v59, 3  ;;  %v650_v53 = vstv %s3524_s22  ;;  %v3588_v59 = vld [vmem:[%s2889_s6 + $0x70] sm:$0xff]  ;;  %v2027_v16 = vstv %s3533_s23  ;;  %s3717_s22 = sld [smem:[#allocation2 + $0x5b]]  ;;  %s3753_s23 = sld [smem:[#allocation2 + $0x9c]] }
  0xcc   : > { %v3506_v62 = vpop.permute.xlu0 %461  ;;  %v3547_v0 = vsel %vm234_vm0, %v552_v20, %v553_v23  ;;  %v1453_v49 = vrot.slane %v1449_v56, 3  ;;  %v1481_v20 = vstv %s3542_s25  ;;  %v2028_v22 = vmul.f32 %v3588_v59, %v2027_v16  ;;  %s3766_s25 = sld [smem:[#allocation2 + $0x32]] }
  0xcd   : > { %v387_v14 = vadd.f32 %v3396_v32, %v380_v60  ;;  %1939 = vrot.lane.b32.xlu1 %v1938_v51, %s2814_s15  ;;  %v1454_v51 = vrot.slane %v1450_v24, 3  ;;  %v1988_v4 = vsel %vm336_vm2, %v1986_v31, %v1987_v36  ;;  %v2035_v24 = vstv %s3549_s27  ;;  %s3772_s27 = sld [smem:[#allocation2 + $0x40]] }
  0xce   : > { %1393 = vrot.lane.b32.xlu0 %v1392_v61, %s2814_s15  ;;  %v2008_v61 = vmul.f32 %v3292_v19, %v2007_v40  ;;  %v1442_v19 = vsel %vm336_vm2, %v1440_v38, %v1441_v39  ;;  %v708_v31 = vmul.f32 %v2745_v28, %v707_v37  ;;  %v1482_v38 = vmul.f32 %v3594_v17, %v1481_v20  ;;  %v3690_v20 = vld [vmem:[%s2889_s6 + $0x10] sm:$0xff] }
  0xcf   : > { %v395_v32 = vadd.f32 %v393_v34, %v387_v14  ;;  %v3527_v27 = vpop.permute.xlu1 %511  ;;  %v2744_v34 = vld [vmem:[%s2889_s6 + $0x88] sm:$0x7]  ;;  %v1455_v48 = vsel %vm336_vm2, %v1453_v49, %v1454_v51  ;;  %v3625_v39 = vmul.f32 %v3588_v59, %v2054_v21  ;;  %v3631_v40 = vmul.f32 %v3588_v59, %v2035_v24 }
  0xd0   : > { %v3529_v29 = vpop.permute.xlu0 %498  ;;  %v599_v35 = vmul.f32 %v2744_v34, %v597_v10  ;;  %v2012_v14 = vrot.slane %v2008_v61, 3  ;;  %v2013_v10 = vrot.slane %v2009_v5, 3  ;;  %v750_v49 = vstv %s3575_s30  ;;  %s3782_s30 = sld [smem:[#allocation4]] }
  0xd1   : > { %v403_v26 = vadd.f32 %v3459_v33, %v395_v32  ;;  %1952 = vrot.lane.b32.xlu1 %v1951_v3, %s2815_s19  ;;  %v670_v3 = vstv %s3511_s21  ;;  %v3602_v32 = vmul.f32 %v2745_v28, %v650_v53  ;;  %v2067_v51 = vstv %s3577_s4  ;;  %s3708_s21 = sld [smem:[#allocation2 + $0x91]] }
  0xd2   : > { %1406 = vrot.lane.b32.xlu0 %v1405_v7, %s2815_s19  ;;  %v603_v1 = vrot.slane %v599_v35, 2  ;;  %v2001_v7 = vsel %vm336_vm2, %v1999_v43, %v2000_v44  ;;  %v671_v8 = vmul.f32 %v2745_v28, %v670_v3  ;;  %v2014_v35 = vsel %vm336_vm2, %v2012_v14, %v2013_v10  ;;  %v3637_v43 = vld [vmem:[%s2889_s6 + $0x68] sm:$0x7]  ;;  %s3787_s4 = sld [smem:[#allocation2 + $0x79]] }
  0xd3   : > { %v414_v33 = vadd.f32 %v3413_v63, %v403_v26  ;;  %v3552_v54 = vpop.permute.xlu1 %534  ;;  %v1508_v44 = vstv %s3569_s29  ;;  %v712_v61 = vrot.slane %v708_v31, 2  ;;  %v2059_v5 = vrot.slane %v3625_v39, 1  ;;  %s3779_s29 = sld [smem:[#allocation2 + $0xaa]] }
  0xd4   : > { %v3554_v55 = vpop.permute.xlu0 %526  ;;  %v3585_v13 = vsel %vm285_vm1, %v602_v52, %v603_v1  ;;  %v675_v23 = vrot.slane %v671_v8, 1  ;;  %v2069_v53 = vmul.f32 %v3611_v57, %v2067_v51  ;;  %v2104_v24 = vstv %s3640_s10  ;;  %s3846_s10 = sld [smem:[#allocation2 + $0x5c]] }
  0xd5   : > { %v427_v63 = vadd.f32 %v3480_v58, %v414_v33  ;;  %v1463_v58 = vmul.f32 %v3339_v50, %v1461_v45  ;;  %1965 = vrot.lane.b32.xlu1 %v1964_v41, %s2813_s11  ;;  %v2746_v50 = vld [vmem:[%s2889_s6 + $0xc8] sm:$0x7]  ;;  %v1466_v41 = vrot.slane %v1462_v6, 3  ;;  %v3634_v33 = vmul.f32 %v3611_v57, %v2054_v21 }
  0xd6   : > { %1419 = vrot.lane.b32.xlu0 %v1418_v30, %s2813_s11  ;;  %v1489_v30 = vstv %s3558_s28  ;;  %v709_v34 = vmul.f32 %v2746_v50, %v707_v37  ;;  %v1509_v6 = vmul.f32 %v3594_v17, %v1508_v44  ;;  %v1558_v39 = vstv %s3654_s14  ;;  %s3775_s28 = sld [smem:[#allocation2 + $0x4e]]  ;;  %s3848_s14 = sld [smem:[#allocation2 + $0x7b]] }
  0xd7   : > { %v440_v60 = vadd.f32 %v3478_v46, %v427_v63  ;;  %v672_v46 = vmul.f32 %v2746_v50, %v670_v3  ;;  %v3580_v11 = vpop.permute.xlu1 %566  ;;  %v778_v50 = vstv %s3613_s9  ;;  %s3822_s9 = sld [smem:[#allocation2 + $0xac]] }
  0xd8   : > { %v3582_v12 = vpop.permute.xlu0 %542  ;;  %v713_v3 = vrot.slane %v709_v34, 2  ;;  %v779_v21 = vmul.f32 %v3690_v20, %v778_v50 }
  0xd9   : > { %v451_v9 = vadd.f32 %v3472_v42, %v440_v60  ;;  %v1467_v42 = vrot.slane %v1463_v58, 3  ;;  %1989 = vrot.lane.b32.xlu1 %v1988_v4, %s2814_s15  ;;  %v676_v56 = vrot.slane %v672_v46, 1  ;;  %v1521_v4 = vstv %s3591_s5  ;;  %s3799_s5 = sld [smem:[#allocation2 + $0x6d]] }
  0xda   : > { %1443 = vrot.lane.b32.xlu0 %v1442_v19, %s2814_s15  ;;  %v1510_v58 = vmul.f32 %v3637_v43, %v1508_v44  ;;  %v2091_v60 = vstv %s3597_s7  ;;  %v2060_v19 = vrot.slane %v3634_v33, 1  ;;  %v1522_v28 = vmul.f32 %v3594_v17, %v1521_v4  ;;  %s3803_s7 = sld [smem:[#allocation2 + $0xa0]] }
  0xdb   : > { %v464_v18 = vadd.f32 %v3506_v62, %v451_v9  ;;  %v3616_v25 = vpop.permute.xlu1 %592  ;;  %v1468_v36 = vsel %vm336_vm2, %v1466_v41, %v1467_v42  ;;  %v3643_v45 = vsel %vm234_vm0, %v675_v23, %v676_v56  ;;  %v1523_v8 = vmul.f32 %v3637_v43, %v1521_v4  ;;  %v3694_v23 = vld [vmem:[%s2889_s6 + $0x18] sm:$0x7] }
  0xdc   : > { %v3618_v26 = vpop.permute.xlu0 %579  ;;  %v3676_v14 = vsel %vm285_vm1, %v712_v61, %v713_v3  ;;  %v2092_v16 = vmul.f32 %v3588_v59, %v2091_v60  ;;  %v2093_v10 = vmul.f32 %v3611_v57, %v2091_v60  ;;  %v1513_v41 = vrot.slane %v1509_v6, 1 }
  0xdd   : > { %v477_v62 = vadd.f32 %v3504_v15, %v464_v18  ;;  %2002 = vrot.lane.b32.xlu1 %v2001_v7, %s2815_s19  ;;  %v2068_v7 = vmul.f32 %v3588_v59, %v2067_v51  ;;  %v1514_v42 = vrot.slane %v1510_v58, 1  ;;  %v780_v56 = vmul.f32 %v3694_v23, %v778_v50 }
  0xde   : > { %1456 = vrot.lane.b32.xlu0 %v1455_v48, %s2815_s19  ;;  %v1545_v48 = vstv %s3606_s8  ;;  %v1526_v31 = vrot.slane %v1522_v28, 1  ;;  %v2105_v44 = vmul.f32 %v3588_v59, %v2104_v24  ;;  %v2106_v51 = vmul.f32 %v3611_v57, %v2104_v24  ;;  %s3805_s8 = sld [smem:[#allocation2 + $0x6f]] }
  0xdf   : > { %v488_v15 = vadd.f32 %v3484_v2, %v477_v62  ;;  %v1490_v2 = vmul.f32 %v3594_v17, %v1489_v30  ;;  %v3649_v63 = vpop.permute.xlu1 %629  ;;  %v1546_v37 = vmul.f32 %v3594_v17, %v1545_v48  ;;  %v2072_v62 = vrot.slane %v2068_v7, 1 }
  0xe0   : > { %v3651_v1 = vpop.permute.xlu0 %616  ;;  %v2073_v30 = vrot.slane %v2069_v53, 1  ;;  %v783_v61 = vrot.slane %v779_v21, 1  ;;  %v784_v3 = vrot.slane %v780_v56, 1  ;;  %v1515_v4 = vsel %vm234_vm0, %v1513_v41, %v1514_v42 }
  0xe1   : > { %v501_v52 = vadd.f32 %v3529_v29, %v488_v15  ;;  %2015 = vrot.lane.b32.xlu1 %v2014_v35, %s2813_s11  ;;  %v751_v15 = vmul.f32 %v3690_v20, %v750_v49  ;;  %v1550_v33 = vrot.slane %v1546_v37, 2  ;;  %v2061_v49 = vsel %vm234_vm0, %v2059_v5, %v2060_v19 }
  0xe2   : > { %1469 = vrot.lane.b32.xlu0 %v1468_v36, %s2813_s11  ;;  %v2096_v36 = vrot.slane %v2092_v16, 2  ;;  %v2074_v6 = vsel %vm234_vm0, %v2072_v62, %v2073_v30  ;;  %v828_v5 = vstv %s3680_s16  ;;  %v2109_v19 = vrot.slane %v2105_v44, 2  ;;  %s3863_s16 = sld [smem:[#allocation2 + $0xae]] }
  0xe3   : > { %v514_v29 = vadd.f32 %v3527_v27, %v501_v52  ;;  %v3671_v27 = vpop.permute.xlu1 %657  ;;  %v2110_v7 = vrot.slane %v2106_v51, 2  ;;  %v2128_v53 = vstv %s3684_s17  ;;  %v1582_v50 = vstv %s3698_s18  ;;  %s3869_s17 = sld [smem:[#allocation2 + $0x7d]]  ;;  %s3874_s18 = sld [smem:[#allocation2 + $0xb8]] }
  0xe4   : > { %v3673_v9 = vpop.permute.xlu0 %642  ;;  %v829_v16 = vmul.f32 %v3690_v20, %v828_v5  ;;  %v2141_v41 = vstv %s3700_s20  ;;  %v1595_v21 = vstv %s3708_s21  ;;  %v1583_v62 = vmul.f32 %v3594_v17, %v1582_v50  ;;  %s3887_s20 = sld [smem:[#allocation2 + $0x87]]  ;;  %s3899_s21 = sld [smem:[#allocation2 + $0x38]] }
  0xe5   : > { %v521_v46 = vadd.f32 %v3487_v47, %v514_v29  ;;  %v1547_v47 = vmul.f32 %v3637_v43, %v1545_v48  ;;  %2030 = vrot.lane.b32.xlu1 %v2028_v22, %s2814_s15  ;;  %v1560_v48 = vmul.f32 %v3637_v43, %v1558_v39  ;;  %v2111_v56 = vsel %vm285_vm1, %v2109_v19, %v2110_v7  ;;  %v3797_v7 = vld [vmem:[%s2889_s6 + $0xa0] sm:$0xff] }
  0xe6   : > { %1484 = vrot.lane.b32.xlu0 %v1482_v38, %s2814_s15  ;;  %v2097_v38 = vrot.slane %v2093_v10, 2  ;;  %v830_v10 = vmul.f32 %v3694_v23, %v828_v5  ;;  %v1584_v30 = vmul.f32 %v3637_v43, %v1582_v50  ;;  %v3793_v5 = vld [vmem:[%s2889_s6 + $0xb0] sm:$0xff]  ;;  %v2161_v19 = vstv %s3753_s23  ;;  %s2710_s23 = sshll.u32 %s4370_s13, 5  ;;  %s3917_s13 = sld [smem:[#allocation2 + $0x46]] }
  0xe7   : > { %v529_v18 = vadd.f32 %v3554_v55, %v521_v46  ;;  %v1527_v55 = vrot.slane %v1523_v8, 1  ;;  %v3703_v34 = vpop.permute.xlu1 %689  ;;  %v3740_v8 = vsel %vm234_vm0, %v783_v61, %v784_v3  ;;  %v1564_v24 = vrot.slane %v1560_v48, 2 }
  0xe8   : > { %v3705_v35 = vpop.permute.xlu0 %665  ;;  %v2098_v29 = vsel %vm285_vm1, %v2096_v36, %v2097_v38  ;;  %v833_v38 = vrot.slane %v829_v16, 2 }
  0xe9   : > { %v537_v22 = vadd.f32 %v3552_v54, %v529_v18  ;;  %2038 = vrot.lane.b32.xlu1 %v3631_v40, %s2815_s19  ;;  %v1551_v54 = vrot.slane %v1547_v47, 2  ;;  %v1528_v60 = vsel %vm234_vm0, %v1526_v31, %v1527_v55  ;;  %v2129_v47 = vmul.f32 %v3588_v59, %v2128_v53 }
  0xea   : > { %1492 = vrot.lane.b32.xlu0 %v1490_v2, %s2815_s19  ;;  %v2130_v18 = vmul.f32 %v3611_v57, %v2128_v53  ;;  %v2142_v31 = vmul.f32 %v3588_v59, %v2141_v41  ;;  %v2143_v55 = vmul.f32 %v3611_v57, %v2141_v41  ;;  %v834_v59 = vrot.slane %v830_v10, 2 }
  0xeb   : > { %v545_v52 = vadd.f32 %v3582_v12, %v537_v22  ;;  %v3723_v12 = vmul.f32 %v3594_v17, %v1558_v39  ;;  %v3726_v58 = vpop.permute.xlu1 %726  ;;  %v878_v22 = vstv %s3717_s22  ;;  %v1596_v39 = vmul.f32 %v3594_v17, %v1595_v21  ;;  %s3905_s22 = sld [smem:[#allocation2 + $0x89]] }
  0xec   : > { %v3728_v2 = vpop.permute.xlu0 %702  ;;  %v2134_v57 = vrot.slane %v2130_v18, 3  ;;  %v879_v61 = vmul.f32 %v3690_v20, %v878_v22  ;;  %v880_v17 = vmul.f32 %v3694_v23, %v878_v22  ;;  %v2146_v3 = vrot.slane %v2142_v31, 3 }
  0xed   : > { %v556_v40 = vadd.f32 %v3547_v0, %v545_v52  ;;  %2062 = vrot.lane.b32.xlu1 %v2061_v49, %s2814_s15  ;;  %v1552_v0 = vsel %vm285_vm1, %v1550_v33, %v1551_v54  ;;  %v1563_v46 = vrot.slane %v3723_v12, 2  ;;  %v1597_v33 = vmul.f32 %v3637_v43, %v1595_v21 }
  0xee   : > { %1516 = vrot.lane.b32.xlu0 %v1515_v4, %s2814_s15  ;;  %v2133_v52 = vrot.slane %v2129_v47, 3  ;;  %v2147_v49 = vrot.slane %v2143_v55, 3  ;;  %v1600_v23 = vrot.slane %v1596_v39, 3  ;;  %v883_v53 = vrot.slane %v879_v61, 3  ;;  %v3858_v61 = vld [vmem:[%s2889_s6 + $0xa8] sm:$0x7] }
  0xef   : > { %v569_v28 = vadd.f32 %v3580_v11, %v556_v40  ;;  %v758_v11 = vpop.permute.xlu1 %757  ;;  %v1565_v20 = vsel %vm285_vm1, %v1563_v46, %v1564_v24  ;;  %v931_v46 = vstv %s3766_s25  ;;  %v3815_v41 = vmul.f32 %v3793_v5, %v2161_v19  ;;  %s4132_s25 = sld [smem:[#allocation2 + $0xaf]] }
  0xf0   : > { %v3748_v37 = vpop.permute.xlu0 %739  ;;  %v760_v36 = vadd.f32 %v758_v11, %v751_v15  ;;  %v1587_v15 = vrot.slane %v1583_v62, 3  ;;  %v2169_v21 = vstv %s3770_s26  ;;  %v2196_v31 = vstv %s3779_s29  ;;  %s3941_s29 = sld [smem:[#allocation2 + $0x5a]]  ;;  %s4134_s26 = sld [smem:[#allocation2 + $0x7e]] }
  0xf1   : > { %v582_v42 = vadd.f32 %v3618_v26, %v569_v28  ;;  %2075 = vrot.lane.b32.xlu1 %v2074_v6, %s2815_s19  ;;  %v1601_v6 = vrot.slane %v1597_v33, 3  ;;  %v884_v28 = vrot.slane %v880_v17, 3  ;;  %v744_v22 = vstv %s3782_s30  ;;  %s3951_s30 = sld [smem:[#allocation2 + $0xba]] }
  0xf2   : > { %1529 = vrot.lane.b32.xlu0 %v1528_v60, %s2815_s19  ;;  %v835_v60 = vsel %vm285_vm1, %v833_v38, %v834_v59  ;;  %v3843_v38 = vld [vmem:[%s2889_s6 + $0x58] sm:$0x7] }
  0xf3   : > { %v595_v26 = vadd.f32 %v3616_v25, %v582_v42  ;;  %v774_v44 = vpop.permute.xlu1 %773  ;;  %v1602_v10 = vsel %vm336_vm2, %v1600_v23, %v1601_v6  ;;  %v3825_v62 = vsel %vm336_vm2, %v883_v53, %v884_v28 }
  0xf4   : > { %v766_v51 = vpop.permute.xlu0 %765 }
  0xf5   : > { %v606_v25 = vadd.f32 %v3585_v13, %v595_v26  ;;  %v768_v54 = vadd.f32 %v766_v51, %v760_v36  ;;  %2099 = vrot.lane.b32.xlu1 %v2098_v29, %s2814_s15  ;;  %v1588_v13 = vrot.slane %v1584_v30, 3  ;;  %v2135_v29 = vsel %vm336_vm2, %v2133_v52, %v2134_v57  ;;  %v3828_v30 = vld [vmem:[%s2889_s6 + $0x50] sm:$0xff] }
  0xf6   : > { %1553 = vrot.lane.b32.xlu0 %v1552_v0, %s2814_s15  ;;  %v3831_v26 = vmul.f32 %v3828_v30, %v931_v46  ;;  %v2170_v57 = vmul.f32 %v3793_v5, %v2169_v21  ;;  %v1663_v46 = vstv %s3848_s14  ;;  %s4014_s14 = sld [smem:[#allocation2 + $0x3b]] }
  0xf7   : > { %v619_v43 = vadd.f32 %v3651_v1, %v606_v25  ;;  %v776_v4 = vadd.f32 %v774_v44, %v768_v54  ;;  %v811_v12 = vpop.permute.xlu1 %810  ;;  %v1589_v50 = vsel %vm336_vm2, %v1587_v15, %v1588_v13  ;;  %v1650_v44 = vstv %s3787_s4  ;;  %s3961_s4 = sld [smem:[#allocation2 + $0xbc]] }
  0xf8   : > { %v798_v40 = vpop.permute.xlu0 %797  ;;  %v2197_v54 = vmul.f32 %v3793_v5, %v2196_v31  ;;  %v2177_v13 = vstv %s3803_s7  ;;  %s3996_s7 = sld [smem:[#allocation2 + $0x93]] }
  0xf9   : > { %v632_v1 = vadd.f32 %v3649_v63, %v619_v43  ;;  %v787_v48 = vadd.f32 %v3740_v8, %v776_v4  ;;  %v1615_v63 = vstv %s3758_s24  ;;  %2112 = vrot.lane.b32.xlu1 %v2111_v56, %s2815_s19  ;;  %v2148_v8 = vsel %vm336_vm2, %v2146_v3, %v2147_v49  ;;  %s3914_s24 = sld [smem:[#allocation2 + $0x58]] }
  0xfa   : > { %1566 = vrot.lane.b32.xlu0 %v1565_v20, %s2815_s19  ;;  %v1616_v18 = vmul.f32 %v3797_v7, %v1615_v63  ;;  %v988_v56 = vstv %s3775_s28  ;;  %v1623_v43 = vstv %s3799_s5  ;;  %v1631_v3 = vstv %s3805_s8  ;;  %s3931_s28 = sld [smem:[#allocation2 + $0x54]]  ;;  %s3965_s5 = sld [smem:[#allocation2 + $0x8b]] }
  0xfb   : > { %v645_v0 = vadd.f32 %v3673_v9, %v632_v1  ;;  %v800_v16 = vadd.f32 %v798_v40, %v787_v48  ;;  %v951_v9 = vstv %s3772_s27  ;;  %v848_v11 = vpop.permute.xlu1 %847  ;;  %v989_v33 = vmul.f32 %v3828_v30, %v988_v56  ;;  %s3928_s27 = scalar_lea.vmem %s4359_s3, %s2710_s23  ;;  %s3998_s8 = sld [smem:[#allocation2 + $0x62]] }
  0xfc   : > { %v824_v47 = vpop.permute.xlu0 %823  ;;  %v952_v36 = vmul.f32 %v3828_v30, %v951_v9  ;;  %v953_v39 = vmul.f32 %v3843_v38, %v951_v9  ;;  %v990_v25 = vmul.f32 %v3843_v38, %v988_v56  ;;  %v1651_v20 = vmul.f32 %v3797_v7, %v1650_v44  ;;  %s4054_s23 = sld [smem:[#allocation2 + $0x9d]] }
  0xfd   : > { %v652_v42 = vadd.f32 %v3602_v32, %v645_v0  ;;  %v813_v24 = vadd.f32 %v811_v12, %v800_v16  ;;  %v3834_v32 = vld [vmem:[%s2889_s6 + $0xb8] sm:$0x7]  ;;  %2136 = vrot.lane.b32.xlu1 %v2135_v29, %s2814_s15  ;;  %v993_v6 = vrot.slane %v989_v33, 2  ;;  %v1652_v12 = vmul.f32 %v3858_v61, %v1650_v44 }
  0xfe   : > { %1590 = vrot.lane.b32.xlu0 %v1589_v50, %s2814_s15  ;;  %v2198_v15 = vmul.f32 %v3834_v32, %v2196_v31  ;;  %v957_v4 = vrot.slane %v953_v39, 1  ;;  %v994_v1 = vrot.slane %v990_v25, 2  ;;  %v2201_v29 = vrot.slane %v2197_v54, 1 }
  0xff   : > { %v660_v55 = vadd.f32 %v3671_v27, %v652_v42  ;;  %v826_v27 = vadd.f32 %v824_v47, %v813_v24  ;;  %v874_v59 = vpop.permute.xlu1 %873  ;;  %v2209_v48 = vstv %s3822_s9  ;;  %v1624_v28 = vmul.f32 %v3797_v7, %v1623_v43  ;;  %s4001_s9 = sld [smem:[#allocation2 + $0xa1]] }
 0x100   : > { %v861_v52 = vpop.permute.xlu0 %860  ;;  %v2202_v19 = vrot.slane %v2198_v15, 1  ;;  %v2178_v63 = vmul.f32 %v3793_v5, %v2177_v13  ;;  %v1632_v0 = vmul.f32 %v3797_v7, %v1631_v3  ;;  %v2210_v9 = vmul.f32 %v3793_v5, %v2209_v48 }
 0x101   : > { %v668_v51 = vadd.f32 %v3705_v35, %v660_v55  ;;  %v837_v17 = vadd.f32 %v835_v60, %v826_v27  ;;  %2149 = vrot.lane.b32.xlu1 %v2148_v8, %s2815_s19  ;;  %v956_v35 = vrot.slane %v952_v36, 1  ;;  %v1025_v8 = vstv %s3846_s10  ;;  %s4008_s10 = sld [smem:[#allocation2 + $0x6c]] }
 0x102   : > { %1603 = vrot.lane.b32.xlu0 %v1602_v10, %s2815_s19  ;;  %v1656_v10 = vrot.slane %v1652_v12, 1  ;;  %v2211_v42 = vmul.f32 %v3834_v32, %v2209_v48  ;;  %v2203_v21 = vsel %vm234_vm0, %v2201_v29, %v2202_v19  ;;  %v1664_v24 = vmul.f32 %v3797_v7, %v1663_v46 }
 0x103   : > { %v679_v49 = vadd.f32 %v3643_v45, %v668_v51  ;;  %v850_v23 = vadd.f32 %v848_v11, %v837_v17  ;;  %v911_v45 = vpop.permute.xlu1 %910  ;;  %v3893_v47 = vsel %vm234_vm0, %v956_v35, %v957_v4  ;;  %v2222_v31 = vstv %s3863_s16  ;;  %s4020_s16 = sld [smem:[#allocation2 + $0x70]] }
 0x104   : > { %v898_v60 = vpop.permute.xlu0 %897  ;;  %v1026_v36 = vmul.f32 %v3828_v30, %v1025_v8  ;;  %v1027_v39 = vmul.f32 %v3843_v38, %v1025_v8  ;;  %v2214_v25 = vrot.slane %v2210_v9, 1  ;;  %v2215_v44 = vrot.slane %v2211_v42, 1 }
 0x105   : > { %v692_v40 = vadd.f32 %v3703_v34, %v679_v49  ;;  %v863_v53 = vadd.f32 %v861_v52, %v850_v23  ;;  %2164 = vrot.lane.b32.xlu1 %v3815_v41, %s2814_s15  ;;  %v1655_v34 = vrot.slane %v1651_v20, 1  ;;  %v2223_v30 = vmul.f32 %v3793_v5, %v2222_v31 }
 0x106   : > { %1618 = vrot.lane.b32.xlu0 %v1616_v18, %s2814_s15  ;;  %v3896_v18 = vsel %vm285_vm1, %v993_v6, %v994_v1  ;;  %v2224_v38 = vmul.f32 %v3834_v32, %v2222_v31  ;;  %v2246_v52 = vstv %s3874_s18  ;;  %v1668_v54 = vrot.slane %v1664_v24, 1  ;;  %s4033_s18 = sld [smem:[#allocation2 + $0x49]] }
 0x107   : > { %v705_v50 = vadd.f32 %v3728_v2, %v692_v40  ;;  %v876_v16 = vadd.f32 %v874_v59, %v863_v53  ;;  %v3890_v11 = vpop.permute.xlu1 %938  ;;  %v1657_v33 = vsel %vm234_vm0, %v1655_v34, %v1656_v10  ;;  %v1030_v43 = vrot.slane %v1026_v36, 3 }
 0x108   : > { %v924_v41 = vpop.permute.xlu0 %923  ;;  %v1031_v13 = vrot.slane %v1027_v39, 3  ;;  %v2247_v35 = vmul.f32 %v3793_v5, %v2246_v52  ;;  %v2248_v4 = vmul.f32 %v3834_v32, %v2246_v52  ;;  %v1700_v20 = vstv %s3887_s20  ;;  %s4036_s20 = sld [smem:[#allocation2 + $0x4b]] }
 0x109   : > { %v716_v2 = vadd.f32 %v3676_v14, %v705_v50  ;;  %v887_v56 = vadd.f32 %v3825_v62, %v876_v16  ;;  %v1665_v14 = vmul.f32 %v3858_v61, %v1663_v46  ;;  %2172 = vrot.lane.b32.xlu1 %v2170_v57, %s2815_s19  ;;  %v1676_v62 = vstv %s3869_s17  ;;  %s4026_s17 = sld [smem:[#allocation2 + $0x7a]] }
 0x10a   : > { %1626 = vrot.lane.b32.xlu0 %v1624_v28, %s2815_s19  ;;  %v1678_v3 = vmul.f32 %v3858_v61, %v1676_v62  ;;  %v2216_v6 = vsel %vm234_vm0, %v2214_v25, %v2215_v44  ;;  %v1065_v1 = vstv %s3899_s21  ;;  %v2227_v12 = vrot.slane %v2223_v30, 1  ;;  %s4065_s21 = sld [smem:[#allocation2 + $0xab]] }
 0x10b   : > { %v729_v55 = vadd.f32 %v3726_v58, %v716_v2  ;;  %v900_v27 = vadd.f32 %v898_v60, %v887_v56  ;;  %v3920_v51 = vpop.permute.xlu1 %970  ;;  %v1669_v15 = vrot.slane %v1665_v14, 1  ;;  %v2228_v40 = vrot.slane %v2224_v38, 1 }
 0x10c   : > { %v947_v59 = vpop.permute.xlu0 %946  ;;  %v1713_v19 = vstv %s3905_s22  ;;  %v1682_v48 = vrot.slane %v1678_v3, 1  ;;  %v1701_v53 = vmul.f32 %v3797_v7, %v1700_v20  ;;  %v1702_v28 = vmul.f32 %v3858_v61, %v1700_v20  ;;  %s4052_s22 = sld [smem:[#allocation2 + $0x3d]] }
 0x10d   : > { %v742_v58 = vadd.f32 %v3748_v37, %v729_v55  ;;  %v913_v57 = vadd.f32 %v911_v45, %v900_v27  ;;  %v1677_v37 = vmul.f32 %v3797_v7, %v1676_v62  ;;  %2180 = vrot.lane.b32.xlu1 %v2178_v63, %s2813_s11  ;;  %v1670_v60 = vsel %vm234_vm0, %v1668_v54, %v1669_v15 }
 0x10e   : > { %1634 = vrot.lane.b32.xlu0 %v1632_v0, %s2813_s11  ;;  %v1167_v63 = vstv %s3914_s24  ;;  %v2251_v0 = vrot.slane %v2247_v35, 2  ;;  %v2252_v50 = vrot.slane %v2248_v4, 2  ;;  %v1093_v34 = vstv %s3917_s13  ;;  %s4094_s24 = sld [smem:[#allocation2 + $0x9f]]  ;;  %s4096_s13 = sld [smem:[#allocation2 + $0x6e]] }
 0x10f   : > { %v745_v17 = vadd.f32 %v744_v22, %v742_v58  ;;  %v926_v49 = vadd.f32 %v924_v41, %v913_v57  ;;  %v3945_v22 = vpop.permute.xlu1 %1007  ;;  %v1681_v29 = vrot.slane %v1677_v37, 1  ;;  %v3970_v46 = vsel %vm336_vm2, %v1030_v43, %v1031_v13 }
 0x110   : > { %v3947_v23 = vpop.permute.xlu0 %983  ;;  %v2229_v10 = vsel %vm234_vm0, %v2227_v12, %v2228_v40  ;;  %v1714_v9 = vmul.f32 %v3797_v7, %v1713_v19  ;;  %v1715_v42 = vmul.f32 %v3858_v61, %v1713_v19  ;;  %v1143_v24 = vstv %s3931_s28  ;;  %s4153_s28 = sld [smem:[#allocation2 + $0xad]] }
 0x111   : > { %2385 = vst.msk [vmem:[%s3928_s27] sm:$0xff] %vm2384_vm3, %v745_v17  ;;  %v933_v45 = vadd.f32 %v3831_v26, %v926_v49  ;;  %2204 = vrot.lane.b32.xlu1 %v2203_v21, %s2814_s15  ;;  %v2752_v21 = vld [vmem:[%s2889_s6 + $0x98] sm:$0x7]  ;;  %v1683_v14 = vsel %vm234_vm0, %v1681_v29, %v1682_v48  ;;  %v1705_v31 = vrot.slane %v1701_v53, 2  ;;  %v1706_v55 = vrot.slane %v1702_v28, 2 }
 0x112   : > { %1658 = vrot.lane.b32.xlu0 %v1657_v33, %s2814_s15  ;;  %v1169_v56 = vmul.f32 %v2752_v21, %v1167_v63  ;;  %v2253_v62 = vsel %vm285_vm1, %v2251_v0, %v2252_v50  ;;  %v1095_v27 = vmul.f32 %v2752_v21, %v1093_v34  ;;  %v1180_v33 = vstv %s3941_s29  ;;  %s4155_s29 = sld [smem:[#allocation2 + $0x7c]] }
 0x113   : > { %v941_v26 = vadd.f32 %v3890_v11, %v933_v45  ;;  %v3967_v8 = vpop.permute.xlu1 %1044  ;;  %v3978_v11 = vld [vmem:[%s2889_s6 + $0x90] sm:$0xff]  ;;  %v1718_v58 = vrot.slane %v1714_v9, 2  ;;  %v1145_v30 = vmul.f32 %v2752_v21, %v1143_v24  ;;  %v2259_v38 = vstv %s3951_s30  ;;  %s4167_s30 = sld [smem:[#allocation2 + $0x57]] }
 0x114   : > { %v3972_v16 = vpop.permute.xlu0 %1020  ;;  %v1168_v41 = vmul.f32 %v3978_v11, %v1167_v63  ;;  %v1094_v36 = vmul.f32 %v3978_v11, %v1093_v34  ;;  %v1719_v52 = vrot.slane %v1715_v42, 2  ;;  %v1173_v54 = vrot.slane %v1169_v56, 2 }
 0x115   : > { %v949_v2 = vadd.f32 %v947_v59, %v941_v26  ;;  %2217 = vrot.lane.b32.xlu1 %v2216_v6, %s2815_s19  ;;  %v1144_v59 = vmul.f32 %v3978_v11, %v1143_v24  ;;  %v1707_v15 = vsel %vm285_vm1, %v1705_v31, %v1706_v55  ;;  %v1181_v37 = vmul.f32 %v3978_v11, %v1180_v33 }
 0x116   : > { %1671 = vrot.lane.b32.xlu0 %v1670_v60, %s2815_s19  ;;  %v1172_v57 = vrot.slane %v1168_v41, 2  ;;  %v1182_v17 = vmul.f32 %v2752_v21, %v1180_v33  ;;  %v2272_v43 = vstv %s3961_s4  ;;  %v2261_v3 = vmul.f32 %v3834_v32, %v2259_v38  ;;  %v4062_v41 = vld [vmem:[%s2889_s6 + $0xe0] sm:$0xff]  ;;  %s4179_s4 = sld [smem:[#allocation2 + $0x59]] }
 0x117   : > { %v960_v39 = vadd.f32 %v3893_v47, %v949_v2  ;;  %v3990_v25 = vpop.permute.xlu1 %1072  ;;  %v1726_v49 = vstv %s3965_s5  ;;  %v1098_v20 = vrot.slane %v1094_v36, 1  ;;  %v1099_v6 = vrot.slane %v1095_v27, 1  ;;  %v4085_v27 = vld [vmem:[%s2889_s6 + $0x20] sm:$0xff]  ;;  %s4190_s5 = sld [smem:[#allocation2 + $0xb9]] }
 0x118   : > { %v3992_v44 = vpop.permute.xlu0 %1057  ;;  %v1148_v12 = vrot.slane %v1144_v59, 2  ;;  %v1149_v40 = vrot.slane %v1145_v30, 2  ;;  %v1174_v60 = vsel %vm285_vm1, %v1172_v57, %v1173_v54  ;;  %v2273_v29 = vmul.f32 %v3793_v5, %v2272_v43 }
 0x119   : > { %v973_v47 = vadd.f32 %v3920_v51, %v960_v39  ;;  %2230 = vrot.lane.b32.xlu1 %v2229_v10, %s2813_s11  ;;  %v2260_v51 = vmul.f32 %v3793_v5, %v2259_v38  ;;  %v1185_v19 = vrot.slane %v1181_v37, 2  ;;  %v2274_v48 = vmul.f32 %v3834_v32, %v2272_v43  ;;  %v4079_v39 = vld [vmem:[%s2889_s6 + $0x30] sm:$0xff]  ;;  %v4101_v38 = vld [vmem:[%s2889_s6 + $0x38] sm:$0x7] }
 0x11a   : > { %1684 = vrot.lane.b32.xlu0 %v1683_v14, %s2813_s11  ;;  %v1727_v53 = vmul.f32 %v3797_v7, %v1726_v49  ;;  %v1186_v5 = vrot.slane %v1182_v17, 2  ;;  %v2265_v26 = vrot.slane %v2261_v3, 2  ;;  %v1066_v0 = vmul.f32 %v3978_v11, %v1065_v1  ;;  %v4071_v14 = vld [vmem:[%s2889_s6 + $0xd0] sm:$0xff]  ;;  %v4123_v3 = vld [vmem:[%s2889_s6 + $0xd8] sm:$0x7] }
 0x11b   : > { %v986_v13 = vadd.f32 %v3947_v23, %v973_v47  ;;  %v4016_v35 = vpop.permute.xlu1 %1088  ;;  %v1720_v23 = vsel %vm285_vm1, %v1718_v58, %v1719_v52  ;;  %v2264_v63 = vrot.slane %v2260_v51, 2  ;;  %v4044_v7 = vsel %vm234_vm0, %v1098_v20, %v1099_v6 }
 0x11c   : > { %v4018_v4 = vpop.permute.xlu0 %1080  ;;  %v1296_v34 = vstv %s3998_s8  ;;  %v2277_v10 = vrot.slane %v2273_v29, 2  ;;  %v1870_v9 = vstv %s4001_s9  ;;  %v2278_v42 = vrot.slane %v2274_v48, 2  ;;  %v4138_v29 = vld [vmem:[%s2889_s6 + $0xf0] sm:$0xff]  ;;  %s4223_s8 = sld [smem:[#allocation2 + $0x8a]]  ;;  %s4228_s9 = sld [smem:[#allocation2 + $0x8c]] }
 0x11d   : > { %v997_v45 = vadd.f32 %v3896_v18, %v986_v13  ;;  %2254 = vrot.lane.b32.xlu1 %v2253_v62, %s2814_s15  ;;  %v1728_v18 = vmul.f32 %v3858_v61, %v1726_v49  ;;  %v4049_v61 = vsel %vm285_vm1, %v1148_v12, %v1149_v40  ;;  %v1731_v2 = vrot.slane %v1727_v53, 2  ;;  %v4119_v13 = vld [vmem:[%s2889_s6 + $0x28] sm:$0x7] }
 0x11e   : > { %1708 = vrot.lane.b32.xlu0 %v1707_v15, %s2814_s15  ;;  %v1746_v21 = vstv %s4008_s10  ;;  %v1187_v56 = vsel %vm285_vm1, %v1185_v19, %v1186_v5  ;;  %v2266_v24 = vsel %vm285_vm1, %v2264_v63, %v2265_v26  ;;  %v1200_v31 = vstv %s4014_s14  ;;  %v4113_v15 = vld [vmem:[%s2889_s6 + $0xe8] sm:$0x7]  ;;  %s4245_s10 = sld [smem:[#allocation2 + $0xbd]]  ;;  %s2611_s14 = sld [smem:[#allocation2 + $0x63]] }
 0x11f   : > { %v1010_v28 = vadd.f32 %v3945_v22, %v997_v45  ;;  %v4041_v50 = vpop.permute.xlu1 %1125  ;;  %v1842_v22 = vstv %s3996_s7  ;;  %v1732_v11 = vrot.slane %v1728_v18, 2  ;;  %v4091_v33 = vmul.f32 %v4079_v39, %v1870_v9  ;;  %v4148_v5 = vld [vmem:[%s2889_s6 + $0xf8] sm:$0x7]  ;;  %s4217_s7 = sld [smem:[#allocation2 + $0xbb]] }
 0x120   : > { %v4046_v32 = vpop.permute.xlu0 %1112  ;;  %v4082_v62 = vmul.f32 %v4079_v39, %v1842_v22  ;;  %v1324_v58 = vstv %s4020_s16  ;;  %v1747_v30 = vmul.f32 %v4062_v41, %v1746_v21  ;;  %v4104_v47 = vmul.f32 %v4101_v38, %v1870_v9  ;;  %s2669_s16 = sld [smem:[#allocation2 + $0x94]] }
 0x121   : > { %v1023_v1 = vadd.f32 %v3972_v16, %v1010_v28  ;;  %1721 = vrot.lane.b32.xlu1 %v1720_v23, %s2815_s19  ;;  %v1773_v52 = vstv %s4026_s17  ;;  %v2279_v57 = vsel %vm285_vm1, %v2277_v10, %v2278_v42  ;;  %v1201_v54 = vmul.f32 %v4071_v14, %v1200_v31  ;;  %s2672_s17 = sld [smem:[#allocation2 + $0xa2]] }
 0x122   : > { %1175 = vrot.lane.b32.xlu0 %v1174_v60, %s2815_s19  ;;  %v1227_v37 = vstv %s4033_s18  ;;  %v1325_v43 = vmul.f32 %v4085_v27, %v1324_v58  ;;  %v1326_v51 = vmul.f32 %v4119_v13, %v1324_v58  ;;  %v1240_v49 = vstv %s4036_s20  ;;  %s2675_s18 = sld [smem:[#allocation2 + $0xb0]]  ;;  %s2620_s20 = sld [smem:[#allocation2 + $0x8d]] }
 0x123   : > { %v1034_v16 = vadd.f32 %v3970_v46, %v1023_v1  ;;  %v4074_v55 = vpop.permute.xlu1 %1162  ;;  %v4088_v46 = vmul.f32 %v4085_v27, %v1296_v34  ;;  %v1875_v12 = vrot.slane %v4091_v33, 1  ;;  %v1208_v40 = vstv %s4052_s22  ;;  %s2678_s22 = sld [smem:[#allocation2 + $0xbe]] }
 0x124   : > { %v4076_v36 = vpop.permute.xlu0 %1138  ;;  %v2292_v45 = vstv %s4054_s23  ;;  %v1876_v60 = vrot.slane %v4104_v47, 1  ;;  %v1775_v19 = vmul.f32 %v4113_v15, %v1773_v52  ;;  %v1228_v48 = vmul.f32 %v4071_v14, %v1227_v37  ;;  %s2625_s23 = sld [smem:[#allocation2 + $0x69]] }
 0x125   : > { %v1047_v59 = vadd.f32 %v3967_v8, %v1034_v16  ;;  %1188 = vrot.lane.b32.xlu1 %v1187_v56, %s2813_s11  ;;  %v1733_v8 = vsel %vm285_vm1, %v1731_v2, %v1732_v11  ;;  %v1229_v53 = vmul.f32 %v4123_v3, %v1227_v37  ;;  %v1241_v18 = vmul.f32 %v4071_v14, %v1240_v49 }
 0x126   : > { %2267 = vrot.lane.b32.xlu0 %v2266_v24, %s2815_s19  ;;  %v1242_v28 = vmul.f32 %v4123_v3, %v1240_v49  ;;  %v2319_v63 = vstv %s4065_s21  ;;  %v1330_v22 = vrot.slane %v1326_v51, 1  ;;  %v1209_v1 = vmul.f32 %v4071_v14, %v1208_v40  ;;  %s2629_s21 = sld [smem:[#allocation2 + $0x77]] }
 0x127   : > { %v1060_v17 = vadd.f32 %v3992_v44, %v1047_v59  ;;  %v4126_v20 = vpop.permute.xlu1 %1849  ;;  %v1774_v44 = vmul.f32 %v4062_v41, %v1773_v52  ;;  %v2293_v9 = vmul.f32 %v4138_v29, %v2292_v45  ;;  %v2300_v42 = vstv %s4094_s24  ;;  %s2683_s24 = sld [smem:[#allocation2 + $0x9a]] }
 0x128   : > { %v1304_v6 = vpop.permute.xlu0 %1303  ;;  %v1754_v2 = vstv %s4096_s13  ;;  %v1779_v16 = vrot.slane %v1775_v19, 1  ;;  %v2321_v56 = vmul.f32 %v4148_v5, %v2319_v63  ;;  %v1232_v24 = vrot.slane %v1228_v48, 1  ;;  %s2687_s13 = sld [smem:[#allocation2 + $0xa8]] }
 0x129   : > { %v1067_v23 = vadd.f32 %v1066_v0, %v1060_v17  ;;  %2280 = vrot.lane.b32.xlu1 %v2279_v57, %s2813_s11  ;;  %v1329_v0 = vrot.slane %v1325_v43, 1  ;;  %v1778_v11 = vrot.slane %v1774_v44, 1  ;;  %v1233_v31 = vrot.slane %v1229_v53, 1 }
 0x12a   : > { %1734 = vrot.lane.b32.xlu0 %v1733_v8, %s2813_s11  ;;  %s4163_s11 = sld [smem:[#allocation2 + $0x88]]  ;;  %v1245_v33 = vrot.slane %v1241_v18, 1  ;;  %v1246_v58 = vrot.slane %v1242_v28, 1  ;;  %v1306_v59 = vadd.f32 %v1304_v6, %v4088_v46  ;;  %v4172_v47 = vsel %vm234_vm0, %v1875_v12, %v1876_v60 }
 0x12b   : > { %v1075_v26 = vadd.f32 %v3990_v25, %v1067_v23  ;;  %v1858_v34 = vpop.permute.xlu1 %1857  ;;  %v2320_v25 = vmul.f32 %v4138_v29, %v2319_v63  ;;  %v1331_v52 = vsel %vm234_vm0, %v1329_v0, %v1330_v22  ;;  %v2301_v8 = vmul.f32 %v4138_v29, %v2300_v42 }
 0x12c   : > { %v1312_v10 = vpop.permute.xlu0 %1311  ;;  %v1920_v37 = vstv %s4132_s25  ;;  %v1374_v17 = vstv %s4134_s26  ;;  %v2325_v51 = vrot.slane %v2321_v56, 1  ;;  %v1780_v49 = vsel %vm234_vm0, %v1778_v11, %v1779_v16  ;;  %s2633_s25 = sld [smem:[#allocation2 + $0x85]]  ;;  %s2691_s26 = sld [smem:[#allocation2 + $0xb6]] }
 0x12d   : > { %v1083_v21 = vadd.f32 %v4018_v4, %v1075_v26  ;;  %1749 = vrot.lane.b32.xlu1 %v1747_v30, %s2814_s15  ;;  %v1314_v46 = vadd.f32 %v1312_v10, %v1306_v59  ;;  %v2324_v43 = vrot.slane %v2320_v25, 1  ;;  %v1234_v6 = vsel %vm234_vm0, %v1232_v24, %v1233_v31 }
 0x12e   : > { %1203 = vrot.lane.b32.xlu0 %v1201_v54, %s2814_s15  ;;  %v1755_v54 = vmul.f32 %v4062_v41, %v1754_v2  ;;  %v1247_v12 = vsel %vm234_vm0, %v1245_v33, %v1246_v58  ;;  %v2332_v44 = vstv %s4153_s28  ;;  %v1786_v23 = vstv %s4155_s29  ;;  %s2584_s28 = sld [smem:[#allocation2 + $0x47]]  ;;  %s4302_s29 = sld [smem:[#allocation2 + $0x6a]] }
 0x12f   : > { %v1091_v4 = vadd.f32 %v4016_v35, %v1083_v21  ;;  %v1866_v57 = vpop.permute.xlu1 %1865  ;;  %v4195_v19 = vmul.f32 %v4079_v39, %v1920_v37  ;;  %v4198_v48 = vmul.f32 %v4101_v38, %v1920_v37  ;;  %v4201_v53 = vmul.f32 %v4085_v27, %v1374_v17 }
 0x130   : > { %v1320_v30 = vpop.permute.xlu0 %1319  ;;  %v1852_v28 = vadd.f32 %v4126_v20, %v4082_v62  ;;  %v2326_v63 = vsel %vm234_vm0, %v2324_v43, %v2325_v51  ;;  %v1810_v26 = vstv %s4163_s11  ;;  %v2333_v0 = vmul.f32 %v4138_v29, %v2332_v44  ;;  %s4306_s11 = sld [smem:[#allocation2 + $0x78]] }
 0x131   : > { %v1102_v35 = vadd.f32 %v4044_v7, %v1091_v4  ;;  %1211 = vrot.lane.b32.xlu1 %v1209_v1, %s2815_s19  ;;  %v1322_v45 = vadd.f32 %v1320_v30, %v1314_v46  ;;  %v2334_v22 = vmul.f32 %v4148_v5, %v2332_v44  ;;  %v1787_v1 = vmul.f32 %v4062_v41, %v1786_v23 }
 0x132   : > { %2295 = vrot.lane.b32.xlu0 %v2293_v9, %s2814_s15  ;;  %v1264_v10 = vstv %s4167_s30  ;;  %v1860_v9 = vadd.f32 %v1858_v34, %v1852_v28  ;;  %v1788_v62 = vmul.f32 %v4113_v15, %v1786_v23  ;;  %v1379_v11 = vrot.slane %v4201_v53, 2  ;;  %s4311_s30 = sld [smem:[#allocation2 + $0x55]] }
 0x133   : > { %v1115_v40 = vadd.f32 %v4046_v32, %v1102_v35  ;;  %v4192_v7 = vpop.permute.xlu1 %1889  ;;  %v1376_v32 = vmul.f32 %v4119_v13, %v1374_v17  ;;  %v1333_v42 = vadd.f32 %v1331_v52, %v1322_v45  ;;  %v1811_v21 = vmul.f32 %v4062_v41, %v1810_v26 }
 0x134   : > { %v1344_v60 = vpop.permute.xlu0 %1343  ;;  %v1812_v16 = vmul.f32 %v4113_v15, %v1810_v26  ;;  %v1277_v25 = vstv %s4179_s4  ;;  %v1868_v34 = vadd.f32 %v1866_v57, %v1860_v9  ;;  %v1265_v56 = vmul.f32 %v4071_v14, %v1264_v10  ;;  %s4314_s4 = sld [smem:[#allocation2 + $0x9b]] }
 0x135   : > { %v1128_v18 = vadd.f32 %v4041_v50, %v1115_v40  ;;  %2303 = vrot.lane.b32.xlu1 %v2301_v8, %s2815_s19  ;;  %v1266_v24 = vmul.f32 %v4123_v3, %v1264_v10  ;;  %v1380_v31 = vrot.slane %v1376_v32, 2  ;;  %v2337_v33 = vrot.slane %v2333_v0, 1 }
 0x136   : > { %1757 = vrot.lane.b32.xlu0 %v1755_v54, %s2815_s19  ;;  %v2338_v58 = vrot.slane %v2334_v22, 1  ;;  %v1791_v4 = vrot.slane %v1787_v1, 1  ;;  %v1346_v59 = vadd.f32 %v1344_v60, %v1333_v42  ;;  %v1792_v52 = vrot.slane %v1788_v62, 1 }
 0x137   : > { %v1141_v50 = vadd.f32 %v4076_v36, %v1128_v18  ;;  %v1903_v20 = vpop.permute.xlu1 %1902  ;;  %v2356_v30 = vstv %s4190_s5  ;;  %v1815_v54 = vrot.slane %v1811_v21, 2  ;;  %v1816_v37 = vrot.slane %v1812_v16, 2  ;;  %s4316_s5 = sld [smem:[#allocation2 + $0xa9]] }
 0x138   : > { %v1357_v2 = vpop.permute.xlu0 %1356  ;;  %v1278_v17 = vmul.f32 %v4071_v14, %v1277_v25  ;;  %v1279_v35 = vmul.f32 %v4123_v3, %v1277_v25  ;;  %v1879_v46 = vadd.f32 %v4172_v47, %v1868_v34  ;;  %v1269_v51 = vrot.slane %v1265_v56, 2 }
 0x139   : > { %v1152_v36 = vadd.f32 %v4049_v61, %v1141_v50  ;;  %1781 = vrot.lane.b32.xlu1 %v1780_v49, %s2814_s15  ;;  %v1359_v43 = vadd.f32 %v1357_v2, %v1346_v59  ;;  %v1270_v49 = vrot.slane %v1266_v24, 2  ;;  %v2357_v40 = vmul.f32 %v4138_v29, %v2356_v30 }
 0x13a   : > { %1235 = vrot.lane.b32.xlu0 %v1234_v6, %s2814_s15  ;;  %v1926_v6 = vrot.slane %v4198_v48, 2  ;;  %v2358_v45 = vmul.f32 %v4148_v5, %v2356_v30  ;;  %v2339_v44 = vsel %vm234_vm0, %v2337_v33, %v2338_v58  ;;  %v1793_v23 = vsel %vm234_vm0, %v1791_v4, %v1792_v52 }
 0x13b   : > { %v4234_v61 = vadd.f32 %v4074_v55, %v1152_v36  ;;  %v1916_v57 = vpop.permute.xlu1 %1915  ;;  %v1925_v55 = vrot.slane %v4195_v19, 2  ;;  %v1381_v53 = vsel %vm285_vm1, %v1379_v11, %v1380_v31  ;;  %v1817_v19 = vsel %vm285_vm1, %v1815_v54, %v1816_v37 }
 0x13c   : > { %v1370_v8 = vpop.permute.xlu0 %1369  ;;  %v1282_v48 = vrot.slane %v1278_v17, 2  ;;  %v1823_v18 = vstv %s4223_s8  ;;  %v1892_v28 = vadd.f32 %v4192_v7, %v1879_v46  ;;  %v1283_v26 = vrot.slane %v1279_v35, 2  ;;  %s4329_s8 = sld [smem:[#allocation2 + $0xb7]] }
 0x13d   : > { %1248 = vrot.lane.b32.xlu1 %v1247_v12, %s2815_s19  ;;  %v1372_v47 = vadd.f32 %v1370_v8, %v1359_v43  ;;  %v2369_v12 = vstv %s4217_s7  ;;  %v1424_v0 = vstv %s4228_s9  ;;  %v2361_v22 = vrot.slane %v2357_v40, 2  ;;  %s4322_s7 = sld [smem:[#allocation2 + $0x86]]  ;;  %s2590_s9 = sld [smem:[#allocation4 + $0x1]] }
 0x13e   : > { %2327 = vrot.lane.b32.xlu0 %v2326_v63, %s2814_s15  ;;  %v1271_v63 = vsel %vm285_vm1, %v1269_v51, %v1270_v49  ;;  %v2362_v1 = vrot.slane %v2358_v45, 2  ;;  %v2370_v10 = vmul.f32 %v4138_v29, %v2369_v12  ;;  %v2371_v50 = vmul.f32 %v4148_v5, %v2369_v12 }
 0x13f   : > { %v1940_v60 = vpop.permute.xlu1 %1939  ;;  %v1905_v9 = vadd.f32 %v1903_v20, %v1892_v28  ;;  %v1383_v42 = vadd.f32 %v1381_v53, %v1372_v47  ;;  %v1824_v62 = vmul.f32 %v4062_v41, %v1823_v18  ;;  %v1825_v7 = vmul.f32 %v4113_v15, %v1823_v18  ;;  %v2757_v18 = vld [vmem:[%s2889_s6 + $0x60] sm:$0xff] }
 0x140   : > { %v1394_v32 = vpop.permute.xlu0 %1393  ;;  %v1425_v21 = vmul.f32 %v4085_v27, %v1424_v0  ;;  %v1426_v16 = vmul.f32 %v4119_v13, %v1424_v0  ;;  %v1927_v36 = vsel %vm285_vm1, %v1925_v55, %v1926_v6  ;;  %v1284_v20 = vsel %vm285_vm1, %v1282_v48, %v1283_v26 }
 0x141   : > { %2340 = vrot.lane.b32.xlu1 %v2339_v44, %s2815_s19  ;;  %v1918_v25 = vadd.f32 %v1916_v57, %v1905_v9  ;;  %v2363_v34 = vsel %vm285_vm1, %v2361_v22, %v2362_v1  ;;  %v1970_v56 = vstv %s4245_s10  ;;  %v2374_v24 = vrot.slane %v2370_v10, 2  ;;  %s2706_s10 = sld [smem:[#allocation4 + $0x3]] }
 0x142   : > { %1794 = vrot.lane.b32.xlu0 %v1793_v23, %s2815_s19  ;;  %v1396_v31 = vadd.f32 %v1394_v32, %v1383_v42  ;;  %v2375_v33 = vrot.slane %v2371_v50, 2  ;;  %v1828_v58 = vrot.slane %v1824_v62, 2  ;;  %v1829_v4 = vrot.slane %v1825_v7, 2  ;;  %v2758_v50 = vld [vmem:[%s2889_s6 + $0x68] sm:$0x7] }
 0x143   : > { %v1953_v2 = vpop.permute.xlu1 %1952  ;;  %v1429_v13 = vrot.slane %v1425_v21, 3  ;;  %v1430_v52 = vrot.slane %v1426_v16, 3  ;;  %v1929_v30 = vadd.f32 %v1927_v36, %v1918_v25  ;;  %v1971_v8 = vmul.f32 %v4079_v39, %v1970_v56  ;;  %v2759_v21 = vld [vmem:[%s2889_s6 + $0x70] sm:$0xff] }
 0x144   : > { %v1407_v11 = vpop.permute.xlu0 %1406  ;;  %v1972_v54 = vmul.f32 %v4101_v38, %v1970_v56  ;;  %v2376_v17 = vsel %vm285_vm1, %v2374_v24, %v2375_v33  ;;  %v1830_v35 = vsel %vm285_vm1, %v1828_v58, %v1829_v4  ;;  %v1477_v53 = vstv %s2611_s14  ;;  %v2760_v24 = vld [vmem:[%s2889_s6 + $0x78] sm:$0x7]  ;;  %s2648_s14 = sld [smem:[#allocation4 + $0x2]] }
 0x145   : > { %1818 = vrot.lane.b32.xlu1 %v1817_v19, %s2814_s15  ;;  %v1409_v57 = vadd.f32 %v1407_v11, %v1396_v31  ;;  %v1431_v43 = vsel %vm336_vm2, %v1429_v13, %v1430_v52  ;;  %v1942_v49 = vadd.f32 %v1940_v60, %v1929_v30  ;;  %v1975_v55 = vrot.slane %v1971_v8, 3 }
 0x146   : > { %1272 = vrot.lane.b32.xlu0 %v1271_v63, %s2814_s15  ;;  %v1976_v6 = vrot.slane %v1972_v54, 3  ;;  %v1478_v28 = vmul.f32 %v2757_v18, %v1477_v53  ;;  %v2023_v1 = vstv %s2669_s16  ;;  %v2043_v25 = vstv %s2672_s17 }
 0x147   : > { %v1966_v27 = vpop.permute.xlu1 %1965  ;;  %v1955_v39 = vadd.f32 %v1953_v2, %v1942_v49  ;;  %v2024_v16 = vmul.f32 %v2759_v21, %v2023_v1  ;;  %v2044_v56 = vmul.f32 %v2759_v21, %v2043_v25  ;;  %v2045_v31 = vmul.f32 %v2760_v24, %v2043_v25 }
 0x148   : > { %v1420_v59 = vpop.permute.xlu0 %1419  ;;  %v1977_v44 = vsel %vm336_vm2, %v1975_v55, %v1976_v6 }
 0x149   : > { %1285 = vrot.lane.b32.xlu1 %v1284_v20, %s2815_s19  ;;  %v1422_v37 = vadd.f32 %v1420_v59, %v1409_v57  ;;  %v1968_v47 = vadd.f32 %v1966_v27, %v1955_v39  ;;  %v2048_v52 = vrot.slane %v2044_v56, 1  ;;  %v2049_v30 = vrot.slane %v2045_v31, 1 }
 0x14a   : > { %2364 = vrot.lane.b32.xlu0 %v2363_v34, %s2814_s15  ;;  %s2614_s15 = sld [smem:[#allocation2 + $0x71]] }
 0x14b   : > { %v1990_v46 = vpop.permute.xlu1 %1989  ;;  %v1433_v38 = vadd.f32 %v1431_v43, %v1422_v37  ;;  %v1979_v32 = vadd.f32 %v1977_v44, %v1968_v47  ;;  %v2080_v43 = vstv %s2675_s18 }
 0x14c   : > { %v1444_v51 = vpop.permute.xlu0 %1443 }
 0x14d   : > { %2377 = vrot.lane.b32.xlu1 %v2376_v17, %s2815_s19  ;;  %v1446_v23 = vadd.f32 %v1444_v51, %v1433_v38  ;;  %v1992_v22 = vadd.f32 %v1990_v46, %v1979_v32  ;;  %v2050_v51 = vsel %vm234_vm0, %v2048_v52, %v2049_v30 }
 0x14e   : > { %1831 = vrot.lane.b32.xlu0 %v1830_v35, %s2815_s19  ;;  %s4281_s19 = sld [smem:[#allocation2 + $0x7f]] }
 0x14f   : > { %v2003_v40 = vpop.permute.xlu1 %2002 }
 0x150   : > { %v1457_v45 = vpop.permute.xlu0 %1456  ;;  %v1497_v63 = vstv %s2614_s15  ;;  %v2005_v42 = vadd.f32 %v2003_v40, %v1992_v22  ;;  %v2081_v40 = vmul.f32 %v2759_v21, %v2080_v43 }
 0x151   : > { %v1459_v19 = vadd.f32 %v1457_v45, %v1446_v23  ;;  %v1498_v10 = vmul.f32 %v2757_v18, %v1497_v63  ;;  %v1499_v9 = vmul.f32 %v2758_v50, %v1497_v63  ;;  %v2082_v45 = vmul.f32 %v2760_v24, %v2080_v43 }
 0x152   : > { %v1571_v23 = vstv %s2620_s20  ;;  %v2085_v32 = vrot.slane %v2081_v40, 2  ;;  %v2763_v40 = vld [vmem:[%s2889_s6 + $0xb0] sm:$0xff] }
 0x153   : > { %v2016_v12 = vpop.permute.xlu1 %2015  ;;  %v1502_v36 = vrot.slane %v1498_v10, 1  ;;  %v1503_v20 = vrot.slane %v1499_v9, 1  ;;  %v2117_v10 = vstv %s2678_s22 }
 0x154   : > { %v1470_v60 = vpop.permute.xlu0 %1469  ;;  %v2018_v11 = vadd.f32 %v2016_v12, %v2005_v42  ;;  %v1534_v59 = vstv %s4281_s19 }
 0x155   : > { %v1472_v48 = vadd.f32 %v1470_v60, %v1459_v19  ;;  %v1504_v13 = vsel %vm234_vm0, %v1502_v36, %v1503_v20  ;;  %v1535_v54 = vmul.f32 %v2757_v18, %v1534_v59  ;;  %v1536_v37 = vmul.f32 %v2758_v50, %v1534_v59 }
 0x156   : > { %v2025_v4 = vadd.f32 %v2024_v16, %v2018_v11  ;;  %v2086_v19 = vrot.slane %v2082_v45, 2  ;;  %v2119_v11 = vmul.f32 %v2760_v24, %v2117_v10  ;;  %v1611_v24 = vstv %s2625_s23 }
 0x157   : > { %v2031_v26 = vpop.permute.xlu1 %2030  ;;  %v1479_v62 = vadd.f32 %v1478_v28, %v1472_v48  ;;  %v1539_v55 = vrot.slane %v1535_v54, 2  ;;  %v1540_v6 = vrot.slane %v1536_v37, 2  ;;  %v1572_v48 = vmul.f32 %v2757_v18, %v1571_v23 }
 0x158   : > { %v1485_v0 = vpop.permute.xlu0 %1484  ;;  %v2033_v17 = vadd.f32 %v2031_v26, %v2025_v4  ;;  %v1573_v28 = vmul.f32 %v2758_v50, %v1571_v23  ;;  %v2087_v9 = vsel %vm285_vm1, %v2085_v32, %v2086_v19 }
 0x159   : > { %v1487_v34 = vadd.f32 %v1485_v0, %v1479_v62  ;;  %v1541_v12 = vsel %vm285_vm1, %v1539_v55, %v1540_v6  ;;  %v1576_v42 = vrot.slane %v1572_v48, 3  ;;  %v2762_v55 = vld [vmem:[%s2889_s6 + $0xa8] sm:$0x7] }
 0x15a   : > { %v1577_v62 = vrot.slane %v1573_v28, 3  ;;  %v2764_v28 = vld [vmem:[%s2889_s6 + $0xb8] sm:$0x7] }
 0x15b   : > { %v2039_v7 = vpop.permute.xlu1 %2038 }
 0x15c   : > { %v1493_v2 = vpop.permute.xlu0 %1492  ;;  %v2041_v46 = vadd.f32 %v2039_v7, %v2033_v17  ;;  %v1578_v18 = vsel %vm336_vm2, %v1576_v42, %v1577_v62  ;;  %v1639_v17 = vstv %s2629_s21 }
 0x15d   : > { %v1495_v27 = vadd.f32 %v1493_v2, %v1487_v34  ;;  %v2118_v2 = vmul.f32 %v2759_v21, %v2117_v10  ;;  %v2123_v34 = vrot.slane %v2119_v11, 3  ;;  %v1641_v6 = vmul.f32 %v2762_v55, %v1639_v17 }
 0x15e   : > { %v2052_v47 = vadd.f32 %v2050_v51, %v2041_v46 }
 0x15f   : > { %v2063_v33 = vpop.permute.xlu1 %2062  ;;  %v1506_v35 = vadd.f32 %v1504_v13, %v1495_v27  ;;  %v2122_v50 = vrot.slane %v2118_v2, 3 }
 0x160   : > { %v1517_v58 = vpop.permute.xlu0 %1516  ;;  %v2065_v63 = vadd.f32 %v2063_v33, %v2052_v47 }
 0x161   : > { %v1519_v38 = vadd.f32 %v1517_v58, %v1506_v35  ;;  %v2124_v21 = vsel %vm336_vm2, %v2122_v50, %v2123_v34  ;;  %v2157_v35 = vstv %s2683_s24  ;;  %v2235_v34 = vstv %s2691_s26 }
 0x162   : > { %v2158_v45 = vmul.f32 %v2763_v40, %v2157_v35 }
 0x163   : > { %v2076_v57 = vpop.permute.xlu1 %2075 }
 0x164   : > { %v1530_v8 = vpop.permute.xlu0 %1529  ;;  %v2078_v1 = vadd.f32 %v2076_v57, %v2065_v63  ;;  %v2761_v57 = vld [vmem:[%s2889_s6 + $0xa0] sm:$0xff]  ;;  %s4299_s6 = sld [smem:[#allocation2 + $0x39]] }
 0x165   : > { %v1532_v44 = vadd.f32 %v1530_v8, %v1519_v38  ;;  %v1612_v8 = vmul.f32 %v2761_v57, %v1611_v24  ;;  %v2236_v24 = vmul.f32 %v2763_v40, %v2235_v34 }
 0x166   : > { %v2089_v36 = vadd.f32 %v2087_v9, %v2078_v1  ;;  %v1689_v9 = vstv %s2633_s25 }
 0x167   : > { %v2100_v49 = vpop.permute.xlu1 %2099  ;;  %v1543_v26 = vadd.f32 %v1541_v12, %v1532_v44  ;;  %v2185_v44 = vstv %s2687_s13  ;;  %v1645_v12 = vrot.slane %v1641_v6, 1 }
 0x168   : > { %v1554_v39 = vpop.permute.xlu0 %1553  ;;  %v2102_v33 = vadd.f32 %v2100_v49, %v2089_v36  ;;  %v1640_v49 = vmul.f32 %v2761_v57, %v1639_v17  ;;  %v2186_v48 = vmul.f32 %v2763_v40, %v2185_v44  ;;  %v2187_v63 = vmul.f32 %v2764_v28, %v2185_v44 }
 0x169   : > { %v1556_v7 = vadd.f32 %v1554_v39, %v1543_v26 }
 0x16a   : > { %v1644_v23 = vrot.slane %v1640_v49, 1  ;;  %v2190_v42 = vrot.slane %v2186_v48, 1  ;;  %v2191_v62 = vrot.slane %v2187_v63, 1  ;;  %v1196_v17 = vstv %s4299_s6 }
 0x16b   : > { %v2113_v60 = vpop.permute.xlu1 %2112 }
 0x16c   : > { %v1567_v53 = vpop.permute.xlu0 %1566  ;;  %v2115_v4 = vadd.f32 %v2113_v60, %v2102_v33 }
 0x16d   : > { %v1569_v20 = vadd.f32 %v1567_v53, %v1556_v7 }
 0x16e   : > { %v2126_v52 = vadd.f32 %v2124_v21, %v2115_v4 }
 0x16f   : > { %v2137_v0 = vpop.permute.xlu1 %2136  ;;  %v1580_v58 = vadd.f32 %v1578_v18, %v1569_v20  ;;  %v2192_v18 = vsel %vm234_vm0, %v2190_v42, %v2191_v62  ;;  %v1253_v42 = vstv %s4311_s30  ;;  %v2288_v62 = vstv %s4314_s4 }
 0x170   : > { %v1591_v22 = vpop.permute.xlu0 %1590  ;;  %v2139_v46 = vadd.f32 %v2137_v0, %v2126_v52  ;;  %v1646_v0 = vsel %vm234_vm0, %v1644_v23, %v1645_v12 }
 0x171   : > { %v1593_v13 = vadd.f32 %v1591_v22, %v1580_v58 }
 0x173   : > { %v2150_v16 = vpop.permute.xlu1 %2149 }
 0x174   : > { %v1604_v25 = vpop.permute.xlu0 %1603  ;;  %v2152_v38 = vadd.f32 %v2150_v16, %v2139_v46  ;;  %v1690_v16 = vmul.f32 %v2761_v57, %v1689_v9 }
 0x175   : > { %v1606_v30 = vadd.f32 %v1604_v25, %v1593_v13  ;;  %v1691_v25 = vmul.f32 %v2762_v55, %v1689_v9 }
 0x176   : > { %v2159_v32 = vadd.f32 %v2158_v45, %v2152_v38 }
 0x177   : > { %v2165_v56 = vpop.permute.xlu1 %2164  ;;  %v1613_v43 = vadd.f32 %v1612_v8, %v1606_v30  ;;  %v1695_v33 = vrot.slane %v1691_v25, 2  ;;  %v1216_v8 = vstv %s2584_s28 }
 0x178   : > { %v1619_v31 = vpop.permute.xlu0 %1618  ;;  %v2167_v10 = vadd.f32 %v2165_v56, %v2159_v32  ;;  %v1217_v6 = vmul.f32 %v4071_v14, %v1216_v8 }
 0x179   : > { %v1621_v47 = vadd.f32 %v1619_v31, %v1613_v43  ;;  %v1694_v31 = vrot.slane %v1690_v16, 2 }
 0x17a   : > { %v1221_v12 = vrot.slane %v1217_v6, 1 }
 0x17b   : > { %v2173_v27 = vpop.permute.xlu1 %2172  ;;  %v1696_v13 = vsel %vm285_vm1, %v1694_v31, %v1695_v33  ;;  %v2289_v33 = vmul.f32 %v4138_v29, %v2288_v62 }
 0x17c   : > { %v1627_v59 = vpop.permute.xlu0 %1626  ;;  %v2175_v7 = vadd.f32 %v2173_v27, %v2167_v10  ;;  %v2237_v27 = vmul.f32 %v2764_v28, %v2235_v34  ;;  %v1255_v34 = vmul.f32 %v4123_v3, %v1253_v42 }
 0x17d   : > { %v1629_v19 = vadd.f32 %v1627_v59, %v1621_v47  ;;  %v1742_v47 = vstv %s4302_s29 }
 0x17e   : > { %v1743_v28 = vmul.f32 %v4062_v41, %v1742_v47 }
 0x17f   : > { %v2181_v54 = vpop.permute.xlu1 %2180 }
 0x180   : > { %v1635_v37 = vpop.permute.xlu0 %1634  ;;  %v2183_v20 = vadd.f32 %v2181_v54, %v2175_v7  ;;  %v2240_v54 = vrot.slane %v2236_v24, 2 }
 0x181   : > { %v1637_v26 = vadd.f32 %v1635_v37, %v1629_v19  ;;  %v2241_v37 = vrot.slane %v2237_v27, 2 }
 0x182   : > { %v2194_v4 = vadd.f32 %v2192_v18, %v2183_v20  ;;  %v2308_v20 = vstv %s4316_s5 }
 0x183   : > { %v2205_v51 = vpop.permute.xlu1 %2204  ;;  %v1648_v2 = vadd.f32 %v1646_v0, %v1637_v26  ;;  %v2242_v45 = vsel %vm285_vm1, %v2240_v54, %v2241_v37  ;;  %v1762_v26 = vstv %s4306_s11 }
 0x184   : > { %v1659_v39 = vpop.permute.xlu0 %1658  ;;  %v2207_v57 = vadd.f32 %v2205_v51, %v2194_v4  ;;  %v1197_v51 = vmul.f32 %v4071_v14, %v1196_v17  ;;  %v1763_v7 = vmul.f32 %v4062_v41, %v1762_v26  ;;  %v2309_v4 = vmul.f32 %v4138_v29, %v2308_v20 }
 0x185   : > { %v1661_v50 = vadd.f32 %v1659_v39, %v1648_v2  ;;  %v1218_v39 = vmul.f32 %v4123_v3, %v1216_v8  ;;  %v1764_v2 = vmul.f32 %v4113_v15, %v1762_v26 }
 0x186   : > { %v2313_v8 = vrot.slane %v2309_v4, 1 }
 0x187   : > { %v2218_v60 = vpop.permute.xlu1 %2217 }
 0x188   : > { %v1672_v53 = vpop.permute.xlu0 %1671  ;;  %v2220_v35 = vadd.f32 %v2218_v60, %v2207_v57  ;;  %v1222_v60 = vrot.slane %v1218_v39, 1 }
 0x189   : > { %v1674_v21 = vadd.f32 %v1672_v53, %v1661_v50 }
 0x18b   : > { %v2231_v22 = vpop.permute.xlu1 %2230 }
 0x18c   : > { %v1685_v1 = vpop.permute.xlu0 %1684  ;;  %v2233_v38 = vadd.f32 %v2231_v22, %v2220_v35  ;;  %v2345_v35 = vstv %s4329_s8 }
 0x18d   : > { %v1687_v59 = vadd.f32 %v1685_v1, %v1674_v21  ;;  %v1223_v1 = vsel %vm234_vm0, %v1221_v12, %v1222_v60  ;;  %v2310_v21 = vmul.f32 %v4148_v5, %v2308_v20  ;;  %v1836_v20 = vstv %s2648_s14 }
 0x18e   : > { %v2244_v53 = vadd.f32 %v2242_v45, %v2233_v38  ;;  %v2346_v45 = vmul.f32 %v4138_v29, %v2345_v35 }
 0x18f   : > { %v2255_v11 = vpop.permute.xlu1 %2254  ;;  %v1698_v46 = vadd.f32 %v1696_v13, %v1687_v59  ;;  %v2314_v54 = vrot.slane %v2310_v21, 1 }
 0x190   : > { %v1709_v36 = vpop.permute.xlu0 %1708  ;;  %v2257_v10 = vadd.f32 %v2255_v11, %v2244_v53  ;;  %v1254_v11 = vmul.f32 %v4071_v14, %v1253_v42  ;;  %v1799_v14 = vstv %s4322_s7 }
 0x192   : > { %v1258_v13 = vrot.slane %v1254_v11, 2 }
 0x193   : > { %v1722_v56 = vpop.permute.xlu1 %1721 }
 0x194   : > { %v1176_v58 = vpop.permute.xlu0 %1175 }
 0x195   : > { %v1178_v43 = vadd.f32 %v1176_v58, %v4234_v61  ;;  %v1711_v61 = vadd.f32 %v1709_v36, %v1698_v46  ;;  %v1768_v58 = vrot.slane %v1764_v2, 1 }
 0x197   : > { %v1189_v52 = vpop.permute.xlu1 %1188  ;;  %v1724_v32 = vadd.f32 %v1722_v56, %v1711_v61  ;;  %v1767_v56 = vrot.slane %v1763_v7, 1  ;;  %v2347_v61 = vmul.f32 %v4148_v5, %v2345_v35 }
 0x198   : > { %v2268_v30 = vpop.permute.xlu0 %2267  ;;  %v1191_v40 = vadd.f32 %v1189_v52, %v1178_v43  ;;  %v1259_v52 = vrot.slane %v1255_v34, 2 }
 0x199   : > { %v2270_v16 = vadd.f32 %v2268_v30, %v2257_v10  ;;  %v1769_v3 = vsel %vm234_vm0, %v1767_v56, %v1768_v58 }
 0x19a   : > { %v1198_v19 = vadd.f32 %v1197_v51, %v1191_v40  ;;  %v1260_v6 = vsel %vm285_vm1, %v1258_v13, %v1259_v52  ;;  %v2315_v51 = vsel %vm234_vm0, %v2313_v8, %v2314_v54 }
 0x19b   : > { %v2281_v49 = vpop.permute.xlu1 %2280 }
 0x19c   : > { %v1735_v55 = vpop.permute.xlu0 %1734  ;;  %v2283_v31 = vadd.f32 %v2281_v49, %v2270_v16  ;;  %v1800_v49 = vmul.f32 %v4062_v41, %v1799_v14 }
 0x19d   : > { %v1737_v48 = vadd.f32 %v1735_v55, %v1724_v32  ;;  %v1801_v55 = vmul.f32 %v4113_v15, %v1799_v14  ;;  %v2350_v15 = vrot.slane %v2346_v45, 2  ;;  %v2351_v32 = vrot.slane %v2347_v61, 2 }
 0x19e   : > { %v2290_v30 = vadd.f32 %v2289_v33, %v2283_v31  ;;  %v1804_v12 = vrot.slane %v1800_v49, 2 }
 0x19f   : > { %v1750_v44 = vpop.permute.xlu1 %1749  ;;  %v1744_v25 = vadd.f32 %v1743_v28, %v1737_v48  ;;  %v1805_v60 = vrot.slane %v1801_v55, 2  ;;  %v2352_v5 = vsel %vm285_vm1, %v2350_v15, %v2351_v32 }
 0x1a0   : > { %v1204_v23 = vpop.permute.xlu0 %1203 }
 0x1a1   : > { %v1206_v63 = vadd.f32 %v1204_v23, %v1198_v19  ;;  %v1752_v24 = vadd.f32 %v1750_v44, %v1744_v25  ;;  %v1806_v28 = vsel %vm285_vm1, %v1804_v12, %v1805_v60  ;;  %v2382_v25 = vstv %s2706_s10 }
 0x1a3   : > { %v1212_v0 = vpop.permute.xlu1 %1211 }
 0x1a4   : > { %v2296_v22 = vpop.permute.xlu0 %2295  ;;  %v1214_v9 = vadd.f32 %v1212_v0, %v1206_v63 }
 0x1a5   : > { %v2298_v37 = vadd.f32 %v2296_v22, %v2290_v30 }
 0x1a6   : > { %v1225_v36 = vadd.f32 %v1223_v1, %v1214_v9  ;;  %v1290_v1 = vstv %s2590_s9 }
 0x1a7   : > { %v2304_v18 = vpop.permute.xlu1 %2303 }
 0x1a8   : > { %v1758_v50 = vpop.permute.xlu0 %1757  ;;  %v2306_v39 = vadd.f32 %v2304_v18, %v2298_v37 }
 0x1a9   : > { %v1760_v57 = vadd.f32 %v1758_v50, %v1752_v24 }
 0x1aa   : > { %v2317_v53 = vadd.f32 %v2315_v51, %v2306_v39 }
 0x1ab   : > { %v1782_v27 = vpop.permute.xlu1 %1781  ;;  %v1771_v38 = vadd.f32 %v1769_v3, %v1760_v57 }
 0x1ac   : > { %v1236_v59 = vpop.permute.xlu0 %1235 }
 0x1ad   : > { %v1238_v17 = vadd.f32 %v1236_v59, %v1225_v36  ;;  %v1784_v41 = vadd.f32 %v1782_v27, %v1771_v38 }
 0x1af   : > { %v1249_v46 = vpop.permute.xlu1 %1248 }
 0x1b0   : > { %v2328_v43 = vpop.permute.xlu0 %2327  ;;  %v1251_v40 = vadd.f32 %v1249_v46, %v1238_v17 }
 0x1b1   : > { %v2330_v19 = vadd.f32 %v2328_v43, %v2317_v53 }
 0x1b2   : > { %v1262_v47 = vadd.f32 %v1260_v6, %v1251_v40 }
 0x1b3   : > { %v2341_v44 = vpop.permute.xlu1 %2340 }
 0x1b4   : > { %v1795_v23 = vpop.permute.xlu0 %1794  ;;  %v2343_v29 = vadd.f32 %v2341_v44, %v2330_v19 }
 0x1b5   : > { %v1797_v48 = vadd.f32 %v1795_v23, %v1784_v41 }
 0x1b6   : > { %v2354_v62 = vadd.f32 %v2352_v5, %v2343_v29 }
 0x1b7   : > { %v1819_v63 = vpop.permute.xlu1 %1818  ;;  %v1808_v0 = vadd.f32 %v1806_v28, %v1797_v48 }
 0x1b8   : > { %v1273_v26 = vpop.permute.xlu0 %1272 }
 0x1b9   : > { %v1275_v22 = vadd.f32 %v1273_v26, %v1262_v47  ;;  %v1821_v7 = vadd.f32 %v1819_v63, %v1808_v0 }
 0x1bb   : > { %v1286_v10 = vpop.permute.xlu1 %1285 }
 0x1bc   : > { %v2365_v9 = vpop.permute.xlu0 %2364  ;;  %v1288_v42 = vadd.f32 %v1286_v10, %v1275_v22 }
 0x1bd   : > { %v2367_v16 = vadd.f32 %v2365_v9, %v2354_v62 }
 0x1be   : > { %v1291_v2 = vadd.f32 %v1290_v1, %v1288_v42 }
 0x1bf   : > { %v2378_v36 = vpop.permute.xlu1 %2377 }
 0x1c0   : > { %v1832_v18 = vpop.permute.xlu0 %1831  ;;  %2386 = vst.msk [vmem:[%s3928_s27 + $0x8] sm:$0xff] %vm2384_vm3, %v1291_v2  ;;  %v2380_v50 = vadd.f32 %v2378_v36, %v2367_v16 }
 0x1c1   : > { %v1834_v11 = vadd.f32 %v1832_v18, %v1821_v7 }
 0x1c2   : > { %v2383_v34 = vadd.f32 %v2382_v25, %v2380_v50 }
 0x1c3   : > { %v1837_v31 = vadd.f32 %v1836_v20, %v1834_v11 }
 0x1c4   : > { %2388 = vst.msk [vmem:[%s3928_s27 + $0x18] sm:$0xff] %vm2384_vm3, %v2383_v34 }
 0x1c5   : > { %2387 = vst.msk [vmem:[%s3928_s27 + $0x10] sm:$0xff] %vm2384_vm3, %v1837_v31 }
 0x1c6 PF: > { %s15_s12 = sadd.s32 1, %s2809_s12  }
 0x1c7   : > { %p12_p5 = scmp.ge.s32.totalorder %s15_s12, 4  }
 0x1c9   :  { %14 = sbr.rel (!%p12_p5) target bundleno = 2 (0x2), region = 86 }
 0x1d0   :  { %2410 = vsyncpa [#allocation3], 1 }
 0x1d1   :  { %2412 = vsyncpa [#allocation3 + $0x1], 1 }
 0x1d2   :  { %2413 = vsyncpa [#allocation5], 1 }

</bundles_post_ra>
